<compile_context>
chip_gen: v6e
topology: v6e:2x2x1
jax: 0.10.0
libtpu: 0.0.40
codegen_flags: <defaults>
</compile_context>

<pallas_src>
import jax
import jax.numpy as jnp
from jax.experimental import pallas as pl
from jax.experimental.pallas import tpu as pltpu

_C = 128  # padded channel / feature width (lane-dense)


# ------------------------------ fused kernel -------------------------------

def _net_fused_kernel(p1_ref, w1_ref, b1_ref, w2_ref, b2_ref,
                      fc1w_ref, fc1b_ref, fc2w_ref, fc2b_ref, out_ref):
    f32 = jnp.float32
    bt = out_ref.shape[0]

    # ---- Stage 1: conv1 (1->10, k5) + maxpool 2x2 + relu, on the MXU -------
    # p1_ref[b, py, px, f*32 + k] = x[b, 2*py+ry+ky, 2*px+rx+kx]
    # with pool phase f = ry*2+rx and tap k = ky*5+kx (px >= 12 is zero pad).
    w1 = w1_ref[...]                                            # [32, 128]
    zmax = None
    for f in range(4):
        pf = p1_ref[:, :, :, f * 32:(f + 1) * 32]               # [bt,12,16,32]
        z = jnp.dot(pf.reshape(bt * 192, 32), w1,
                    preferred_element_type=f32)                 # [bt*192, 128]
        zmax = z if zmax is None else jnp.maximum(zmax, z)
    h1 = jnp.maximum(zmax + b1_ref[...], 0.0)                   # [bt*192, 128]
    h1 = h1.reshape(bt, 12, 16, _C)                             # (y, x_pad, c)

    # ---- Stage 2: conv2 (10->20, k5), accumulated over all 8x8 positions ---
    # TODO(synk): nn.Dropout2d after conv2 is identity at inference; the
    # training-mode stochastic channel mask is not implemented.
    # Pre-shift h1 along x once per kx so each tap slab below is a cheap
    # major-dim slice (no per-tap sublane-offset relayout).
    h1x = [h1[:, :, kx:kx + 8, :] for kx in range(5)]           # 5x[bt,12,8,C]
    acc = jnp.zeros((bt * 64, _C), f32)                         # 8x8 pre-pool
    for ky in range(5):
        for kx in range(5):
            slab = h1x[kx][:, ky:ky + 8, :, :].reshape(bt * 64, _C)
            acc = acc + jnp.dot(slab, w2_ref[ky * 5 + kx],
                                preferred_element_type=f32)
    a4 = acc.reshape(bt, 8, 8, _C)                              # (b, oy, ox, c)
    b2 = b2_ref[...]

    # ---- Stage 3: maxpool 2x2 + relu fused with flatten, then fc1/fc2 ------
    # TODO(synk): F.dropout after fc1 is identity at inference (training=False).
    pieces = []
    for py in range(4):
        for px in range(4):
            cand = jnp.maximum(
                jnp.maximum(a4[:, 2 * py, 2 * px, :],
                            a4[:, 2 * py, 2 * px + 1, :]),
                jnp.maximum(a4[:, 2 * py + 1, 2 * px, :],
                            a4[:, 2 * py + 1, 2 * px + 1, :]))
            pieces.append(jnp.maximum(cand + b2, 0.0))          # [bt, 128]
    h2f = jnp.concatenate(pieces, axis=-1)                      # [bt, 2048]

    f1 = jnp.maximum(jnp.dot(h2f, fc1w_ref[...],
                             preferred_element_type=f32) + fc1b_ref[...], 0.0)
    logits = jnp.dot(f1, fc2w_ref[...],
                     preferred_element_type=f32) + fc2b_ref[...]  # [bt, 128]

    # log_softmax over the 10 valid lanes; invalid lanes written as 0.
    lane = jax.lax.broadcasted_iota(jnp.int32, (bt, _C), 1)
    valid = lane < 10
    masked = jnp.where(valid, logits, jnp.float32(-1e30))
    mx = jnp.max(masked, axis=-1, keepdims=True)
    ssum = jnp.sum(jnp.where(valid, jnp.exp(masked - mx), 0.0),
                   axis=-1, keepdims=True)
    logsm = masked - (jnp.log(ssum) + mx)
    out_ref[:, 0, :] = jnp.where(valid, logsm, 0.0)


# ------------------------------- parameters --------------------------------

def init_params(key):
    """Deterministic synthetic parameters, PyTorch shapes."""
    ks = jax.random.split(key, 8)
    s = 0.1
    return dict(
        conv1_w=jax.random.normal(ks[0], (10, 1, 5, 5), jnp.float32) * s,
        conv1_b=jax.random.normal(ks[1], (10,), jnp.float32) * s,
        conv2_w=jax.random.normal(ks[2], (20, 10, 5, 5), jnp.float32) * s,
        conv2_b=jax.random.normal(ks[3], (20,), jnp.float32) * s,
        fc1_w=jax.random.normal(ks[4], (50, 320), jnp.float32) * s,
        fc1_b=jax.random.normal(ks[5], (50,), jnp.float32) * s,
        fc2_w=jax.random.normal(ks[6], (10, 50), jnp.float32) * s,
        fc2_b=jax.random.normal(ks[7], (10,), jnp.float32) * s,
    )


def prepare_params(p):
    """One-time prep: pad channel/feature dims to 128 lanes and fold every
    layout permutation (incl. torch's channel-major view(-1, 320) flatten for
    fc1) into the weights, so the per-forward hot path does no transposes."""
    f32 = jnp.float32
    # conv1: [k=ky*5+kx, cout], K padded 25->32, N padded 10->128.
    w1 = jnp.zeros((32, _C), f32).at[:25, :10].set(
        p["conv1_w"].astype(f32).reshape(10, 25).T)
    b1 = jnp.zeros((1, _C), f32).at[0, :10].set(p["conv1_b"].astype(f32))
    # conv2: per-tap [cin, cout] matrices.
    w2t = jnp.transpose(p["conv2_w"].astype(f32).reshape(20, 10, 25),
                        (2, 1, 0))                              # [k, ci, co]
    w2 = jnp.zeros((25, _C, _C), f32).at[:, :10, :20].set(w2t)
    b2 = jnp.zeros((1, _C), f32).at[0, :20].set(p["conv2_b"].astype(f32))
    # fc1: torch flatten index = c*16 + pos  ->  kernel lane index pos*128 + c.
    fc1t = jnp.transpose(p["fc1_w"].astype(f32).reshape(50, 20, 16),
                         (2, 1, 0))                             # [pos, c, f]
    fc1w = jnp.zeros((16, _C, _C), f32).at[:, :20, :50].set(fc1t)
    fc1w = fc1w.reshape(16 * _C, _C)                            # [2048, 128]
    fc1b = jnp.zeros((1, _C), f32).at[0, :50].set(p["fc1_b"].astype(f32))
    fc2w = jnp.zeros((_C, _C), f32).at[:50, :10].set(p["fc2_w"].astype(f32).T)
    fc2b = jnp.zeros((1, _C), f32).at[0, :10].set(p["fc2_b"].astype(f32))
    return dict(w1=w1, b1=b1, w2=w2, b2=b2,
                fc1w=fc1w, fc1b=fc1b, fc2w=fc2w, fc2b=fc2b)


# --------------------------------- wrapper ----------------------------------

def _vmem_limit_bytes():
    """Generation-aware scoped-VMEM limit (v7x has 64 MiB physical)."""
    try:
        cap = int(pltpu.get_tpu_info().vmem_capacity_bytes)
    except Exception:
        cap = 64 * 1024 * 1024
    return int(min(64 * 1024 * 1024, cap * 3 // 4))


def _pick_batch_tile(batch, target=32):
    """Largest divisor of `batch` <= target that still leaves >= 2 grid steps
    (so the 'parallel' axis shards across megacore / v7x's two TensorCores)."""
    best = None
    for d in range(1, min(batch, target) + 1):
        if batch % d == 0 and batch // d >= 2:
            best = d
    return best if best is not None else min(batch, target)


def net_forward(x_nchw, prepped, bt=None):
    """Forward matching the torch module in eval mode. x: [B, 1, 28, 28]."""
    B = x_nchw.shape[0]
    if bt is None:
        bt = _pick_batch_tile(B)
    assert B % bt == 0

    # conv1 im2col, pre-grouped by pool phase and padded lane-dense:
    #   patches[b, py, px, (ry*2+rx)*32 + ky*5+kx] = x[b, 2*py+ry+ky, 2*px+rx+kx]
    x2 = x_nchw.astype(jnp.float32)[:, 0]                        # [B, 28, 28]
    cols = jnp.stack([x2[:, ky:ky + 24, kx:kx + 24]
                      for ky in range(5) for kx in range(5)],
                     axis=-1)                                    # [B,24,24,25]
    cols = jnp.pad(cols, ((0, 0), (0, 0), (0, 0), (0, 7)))       # [B,24,24,32]
    cols = cols.reshape(B, 12, 2, 12, 2, 32)
    cols = jnp.transpose(cols, (0, 1, 3, 2, 4, 5))               # [B,py,px,ry,rx,32]
    patches = cols.reshape(B, 12, 12, 4 * 32)
    patches = jnp.pad(patches, ((0, 0), (0, 0), (0, 4), (0, 0)))  # [B,12,16,128]

    const2 = lambda i: (0, 0)
    const3 = lambda i: (0, 0, 0)
    out = pl.pallas_call(
        _net_fused_kernel,
        out_shape=jax.ShapeDtypeStruct((B, 1, _C), jnp.float32),
        grid_spec=pltpu.PrefetchScalarGridSpec(
            num_scalar_prefetch=0,
            grid=(B // bt,),
            in_specs=[
                pl.BlockSpec((bt, 12, 16, _C), lambda i: (i, 0, 0, 0)),  # patches
                pl.BlockSpec((32, _C), const2),        # w1
                pl.BlockSpec((1, _C), const2),         # b1
                pl.BlockSpec((25, _C, _C), const3),    # w2
                pl.BlockSpec((1, _C), const2),         # b2
                pl.BlockSpec((16 * _C, _C), const2),   # fc1w
                pl.BlockSpec((1, _C), const2),         # fc1b
                pl.BlockSpec((_C, _C), const2),        # fc2w
                pl.BlockSpec((1, _C), const2),         # fc2b
            ],
            out_specs=pl.BlockSpec((bt, 1, _C), lambda i: (i, 0, 0)),
        ),
        compiler_params=pltpu.CompilerParams(
            dimension_semantics=("parallel",),
            vmem_limit_bytes=_vmem_limit_bytes(),
        ),
    )(patches, prepped["w1"], prepped["b1"], prepped["w2"], prepped["b2"],
      prepped["fc1w"], prepped["fc1b"], prepped["fc2w"], prepped["fc2b"])
    return out[:, 0, :10]


# ------------------------------ pure-JAX reference ---------------------------

def net_forward_reference(x_nchw, p):
    y = jax.lax.conv_general_dilated(
        x_nchw, p["conv1_w"], (1, 1), "VALID",
        dimension_numbers=("NCHW", "OIHW", "NCHW")) + p["conv1_b"][None, :, None, None]
    y = jax.lax.reduce_window(y, -jnp.inf, jax.lax.max,
                              (1, 1, 2, 2), (1, 1, 2, 2), "VALID")
    y = jnp.maximum(y, 0.0)
    y = jax.lax.conv_general_dilated(
        y, p["conv2_w"], (1, 1), "VALID",
        dimension_numbers=("NCHW", "OIHW", "NCHW")) + p["conv2_b"][None, :, None, None]
    y = jax.lax.reduce_window(y, -jnp.inf, jax.lax.max,
                              (1, 1, 2, 2), (1, 1, 2, 2), "VALID")
    y = jnp.maximum(y, 0.0)
    y = y.reshape(y.shape[0], -1)
    y = jnp.maximum(y @ p["fc1_w"].T + p["fc1_b"], 0.0)
    y = y @ p["fc2_w"].T + p["fc2_b"]
    return jax.nn.log_softmax(y, axis=1)


if __name__ == "__main__":
    key = jax.random.PRNGKey(0)
    k_x, k_p = jax.random.split(key)
    params = init_params(k_p)
    prepped = prepare_params(params)          # hoisted one-time weight prep
    fwd = jax.jit(net_forward, static_argnames=("bt",))

    # 28x28 input is required by the module itself (fc1 expects 320 = 20*4*4).
    for B in (2, 8):                          # bt=1/grid=2 and bt=4/grid=2 paths
        x = jax.random.normal(jax.random.fold_in(k_x, B),
                              (B, 1, 28, 28), jnp.float32)
        out = jax.block_until_ready(fwd(x, prepped))
        ref = jax.block_until_ready(net_forward_reference(x, params))
        assert out.shape == (B, 10), out.shape
        assert jnp.allclose(out, ref, rtol=1e-4, atol=1e-4), (out, ref)
    print("KERNEL_OK")
</pallas_src>

<mosaic_0001>
module attributes {stable_mosaic.version = 11 : i64} {
  func.func @_net_fused_kernel(%arg0: i32, %arg1: memref<1x12x16x128xf32, #tpu.memory_space<vmem>>, %arg2: memref<32x128xf32, #tpu.memory_space<vmem>>, %arg3: memref<1x128xf32, #tpu.memory_space<vmem>>, %arg4: memref<25x128x128xf32, #tpu.memory_space<vmem>>, %arg5: memref<1x128xf32, #tpu.memory_space<vmem>>, %arg6: memref<2048x128xf32, #tpu.memory_space<vmem>>, %arg7: memref<1x128xf32, #tpu.memory_space<vmem>>, %arg8: memref<128x128xf32, #tpu.memory_space<vmem>>, %arg9: memref<1x128xf32, #tpu.memory_space<vmem>>, %arg10: memref<1x1x128xf32, #tpu.memory_space<vmem>>) attributes {dimension_semantics = [#tpu.dimension_semantics<parallel>], iteration_bounds = array<i64: 2>, scalar_prefetch = 0 : i64, scratch_operands = 0 : i64, tpu.core_type = #tpu.core_type<tc>, window_params = [{transform_indices = @transform_0, window_bounds = array<i64: 1, 12, 16, 128>}, {pipeline_mode = #tpu.pipeline_mode<synchronous>, transform_indices = @transform_1, window_bounds = array<i64: 32, 128>}, {pipeline_mode = #tpu.pipeline_mode<synchronous>, transform_indices = @transform_2, window_bounds = array<i64: 1, 128>}, {pipeline_mode = #tpu.pipeline_mode<synchronous>, transform_indices = @transform_3, window_bounds = array<i64: 25, 128, 128>}, {pipeline_mode = #tpu.pipeline_mode<synchronous>, transform_indices = @transform_4, window_bounds = array<i64: 1, 128>}, {pipeline_mode = #tpu.pipeline_mode<synchronous>, transform_indices = @transform_5, window_bounds = array<i64: 2048, 128>}, {pipeline_mode = #tpu.pipeline_mode<synchronous>, transform_indices = @transform_6, window_bounds = array<i64: 1, 128>}, {pipeline_mode = #tpu.pipeline_mode<synchronous>, transform_indices = @transform_7, window_bounds = array<i64: 128, 128>}, {pipeline_mode = #tpu.pipeline_mode<synchronous>, transform_indices = @transform_8, window_bounds = array<i64: 1, 128>}, {transform_indices = @transform_9, window_bounds = array<i64: 1, 1, 128>}]} {
    %c0 = arith.constant 0 : index
    %c0_0 = arith.constant 0 : index
    %0 = vector.load %arg2[%c0, %c0_0] : memref<32x128xf32, #tpu.memory_space<vmem>>, vector<32x128xf32>
    %c0_1 = arith.constant 0 : index
    %c0_2 = arith.constant 0 : index
    %c0_3 = arith.constant 0 : index
    %c0_4 = arith.constant 0 : index
    %1 = vector.load %arg1[%c0_1, %c0_2, %c0_3, %c0_4] : memref<1x12x16x128xf32, #tpu.memory_space<vmem>>, vector<1x12x16x32xf32>
    %2 = vector.shape_cast %1 : vector<1x12x16x32xf32> to vector<192x32xf32>
    %cst = arith.constant dense<0.000000e+00> : vector<192x128xf32>
    %3 = tpu.matmul %2, %0, %cst {dimension_numbers = #tpu.dot_dimension_numbers<[1], [0], [0], [1], [0, 0, 1, 1], [], []>} : vector<192x32xf32>, vector<32x128xf32>, vector<192x128xf32> -> vector<192x128xf32>
    %c0_5 = arith.constant 0 : index
    %c0_6 = arith.constant 0 : index
    %c0_7 = arith.constant 0 : index
    %c32 = arith.constant 32 : index
    %4 = vector.load %arg1[%c0_5, %c0_6, %c0_7, %c32] : memref<1x12x16x128xf32, #tpu.memory_space<vmem>>, vector<1x12x16x32xf32>
    %5 = vector.shape_cast %4 : vector<1x12x16x32xf32> to vector<192x32xf32>
    %cst_8 = arith.constant dense<0.000000e+00> : vector<192x128xf32>
    %6 = tpu.matmul %5, %0, %cst_8 {dimension_numbers = #tpu.dot_dimension_numbers<[1], [0], [0], [1], [0, 0, 1, 1], [], []>} : vector<192x32xf32>, vector<32x128xf32>, vector<192x128xf32> -> vector<192x128xf32>
    %7 = arith.maximumf %3, %6 : vector<192x128xf32>
    %c0_9 = arith.constant 0 : index
    %c0_10 = arith.constant 0 : index
    %c0_11 = arith.constant 0 : index
    %c64 = arith.constant 64 : index
    %8 = vector.load %arg1[%c0_9, %c0_10, %c0_11, %c64] : memref<1x12x16x128xf32, #tpu.memory_space<vmem>>, vector<1x12x16x32xf32>
    %9 = vector.shape_cast %8 : vector<1x12x16x32xf32> to vector<192x32xf32>
    %cst_12 = arith.constant dense<0.000000e+00> : vector<192x128xf32>
    %10 = tpu.matmul %9, %0, %cst_12 {dimension_numbers = #tpu.dot_dimension_numbers<[1], [0], [0], [1], [0, 0, 1, 1], [], []>} : vector<192x32xf32>, vector<32x128xf32>, vector<192x128xf32> -> vector<192x128xf32>
    %11 = arith.maximumf %7, %10 : vector<192x128xf32>
    %c0_13 = arith.constant 0 : index
    %c0_14 = arith.constant 0 : index
    %c0_15 = arith.constant 0 : index
    %c96 = arith.constant 96 : index
    %12 = vector.load %arg1[%c0_13, %c0_14, %c0_15, %c96] : memref<1x12x16x128xf32, #tpu.memory_space<vmem>>, vector<1x12x16x32xf32>
    %13 = vector.shape_cast %12 : vector<1x12x16x32xf32> to vector<192x32xf32>
    %cst_16 = arith.constant dense<0.000000e+00> : vector<192x128xf32>
    %14 = tpu.matmul %13, %0, %cst_16 {dimension_numbers = #tpu.dot_dimension_numbers<[1], [0], [0], [1], [0, 0, 1, 1], [], []>} : vector<192x32xf32>, vector<32x128xf32>, vector<192x128xf32> -> vector<192x128xf32>
    %15 = arith.maximumf %11, %14 : vector<192x128xf32>
    %c0_17 = arith.constant 0 : index
    %c0_18 = arith.constant 0 : index
    %16 = vector.load %arg3[%c0_17, %c0_18] : memref<1x128xf32, #tpu.memory_space<vmem>>, vector<1x128xf32>
    %17 = vector.broadcast %16 : vector<1x128xf32> to vector<192x128xf32>
    %18 = arith.addf %15, %17 : vector<192x128xf32>
    %cst_19 = arith.constant 0.000000e+00 : f32
    %19 = vector.broadcast %cst_19 : f32 to vector<192x128xf32>
    %20 = arith.maximumf %18, %19 : vector<192x128xf32>
    %21 = vector.shape_cast %20 : vector<192x128xf32> to vector<1x12x16x128xf32>
    %22 = vector.extract_strided_slice %21 {offsets = [0, 0, 0, 0], sizes = [1, 12, 8, 128], strides = [1, 1, 1, 1]} : vector<1x12x16x128xf32> to vector<1x12x8x128xf32>
    %23 = vector.extract_strided_slice %21 {offsets = [0, 0, 1, 0], sizes = [1, 12, 8, 128], strides = [1, 1, 1, 1]} : vector<1x12x16x128xf32> to vector<1x12x8x128xf32>
    %24 = vector.extract_strided_slice %21 {offsets = [0, 0, 2, 0], sizes = [1, 12, 8, 128], strides = [1, 1, 1, 1]} : vector<1x12x16x128xf32> to vector<1x12x8x128xf32>
    %25 = vector.extract_strided_slice %21 {offsets = [0, 0, 3, 0], sizes = [1, 12, 8, 128], strides = [1, 1, 1, 1]} : vector<1x12x16x128xf32> to vector<1x12x8x128xf32>
    %26 = vector.extract_strided_slice %21 {offsets = [0, 0, 4, 0], sizes = [1, 12, 8, 128], strides = [1, 1, 1, 1]} : vector<1x12x16x128xf32> to vector<1x12x8x128xf32>
    %cst_20 = arith.constant 0.000000e+00 : f32
    %27 = vector.broadcast %cst_20 : f32 to vector<64x128xf32>
    %28 = vector.extract_strided_slice %22 {offsets = [0, 0, 0, 0], sizes = [1, 8, 8, 128], strides = [1, 1, 1, 1]} : vector<1x12x8x128xf32> to vector<1x8x8x128xf32>
    %29 = vector.shape_cast %28 : vector<1x8x8x128xf32> to vector<64x128xf32>
    %c0_21 = arith.constant 0 : index
    %c0_22 = arith.constant 0 : index
    %c0_23 = arith.constant 0 : index
    %30 = vector.load %arg4[%c0_21, %c0_22, %c0_23] : memref<25x128x128xf32, #tpu.memory_space<vmem>>, vector<1x128x128xf32>
    %31 = vector.shape_cast %30 : vector<1x128x128xf32> to vector<128x128xf32>
    %cst_24 = arith.constant dense<0.000000e+00> : vector<64x128xf32>
    %32 = tpu.matmul %29, %31, %cst_24 {dimension_numbers = #tpu.dot_dimension_numbers<[1], [0], [0], [1], [0, 0, 1, 1], [], []>} : vector<64x128xf32>, vector<128x128xf32>, vector<64x128xf32> -> vector<64x128xf32>
    %33 = arith.addf %27, %32 : vector<64x128xf32>
    %34 = vector.extract_strided_slice %23 {offsets = [0, 0, 0, 0], sizes = [1, 8, 8, 128], strides = [1, 1, 1, 1]} : vector<1x12x8x128xf32> to vector<1x8x8x128xf32>
    %35 = vector.shape_cast %34 : vector<1x8x8x128xf32> to vector<64x128xf32>
    %c1 = arith.constant 1 : index
    %c0_25 = arith.constant 0 : index
    %c0_26 = arith.constant 0 : index
    %36 = vector.load %arg4[%c1, %c0_25, %c0_26] : memref<25x128x128xf32, #tpu.memory_space<vmem>>, vector<1x128x128xf32>
    %37 = vector.shape_cast %36 : vector<1x128x128xf32> to vector<128x128xf32>
    %cst_27 = arith.constant dense<0.000000e+00> : vector<64x128xf32>
    %38 = tpu.matmul %35, %37, %cst_27 {dimension_numbers = #tpu.dot_dimension_numbers<[1], [0], [0], [1], [0, 0, 1, 1], [], []>} : vector<64x128xf32>, vector<128x128xf32>, vector<64x128xf32> -> vector<64x128xf32>
    %39 = arith.addf %33, %38 : vector<64x128xf32>
    %40 = vector.extract_strided_slice %24 {offsets = [0, 0, 0, 0], sizes = [1, 8, 8, 128], strides = [1, 1, 1, 1]} : vector<1x12x8x128xf32> to vector<1x8x8x128xf32>
    %41 = vector.shape_cast %40 : vector<1x8x8x128xf32> to vector<64x128xf32>
    %c2 = arith.constant 2 : index
    %c0_28 = arith.constant 0 : index
    %c0_29 = arith.constant 0 : index
    %42 = vector.load %arg4[%c2, %c0_28, %c0_29] : memref<25x128x128xf32, #tpu.memory_space<vmem>>, vector<1x128x128xf32>
    %43 = vector.shape_cast %42 : vector<1x128x128xf32> to vector<128x128xf32>
    %cst_30 = arith.constant dense<0.000000e+00> : vector<64x128xf32>
    %44 = tpu.matmul %41, %43, %cst_30 {dimension_numbers = #tpu.dot_dimension_numbers<[1], [0], [0], [1], [0, 0, 1, 1], [], []>} : vector<64x128xf32>, vector<128x128xf32>, vector<64x128xf32> -> vector<64x128xf32>
    %45 = arith.addf %39, %44 : vector<64x128xf32>
    %46 = vector.extract_strided_slice %25 {offsets = [0, 0, 0, 0], sizes = [1, 8, 8, 128], strides = [1, 1, 1, 1]} : vector<1x12x8x128xf32> to vector<1x8x8x128xf32>
    %47 = vector.shape_cast %46 : vector<1x8x8x128xf32> to vector<64x128xf32>
    %c3 = arith.constant 3 : index
    %c0_31 = arith.constant 0 : index
    %c0_32 = arith.constant 0 : index
    %48 = vector.load %arg4[%c3, %c0_31, %c0_32] : memref<25x128x128xf32, #tpu.memory_space<vmem>>, vector<1x128x128xf32>
    %49 = vector.shape_cast %48 : vector<1x128x128xf32> to vector<128x128xf32>
    %cst_33 = arith.constant dense<0.000000e+00> : vector<64x128xf32>
    %50 = tpu.matmul %47, %49, %cst_33 {dimension_numbers = #tpu.dot_dimension_numbers<[1], [0], [0], [1], [0, 0, 1, 1], [], []>} : vector<64x128xf32>, vector<128x128xf32>, vector<64x128xf32> -> vector<64x128xf32>
    %51 = arith.addf %45, %50 : vector<64x128xf32>
    %52 = vector.extract_strided_slice %26 {offsets = [0, 0, 0, 0], sizes = [1, 8, 8, 128], strides = [1, 1, 1, 1]} : vector<1x12x8x128xf32> to vector<1x8x8x128xf32>
    %53 = vector.shape_cast %52 : vector<1x8x8x128xf32> to vector<64x128xf32>
    %c4 = arith.constant 4 : index
    %c0_34 = arith.constant 0 : index
    %c0_35 = arith.constant 0 : index
    %54 = vector.load %arg4[%c4, %c0_34, %c0_35] : memref<25x128x128xf32, #tpu.memory_space<vmem>>, vector<1x128x128xf32>
    %55 = vector.shape_cast %54 : vector<1x128x128xf32> to vector<128x128xf32>
    %cst_36 = arith.constant dense<0.000000e+00> : vector<64x128xf32>
    %56 = tpu.matmul %53, %55, %cst_36 {dimension_numbers = #tpu.dot_dimension_numbers<[1], [0], [0], [1], [0, 0, 1, 1], [], []>} : vector<64x128xf32>, vector<128x128xf32>, vector<64x128xf32> -> vector<64x128xf32>
    %57 = arith.addf %51, %56 : vector<64x128xf32>
    %58 = vector.extract_strided_slice %22 {offsets = [0, 1, 0, 0], sizes = [1, 8, 8, 128], strides = [1, 1, 1, 1]} : vector<1x12x8x128xf32> to vector<1x8x8x128xf32>
    %59 = vector.shape_cast %58 : vector<1x8x8x128xf32> to vector<64x128xf32>
    %c5 = arith.constant 5 : index
    %c0_37 = arith.constant 0 : index
    %c0_38 = arith.constant 0 : index
    %60 = vector.load %arg4[%c5, %c0_37, %c0_38] : memref<25x128x128xf32, #tpu.memory_space<vmem>>, vector<1x128x128xf32>
    %61 = vector.shape_cast %60 : vector<1x128x128xf32> to vector<128x128xf32>
    %cst_39 = arith.constant dense<0.000000e+00> : vector<64x128xf32>
    %62 = tpu.matmul %59, %61, %cst_39 {dimension_numbers = #tpu.dot_dimension_numbers<[1], [0], [0], [1], [0, 0, 1, 1], [], []>} : vector<64x128xf32>, vector<128x128xf32>, vector<64x128xf32> -> vector<64x128xf32>
    %63 = arith.addf %57, %62 : vector<64x128xf32>
    %64 = vector.extract_strided_slice %23 {offsets = [0, 1, 0, 0], sizes = [1, 8, 8, 128], strides = [1, 1, 1, 1]} : vector<1x12x8x128xf32> to vector<1x8x8x128xf32>
    %65 = vector.shape_cast %64 : vector<1x8x8x128xf32> to vector<64x128xf32>
    %c6 = arith.constant 6 : index
    %c0_40 = arith.constant 0 : index
    %c0_41 = arith.constant 0 : index
    %66 = vector.load %arg4[%c6, %c0_40, %c0_41] : memref<25x128x128xf32, #tpu.memory_space<vmem>>, vector<1x128x128xf32>
    %67 = vector.shape_cast %66 : vector<1x128x128xf32> to vector<128x128xf32>
    %cst_42 = arith.constant dense<0.000000e+00> : vector<64x128xf32>
    %68 = tpu.matmul %65, %67, %cst_42 {dimension_numbers = #tpu.dot_dimension_numbers<[1], [0], [0], [1], [0, 0, 1, 1], [], []>} : vector<64x128xf32>, vector<128x128xf32>, vector<64x128xf32> -> vector<64x128xf32>
    %69 = arith.addf %63, %68 : vector<64x128xf32>
    %70 = vector.extract_strided_slice %24 {offsets = [0, 1, 0, 0], sizes = [1, 8, 8, 128], strides = [1, 1, 1, 1]} : vector<1x12x8x128xf32> to vector<1x8x8x128xf32>
    %71 = vector.shape_cast %70 : vector<1x8x8x128xf32> to vector<64x128xf32>
    %c7 = arith.constant 7 : index
    %c0_43 = arith.constant 0 : index
    %c0_44 = arith.constant 0 : index
    %72 = vector.load %arg4[%c7, %c0_43, %c0_44] : memref<25x128x128xf32, #tpu.memory_space<vmem>>, vector<1x128x128xf32>
    %73 = vector.shape_cast %72 : vector<1x128x128xf32> to vector<128x128xf32>
    %cst_45 = arith.constant dense<0.000000e+00> : vector<64x128xf32>
    %74 = tpu.matmul %71, %73, %cst_45 {dimension_numbers = #tpu.dot_dimension_numbers<[1], [0], [0], [1], [0, 0, 1, 1], [], []>} : vector<64x128xf32>, vector<128x128xf32>, vector<64x128xf32> -> vector<64x128xf32>
    %75 = arith.addf %69, %74 : vector<64x128xf32>
    %76 = vector.extract_strided_slice %25 {offsets = [0, 1, 0, 0], sizes = [1, 8, 8, 128], strides = [1, 1, 1, 1]} : vector<1x12x8x128xf32> to vector<1x8x8x128xf32>
    %77 = vector.shape_cast %76 : vector<1x8x8x128xf32> to vector<64x128xf32>
    %c8 = arith.constant 8 : index
    %c0_46 = arith.constant 0 : index
    %c0_47 = arith.constant 0 : index
    %78 = vector.load %arg4[%c8, %c0_46, %c0_47] : memref<25x128x128xf32, #tpu.memory_space<vmem>>, vector<1x128x128xf32>
    %79 = vector.shape_cast %78 : vector<1x128x128xf32> to vector<128x128xf32>
    %cst_48 = arith.constant dense<0.000000e+00> : vector<64x128xf32>
    %80 = tpu.matmul %77, %79, %cst_48 {dimension_numbers = #tpu.dot_dimension_numbers<[1], [0], [0], [1], [0, 0, 1, 1], [], []>} : vector<64x128xf32>, vector<128x128xf32>, vector<64x128xf32> -> vector<64x128xf32>
    %81 = arith.addf %75, %80 : vector<64x128xf32>
    %82 = vector.extract_strided_slice %26 {offsets = [0, 1, 0, 0], sizes = [1, 8, 8, 128], strides = [1, 1, 1, 1]} : vector<1x12x8x128xf32> to vector<1x8x8x128xf32>
    %83 = vector.shape_cast %82 : vector<1x8x8x128xf32> to vector<64x128xf32>
    %c9 = arith.constant 9 : index
    %c0_49 = arith.constant 0 : index
    %c0_50 = arith.constant 0 : index
    %84 = vector.load %arg4[%c9, %c0_49, %c0_50] : memref<25x128x128xf32, #tpu.memory_space<vmem>>, vector<1x128x128xf32>
    %85 = vector.shape_cast %84 : vector<1x128x128xf32> to vector<128x128xf32>
    %cst_51 = arith.constant dense<0.000000e+00> : vector<64x128xf32>
    %86 = tpu.matmul %83, %85, %cst_51 {dimension_numbers = #tpu.dot_dimension_numbers<[1], [0], [0], [1], [0, 0, 1, 1], [], []>} : vector<64x128xf32>, vector<128x128xf32>, vector<64x128xf32> -> vector<64x128xf32>
    %87 = arith.addf %81, %86 : vector<64x128xf32>
    %88 = vector.extract_strided_slice %22 {offsets = [0, 2, 0, 0], sizes = [1, 8, 8, 128], strides = [1, 1, 1, 1]} : vector<1x12x8x128xf32> to vector<1x8x8x128xf32>
    %89 = vector.shape_cast %88 : vector<1x8x8x128xf32> to vector<64x128xf32>
    %c10 = arith.constant 10 : index
    %c0_52 = arith.constant 0 : index
    %c0_53 = arith.constant 0 : index
    %90 = vector.load %arg4[%c10, %c0_52, %c0_53] : memref<25x128x128xf32, #tpu.memory_space<vmem>>, vector<1x128x128xf32>
    %91 = vector.shape_cast %90 : vector<1x128x128xf32> to vector<128x128xf32>
    %cst_54 = arith.constant dense<0.000000e+00> : vector<64x128xf32>
    %92 = tpu.matmul %89, %91, %cst_54 {dimension_numbers = #tpu.dot_dimension_numbers<[1], [0], [0], [1], [0, 0, 1, 1], [], []>} : vector<64x128xf32>, vector<128x128xf32>, vector<64x128xf32> -> vector<64x128xf32>
    %93 = arith.addf %87, %92 : vector<64x128xf32>
    %94 = vector.extract_strided_slice %23 {offsets = [0, 2, 0, 0], sizes = [1, 8, 8, 128], strides = [1, 1, 1, 1]} : vector<1x12x8x128xf32> to vector<1x8x8x128xf32>
    %95 = vector.shape_cast %94 : vector<1x8x8x128xf32> to vector<64x128xf32>
    %c11 = arith.constant 11 : index
    %c0_55 = arith.constant 0 : index
    %c0_56 = arith.constant 0 : index
    %96 = vector.load %arg4[%c11, %c0_55, %c0_56] : memref<25x128x128xf32, #tpu.memory_space<vmem>>, vector<1x128x128xf32>
    %97 = vector.shape_cast %96 : vector<1x128x128xf32> to vector<128x128xf32>
    %cst_57 = arith.constant dense<0.000000e+00> : vector<64x128xf32>
    %98 = tpu.matmul %95, %97, %cst_57 {dimension_numbers = #tpu.dot_dimension_numbers<[1], [0], [0], [1], [0, 0, 1, 1], [], []>} : vector<64x128xf32>, vector<128x128xf32>, vector<64x128xf32> -> vector<64x128xf32>
    %99 = arith.addf %93, %98 : vector<64x128xf32>
    %100 = vector.extract_strided_slice %24 {offsets = [0, 2, 0, 0], sizes = [1, 8, 8, 128], strides = [1, 1, 1, 1]} : vector<1x12x8x128xf32> to vector<1x8x8x128xf32>
    %101 = vector.shape_cast %100 : vector<1x8x8x128xf32> to vector<64x128xf32>
    %c12 = arith.constant 12 : index
    %c0_58 = arith.constant 0 : index
    %c0_59 = arith.constant 0 : index
    %102 = vector.load %arg4[%c12, %c0_58, %c0_59] : memref<25x128x128xf32, #tpu.memory_space<vmem>>, vector<1x128x128xf32>
    %103 = vector.shape_cast %102 : vector<1x128x128xf32> to vector<128x128xf32>
    %cst_60 = arith.constant dense<0.000000e+00> : vector<64x128xf32>
    %104 = tpu.matmul %101, %103, %cst_60 {dimension_numbers = #tpu.dot_dimension_numbers<[1], [0], [0], [1], [0, 0, 1, 1], [], []>} : vector<64x128xf32>, vector<128x128xf32>, vector<64x128xf32> -> vector<64x128xf32>
    %105 = arith.addf %99, %104 : vector<64x128xf32>
    %106 = vector.extract_strided_slice %25 {offsets = [0, 2, 0, 0], sizes = [1, 8, 8, 128], strides = [1, 1, 1, 1]} : vector<1x12x8x128xf32> to vector<1x8x8x128xf32>
    %107 = vector.shape_cast %106 : vector<1x8x8x128xf32> to vector<64x128xf32>
    %c13 = arith.constant 13 : index
    %c0_61 = arith.constant 0 : index
    %c0_62 = arith.constant 0 : index
    %108 = vector.load %arg4[%c13, %c0_61, %c0_62] : memref<25x128x128xf32, #tpu.memory_space<vmem>>, vector<1x128x128xf32>
    %109 = vector.shape_cast %108 : vector<1x128x128xf32> to vector<128x128xf32>
    %cst_63 = arith.constant dense<0.000000e+00> : vector<64x128xf32>
    %110 = tpu.matmul %107, %109, %cst_63 {dimension_numbers = #tpu.dot_dimension_numbers<[1], [0], [0], [1], [0, 0, 1, 1], [], []>} : vector<64x128xf32>, vector<128x128xf32>, vector<64x128xf32> -> vector<64x128xf32>
    %111 = arith.addf %105, %110 : vector<64x128xf32>
    %112 = vector.extract_strided_slice %26 {offsets = [0, 2, 0, 0], sizes = [1, 8, 8, 128], strides = [1, 1, 1, 1]} : vector<1x12x8x128xf32> to vector<1x8x8x128xf32>
    %113 = vector.shape_cast %112 : vector<1x8x8x128xf32> to vector<64x128xf32>
    %c14 = arith.constant 14 : index
    %c0_64 = arith.constant 0 : index
    %c0_65 = arith.constant 0 : index
    %114 = vector.load %arg4[%c14, %c0_64, %c0_65] : memref<25x128x128xf32, #tpu.memory_space<vmem>>, vector<1x128x128xf32>
    %115 = vector.shape_cast %114 : vector<1x128x128xf32> to vector<128x128xf32>
    %cst_66 = arith.constant dense<0.000000e+00> : vector<64x128xf32>
    %116 = tpu.matmul %113, %115, %cst_66 {dimension_numbers = #tpu.dot_dimension_numbers<[1], [0], [0], [1], [0, 0, 1, 1], [], []>} : vector<64x128xf32>, vector<128x128xf32>, vector<64x128xf32> -> vector<64x128xf32>
    %117 = arith.addf %111, %116 : vector<64x128xf32>
    %118 = vector.extract_strided_slice %22 {offsets = [0, 3, 0, 0], sizes = [1, 8, 8, 128], strides = [1, 1, 1, 1]} : vector<1x12x8x128xf32> to vector<1x8x8x128xf32>
    %119 = vector.shape_cast %118 : vector<1x8x8x128xf32> to vector<64x128xf32>
    %c15 = arith.constant 15 : index
    %c0_67 = arith.constant 0 : index
    %c0_68 = arith.constant 0 : index
    %120 = vector.load %arg4[%c15, %c0_67, %c0_68] : memref<25x128x128xf32, #tpu.memory_space<vmem>>, vector<1x128x128xf32>
    %121 = vector.shape_cast %120 : vector<1x128x128xf32> to vector<128x128xf32>
    %cst_69 = arith.constant dense<0.000000e+00> : vector<64x128xf32>
    %122 = tpu.matmul %119, %121, %cst_69 {dimension_numbers = #tpu.dot_dimension_numbers<[1], [0], [0], [1], [0, 0, 1, 1], [], []>} : vector<64x128xf32>, vector<128x128xf32>, vector<64x128xf32> -> vector<64x128xf32>
    %123 = arith.addf %117, %122 : vector<64x128xf32>
    %124 = vector.extract_strided_slice %23 {offsets = [0, 3, 0, 0], sizes = [1, 8, 8, 128], strides = [1, 1, 1, 1]} : vector<1x12x8x128xf32> to vector<1x8x8x128xf32>
    %125 = vector.shape_cast %124 : vector<1x8x8x128xf32> to vector<64x128xf32>
    %c16 = arith.constant 16 : index
    %c0_70 = arith.constant 0 : index
    %c0_71 = arith.constant 0 : index
    %126 = vector.load %arg4[%c16, %c0_70, %c0_71] : memref<25x128x128xf32, #tpu.memory_space<vmem>>, vector<1x128x128xf32>
    %127 = vector.shape_cast %126 : vector<1x128x128xf32> to vector<128x128xf32>
    %cst_72 = arith.constant dense<0.000000e+00> : vector<64x128xf32>
    %128 = tpu.matmul %125, %127, %cst_72 {dimension_numbers = #tpu.dot_dimension_numbers<[1], [0], [0], [1], [0, 0, 1, 1], [], []>} : vector<64x128xf32>, vector<128x128xf32>, vector<64x128xf32> -> vector<64x128xf32>
    %129 = arith.addf %123, %128 : vector<64x128xf32>
    %130 = vector.extract_strided_slice %24 {offsets = [0, 3, 0, 0], sizes = [1, 8, 8, 128], strides = [1, 1, 1, 1]} : vector<1x12x8x128xf32> to vector<1x8x8x128xf32>
    %131 = vector.shape_cast %130 : vector<1x8x8x128xf32> to vector<64x128xf32>
    %c17 = arith.constant 17 : index
    %c0_73 = arith.constant 0 : index
    %c0_74 = arith.constant 0 : index
    %132 = vector.load %arg4[%c17, %c0_73, %c0_74] : memref<25x128x128xf32, #tpu.memory_space<vmem>>, vector<1x128x128xf32>
    %133 = vector.shape_cast %132 : vector<1x128x128xf32> to vector<128x128xf32>
    %cst_75 = arith.constant dense<0.000000e+00> : vector<64x128xf32>
    %134 = tpu.matmul %131, %133, %cst_75 {dimension_numbers = #tpu.dot_dimension_numbers<[1], [0], [0], [1], [0, 0, 1, 1], [], []>} : vector<64x128xf32>, vector<128x128xf32>, vector<64x128xf32> -> vector<64x128xf32>
    %135 = arith.addf %129, %134 : vector<64x128xf32>
    %136 = vector.extract_strided_slice %25 {offsets = [0, 3, 0, 0], sizes = [1, 8, 8, 128], strides = [1, 1, 1, 1]} : vector<1x12x8x128xf32> to vector<1x8x8x128xf32>
    %137 = vector.shape_cast %136 : vector<1x8x8x128xf32> to vector<64x128xf32>
    %c18 = arith.constant 18 : index
    %c0_76 = arith.constant 0 : index
    %c0_77 = arith.constant 0 : index
    %138 = vector.load %arg4[%c18, %c0_76, %c0_77] : memref<25x128x128xf32, #tpu.memory_space<vmem>>, vector<1x128x128xf32>
    %139 = vector.shape_cast %138 : vector<1x128x128xf32> to vector<128x128xf32>
    %cst_78 = arith.constant dense<0.000000e+00> : vector<64x128xf32>
    %140 = tpu.matmul %137, %139, %cst_78 {dimension_numbers = #tpu.dot_dimension_numbers<[1], [0], [0], [1], [0, 0, 1, 1], [], []>} : vector<64x128xf32>, vector<128x128xf32>, vector<64x128xf32> -> vector<64x128xf32>
    %141 = arith.addf %135, %140 : vector<64x128xf32>
    %142 = vector.extract_strided_slice %26 {offsets = [0, 3, 0, 0], sizes = [1, 8, 8, 128], strides = [1, 1, 1, 1]} : vector<1x12x8x128xf32> to vector<1x8x8x128xf32>
    %143 = vector.shape_cast %142 : vector<1x8x8x128xf32> to vector<64x128xf32>
    %c19 = arith.constant 19 : index
    %c0_79 = arith.constant 0 : index
    %c0_80 = arith.constant 0 : index
    %144 = vector.load %arg4[%c19, %c0_79, %c0_80] : memref<25x128x128xf32, #tpu.memory_space<vmem>>, vector<1x128x128xf32>
    %145 = vector.shape_cast %144 : vector<1x128x128xf32> to vector<128x128xf32>
    %cst_81 = arith.constant dense<0.000000e+00> : vector<64x128xf32>
    %146 = tpu.matmul %143, %145, %cst_81 {dimension_numbers = #tpu.dot_dimension_numbers<[1], [0], [0], [1], [0, 0, 1, 1], [], []>} : vector<64x128xf32>, vector<128x128xf32>, vector<64x128xf32> -> vector<64x128xf32>
    %147 = arith.addf %141, %146 : vector<64x128xf32>
    %148 = vector.extract_strided_slice %22 {offsets = [0, 4, 0, 0], sizes = [1, 8, 8, 128], strides = [1, 1, 1, 1]} : vector<1x12x8x128xf32> to vector<1x8x8x128xf32>
    %149 = vector.shape_cast %148 : vector<1x8x8x128xf32> to vector<64x128xf32>
    %c20 = arith.constant 20 : index
    %c0_82 = arith.constant 0 : index
    %c0_83 = arith.constant 0 : index
    %150 = vector.load %arg4[%c20, %c0_82, %c0_83] : memref<25x128x128xf32, #tpu.memory_space<vmem>>, vector<1x128x128xf32>
    %151 = vector.shape_cast %150 : vector<1x128x128xf32> to vector<128x128xf32>
    %cst_84 = arith.constant dense<0.000000e+00> : vector<64x128xf32>
    %152 = tpu.matmul %149, %151, %cst_84 {dimension_numbers = #tpu.dot_dimension_numbers<[1], [0], [0], [1], [0, 0, 1, 1], [], []>} : vector<64x128xf32>, vector<128x128xf32>, vector<64x128xf32> -> vector<64x128xf32>
    %153 = arith.addf %147, %152 : vector<64x128xf32>
    %154 = vector.extract_strided_slice %23 {offsets = [0, 4, 0, 0], sizes = [1, 8, 8, 128], strides = [1, 1, 1, 1]} : vector<1x12x8x128xf32> to vector<1x8x8x128xf32>
    %155 = vector.shape_cast %154 : vector<1x8x8x128xf32> to vector<64x128xf32>
    %c21 = arith.constant 21 : index
    %c0_85 = arith.constant 0 : index
    %c0_86 = arith.constant 0 : index
    %156 = vector.load %arg4[%c21, %c0_85, %c0_86] : memref<25x128x128xf32, #tpu.memory_space<vmem>>, vector<1x128x128xf32>
    %157 = vector.shape_cast %156 : vector<1x128x128xf32> to vector<128x128xf32>
    %cst_87 = arith.constant dense<0.000000e+00> : vector<64x128xf32>
    %158 = tpu.matmul %155, %157, %cst_87 {dimension_numbers = #tpu.dot_dimension_numbers<[1], [0], [0], [1], [0, 0, 1, 1], [], []>} : vector<64x128xf32>, vector<128x128xf32>, vector<64x128xf32> -> vector<64x128xf32>
    %159 = arith.addf %153, %158 : vector<64x128xf32>
    %160 = vector.extract_strided_slice %24 {offsets = [0, 4, 0, 0], sizes = [1, 8, 8, 128], strides = [1, 1, 1, 1]} : vector<1x12x8x128xf32> to vector<1x8x8x128xf32>
    %161 = vector.shape_cast %160 : vector<1x8x8x128xf32> to vector<64x128xf32>
    %c22 = arith.constant 22 : index
    %c0_88 = arith.constant 0 : index
    %c0_89 = arith.constant 0 : index
    %162 = vector.load %arg4[%c22, %c0_88, %c0_89] : memref<25x128x128xf32, #tpu.memory_space<vmem>>, vector<1x128x128xf32>
    %163 = vector.shape_cast %162 : vector<1x128x128xf32> to vector<128x128xf32>
    %cst_90 = arith.constant dense<0.000000e+00> : vector<64x128xf32>
    %164 = tpu.matmul %161, %163, %cst_90 {dimension_numbers = #tpu.dot_dimension_numbers<[1], [0], [0], [1], [0, 0, 1, 1], [], []>} : vector<64x128xf32>, vector<128x128xf32>, vector<64x128xf32> -> vector<64x128xf32>
    %165 = arith.addf %159, %164 : vector<64x128xf32>
    %166 = vector.extract_strided_slice %25 {offsets = [0, 4, 0, 0], sizes = [1, 8, 8, 128], strides = [1, 1, 1, 1]} : vector<1x12x8x128xf32> to vector<1x8x8x128xf32>
    %167 = vector.shape_cast %166 : vector<1x8x8x128xf32> to vector<64x128xf32>
    %c23 = arith.constant 23 : index
    %c0_91 = arith.constant 0 : index
    %c0_92 = arith.constant 0 : index
    %168 = vector.load %arg4[%c23, %c0_91, %c0_92] : memref<25x128x128xf32, #tpu.memory_space<vmem>>, vector<1x128x128xf32>
    %169 = vector.shape_cast %168 : vector<1x128x128xf32> to vector<128x128xf32>
    %cst_93 = arith.constant dense<0.000000e+00> : vector<64x128xf32>
    %170 = tpu.matmul %167, %169, %cst_93 {dimension_numbers = #tpu.dot_dimension_numbers<[1], [0], [0], [1], [0, 0, 1, 1], [], []>} : vector<64x128xf32>, vector<128x128xf32>, vector<64x128xf32> -> vector<64x128xf32>
    %171 = arith.addf %165, %170 : vector<64x128xf32>
    %172 = vector.extract_strided_slice %26 {offsets = [0, 4, 0, 0], sizes = [1, 8, 8, 128], strides = [1, 1, 1, 1]} : vector<1x12x8x128xf32> to vector<1x8x8x128xf32>
    %173 = vector.shape_cast %172 : vector<1x8x8x128xf32> to vector<64x128xf32>
    %c24 = arith.constant 24 : index
    %c0_94 = arith.constant 0 : index
    %c0_95 = arith.constant 0 : index
    %174 = vector.load %arg4[%c24, %c0_94, %c0_95] : memref<25x128x128xf32, #tpu.memory_space<vmem>>, vector<1x128x128xf32>
    %175 = vector.shape_cast %174 : vector<1x128x128xf32> to vector<128x128xf32>
    %cst_96 = arith.constant dense<0.000000e+00> : vector<64x128xf32>
    %176 = tpu.matmul %173, %175, %cst_96 {dimension_numbers = #tpu.dot_dimension_numbers<[1], [0], [0], [1], [0, 0, 1, 1], [], []>} : vector<64x128xf32>, vector<128x128xf32>, vector<64x128xf32> -> vector<64x128xf32>
    %177 = arith.addf %171, %176 : vector<64x128xf32>
    %178 = vector.shape_cast %177 : vector<64x128xf32> to vector<1x8x8x128xf32>
    %c0_97 = arith.constant 0 : index
    %c0_98 = arith.constant 0 : index
    %179 = vector.load %arg5[%c0_97, %c0_98] : memref<1x128xf32, #tpu.memory_space<vmem>>, vector<1x128xf32>
    %180 = vector.extract_strided_slice %178 {offsets = [0, 0, 0, 0], sizes = [1, 1, 1, 128], strides = [1, 1, 1, 1]} : vector<1x8x8x128xf32> to vector<1x1x1x128xf32>
    %181 = vector.shape_cast %180 : vector<1x1x1x128xf32> to vector<1x128xf32>
    %182 = vector.extract_strided_slice %178 {offsets = [0, 0, 1, 0], sizes = [1, 1, 1, 128], strides = [1, 1, 1, 1]} : vector<1x8x8x128xf32> to vector<1x1x1x128xf32>
    %183 = vector.shape_cast %182 : vector<1x1x1x128xf32> to vector<1x128xf32>
    %184 = arith.maximumf %181, %183 : vector<1x128xf32>
    %185 = vector.extract_strided_slice %178 {offsets = [0, 1, 0, 0], sizes = [1, 1, 1, 128], strides = [1, 1, 1, 1]} : vector<1x8x8x128xf32> to vector<1x1x1x128xf32>
    %186 = vector.shape_cast %185 : vector<1x1x1x128xf32> to vector<1x128xf32>
    %187 = vector.extract_strided_slice %178 {offsets = [0, 1, 1, 0], sizes = [1, 1, 1, 128], strides = [1, 1, 1, 1]} : vector<1x8x8x128xf32> to vector<1x1x1x128xf32>
    %188 = vector.shape_cast %187 : vector<1x1x1x128xf32> to vector<1x128xf32>
    %189 = arith.maximumf %186, %188 : vector<1x128xf32>
    %190 = arith.maximumf %184, %189 : vector<1x128xf32>
    %191 = arith.addf %190, %179 : vector<1x128xf32>
    %cst_99 = arith.constant 0.000000e+00 : f32
    %192 = vector.broadcast %cst_99 : f32 to vector<1x128xf32>
    %193 = arith.maximumf %191, %192 : vector<1x128xf32>
    %194 = vector.extract_strided_slice %178 {offsets = [0, 0, 2, 0], sizes = [1, 1, 1, 128], strides = [1, 1, 1, 1]} : vector<1x8x8x128xf32> to vector<1x1x1x128xf32>
    %195 = vector.shape_cast %194 : vector<1x1x1x128xf32> to vector<1x128xf32>
    %196 = vector.extract_strided_slice %178 {offsets = [0, 0, 3, 0], sizes = [1, 1, 1, 128], strides = [1, 1, 1, 1]} : vector<1x8x8x128xf32> to vector<1x1x1x128xf32>
    %197 = vector.shape_cast %196 : vector<1x1x1x128xf32> to vector<1x128xf32>
    %198 = arith.maximumf %195, %197 : vector<1x128xf32>
    %199 = vector.extract_strided_slice %178 {offsets = [0, 1, 2, 0], sizes = [1, 1, 1, 128], strides = [1, 1, 1, 1]} : vector<1x8x8x128xf32> to vector<1x1x1x128xf32>
    %200 = vector.shape_cast %199 : vector<1x1x1x128xf32> to vector<1x128xf32>
    %201 = vector.extract_strided_slice %178 {offsets = [0, 1, 3, 0], sizes = [1, 1, 1, 128], strides = [1, 1, 1, 1]} : vector<1x8x8x128xf32> to vector<1x1x1x128xf32>
    %202 = vector.shape_cast %201 : vector<1x1x1x128xf32> to vector<1x128xf32>
    %203 = arith.maximumf %200, %202 : vector<1x128xf32>
    %204 = arith.maximumf %198, %203 : vector<1x128xf32>
    %205 = arith.addf %204, %179 : vector<1x128xf32>
    %cst_100 = arith.constant 0.000000e+00 : f32
    %206 = vector.broadcast %cst_100 : f32 to vector<1x128xf32>
    %207 = arith.maximumf %205, %206 : vector<1x128xf32>
    %208 = vector.extract_strided_slice %178 {offsets = [0, 0, 4, 0], sizes = [1, 1, 1, 128], strides = [1, 1, 1, 1]} : vector<1x8x8x128xf32> to vector<1x1x1x128xf32>
    %209 = vector.shape_cast %208 : vector<1x1x1x128xf32> to vector<1x128xf32>
    %210 = vector.extract_strided_slice %178 {offsets = [0, 0, 5, 0], sizes = [1, 1, 1, 128], strides = [1, 1, 1, 1]} : vector<1x8x8x128xf32> to vector<1x1x1x128xf32>
    %211 = vector.shape_cast %210 : vector<1x1x1x128xf32> to vector<1x128xf32>
    %212 = arith.maximumf %209, %211 : vector<1x128xf32>
    %213 = vector.extract_strided_slice %178 {offsets = [0, 1, 4, 0], sizes = [1, 1, 1, 128], strides = [1, 1, 1, 1]} : vector<1x8x8x128xf32> to vector<1x1x1x128xf32>
    %214 = vector.shape_cast %213 : vector<1x1x1x128xf32> to vector<1x128xf32>
    %215 = vector.extract_strided_slice %178 {offsets = [0, 1, 5, 0], sizes = [1, 1, 1, 128], strides = [1, 1, 1, 1]} : vector<1x8x8x128xf32> to vector<1x1x1x128xf32>
    %216 = vector.shape_cast %215 : vector<1x1x1x128xf32> to vector<1x128xf32>
    %217 = arith.maximumf %214, %216 : vector<1x128xf32>
    %218 = arith.maximumf %212, %217 : vector<1x128xf32>
    %219 = arith.addf %218, %179 : vector<1x128xf32>
    %cst_101 = arith.constant 0.000000e+00 : f32
    %220 = vector.broadcast %cst_101 : f32 to vector<1x128xf32>
    %221 = arith.maximumf %219, %220 : vector<1x128xf32>
    %222 = vector.extract_strided_slice %178 {offsets = [0, 0, 6, 0], sizes = [1, 1, 1, 128], strides = [1, 1, 1, 1]} : vector<1x8x8x128xf32> to vector<1x1x1x128xf32>
    %223 = vector.shape_cast %222 : vector<1x1x1x128xf32> to vector<1x128xf32>
    %224 = vector.extract_strided_slice %178 {offsets = [0, 0, 7, 0], sizes = [1, 1, 1, 128], strides = [1, 1, 1, 1]} : vector<1x8x8x128xf32> to vector<1x1x1x128xf32>
    %225 = vector.shape_cast %224 : vector<1x1x1x128xf32> to vector<1x128xf32>
    %226 = arith.maximumf %223, %225 : vector<1x128xf32>
    %227 = vector.extract_strided_slice %178 {offsets = [0, 1, 6, 0], sizes = [1, 1, 1, 128], strides = [1, 1, 1, 1]} : vector<1x8x8x128xf32> to vector<1x1x1x128xf32>
    %228 = vector.shape_cast %227 : vector<1x1x1x128xf32> to vector<1x128xf32>
    %229 = vector.extract_strided_slice %178 {offsets = [0, 1, 7, 0], sizes = [1, 1, 1, 128], strides = [1, 1, 1, 1]} : vector<1x8x8x128xf32> to vector<1x1x1x128xf32>
    %230 = vector.shape_cast %229 : vector<1x1x1x128xf32> to vector<1x128xf32>
    %231 = arith.maximumf %228, %230 : vector<1x128xf32>
    %232 = arith.maximumf %226, %231 : vector<1x128xf32>
    %233 = arith.addf %232, %179 : vector<1x128xf32>
    %cst_102 = arith.constant 0.000000e+00 : f32
    %234 = vector.broadcast %cst_102 : f32 to vector<1x128xf32>
    %235 = arith.maximumf %233, %234 : vector<1x128xf32>
    %236 = vector.extract_strided_slice %178 {offsets = [0, 2, 0, 0], sizes = [1, 1, 1, 128], strides = [1, 1, 1, 1]} : vector<1x8x8x128xf32> to vector<1x1x1x128xf32>
    %237 = vector.shape_cast %236 : vector<1x1x1x128xf32> to vector<1x128xf32>
    %238 = vector.extract_strided_slice %178 {offsets = [0, 2, 1, 0], sizes = [1, 1, 1, 128], strides = [1, 1, 1, 1]} : vector<1x8x8x128xf32> to vector<1x1x1x128xf32>
    %239 = vector.shape_cast %238 : vector<1x1x1x128xf32> to vector<1x128xf32>
    %240 = arith.maximumf %237, %239 : vector<1x128xf32>
    %241 = vector.extract_strided_slice %178 {offsets = [0, 3, 0, 0], sizes = [1, 1, 1, 128], strides = [1, 1, 1, 1]} : vector<1x8x8x128xf32> to vector<1x1x1x128xf32>
    %242 = vector.shape_cast %241 : vector<1x1x1x128xf32> to vector<1x128xf32>
    %243 = vector.extract_strided_slice %178 {offsets = [0, 3, 1, 0], sizes = [1, 1, 1, 128], strides = [1, 1, 1, 1]} : vector<1x8x8x128xf32> to vector<1x1x1x128xf32>
    %244 = vector.shape_cast %243 : vector<1x1x1x128xf32> to vector<1x128xf32>
    %245 = arith.maximumf %242, %244 : vector<1x128xf32>
    %246 = arith.maximumf %240, %245 : vector<1x128xf32>
    %247 = arith.addf %246, %179 : vector<1x128xf32>
    %cst_103 = arith.constant 0.000000e+00 : f32
    %248 = vector.broadcast %cst_103 : f32 to vector<1x128xf32>
    %249 = arith.maximumf %247, %248 : vector<1x128xf32>
    %250 = vector.extract_strided_slice %178 {offsets = [0, 2, 2, 0], sizes = [1, 1, 1, 128], strides = [1, 1, 1, 1]} : vector<1x8x8x128xf32> to vector<1x1x1x128xf32>
    %251 = vector.shape_cast %250 : vector<1x1x1x128xf32> to vector<1x128xf32>
    %252 = vector.extract_strided_slice %178 {offsets = [0, 2, 3, 0], sizes = [1, 1, 1, 128], strides = [1, 1, 1, 1]} : vector<1x8x8x128xf32> to vector<1x1x1x128xf32>
    %253 = vector.shape_cast %252 : vector<1x1x1x128xf32> to vector<1x128xf32>
    %254 = arith.maximumf %251, %253 : vector<1x128xf32>
    %255 = vector.extract_strided_slice %178 {offsets = [0, 3, 2, 0], sizes = [1, 1, 1, 128], strides = [1, 1, 1, 1]} : vector<1x8x8x128xf32> to vector<1x1x1x128xf32>
    %256 = vector.shape_cast %255 : vector<1x1x1x128xf32> to vector<1x128xf32>
    %257 = vector.extract_strided_slice %178 {offsets = [0, 3, 3, 0], sizes = [1, 1, 1, 128], strides = [1, 1, 1, 1]} : vector<1x8x8x128xf32> to vector<1x1x1x128xf32>
    %258 = vector.shape_cast %257 : vector<1x1x1x128xf32> to vector<1x128xf32>
    %259 = arith.maximumf %256, %258 : vector<1x128xf32>
    %260 = arith.maximumf %254, %259 : vector<1x128xf32>
    %261 = arith.addf %260, %179 : vector<1x128xf32>
    %cst_104 = arith.constant 0.000000e+00 : f32
    %262 = vector.broadcast %cst_104 : f32 to vector<1x128xf32>
    %263 = arith.maximumf %261, %262 : vector<1x128xf32>
    %264 = vector.extract_strided_slice %178 {offsets = [0, 2, 4, 0], sizes = [1, 1, 1, 128], strides = [1, 1, 1, 1]} : vector<1x8x8x128xf32> to vector<1x1x1x128xf32>
    %265 = vector.shape_cast %264 : vector<1x1x1x128xf32> to vector<1x128xf32>
    %266 = vector.extract_strided_slice %178 {offsets = [0, 2, 5, 0], sizes = [1, 1, 1, 128], strides = [1, 1, 1, 1]} : vector<1x8x8x128xf32> to vector<1x1x1x128xf32>
    %267 = vector.shape_cast %266 : vector<1x1x1x128xf32> to vector<1x128xf32>
    %268 = arith.maximumf %265, %267 : vector<1x128xf32>
    %269 = vector.extract_strided_slice %178 {offsets = [0, 3, 4, 0], sizes = [1, 1, 1, 128], strides = [1, 1, 1, 1]} : vector<1x8x8x128xf32> to vector<1x1x1x128xf32>
    %270 = vector.shape_cast %269 : vector<1x1x1x128xf32> to vector<1x128xf32>
    %271 = vector.extract_strided_slice %178 {offsets = [0, 3, 5, 0], sizes = [1, 1, 1, 128], strides = [1, 1, 1, 1]} : vector<1x8x8x128xf32> to vector<1x1x1x128xf32>
    %272 = vector.shape_cast %271 : vector<1x1x1x128xf32> to vector<1x128xf32>
    %273 = arith.maximumf %270, %272 : vector<1x128xf32>
    %274 = arith.maximumf %268, %273 : vector<1x128xf32>
    %275 = arith.addf %274, %179 : vector<1x128xf32>
    %cst_105 = arith.constant 0.000000e+00 : f32
    %276 = vector.broadcast %cst_105 : f32 to vector<1x128xf32>
    %277 = arith.maximumf %275, %276 : vector<1x128xf32>
    %278 = vector.extract_strided_slice %178 {offsets = [0, 2, 6, 0], sizes = [1, 1, 1, 128], strides = [1, 1, 1, 1]} : vector<1x8x8x128xf32> to vector<1x1x1x128xf32>
    %279 = vector.shape_cast %278 : vector<1x1x1x128xf32> to vector<1x128xf32>
    %280 = vector.extract_strided_slice %178 {offsets = [0, 2, 7, 0], sizes = [1, 1, 1, 128], strides = [1, 1, 1, 1]} : vector<1x8x8x128xf32> to vector<1x1x1x128xf32>
    %281 = vector.shape_cast %280 : vector<1x1x1x128xf32> to vector<1x128xf32>
    %282 = arith.maximumf %279, %281 : vector<1x128xf32>
    %283 = vector.extract_strided_slice %178 {offsets = [0, 3, 6, 0], sizes = [1, 1, 1, 128], strides = [1, 1, 1, 1]} : vector<1x8x8x128xf32> to vector<1x1x1x128xf32>
    %284 = vector.shape_cast %283 : vector<1x1x1x128xf32> to vector<1x128xf32>
    %285 = vector.extract_strided_slice %178 {offsets = [0, 3, 7, 0], sizes = [1, 1, 1, 128], strides = [1, 1, 1, 1]} : vector<1x8x8x128xf32> to vector<1x1x1x128xf32>
    %286 = vector.shape_cast %285 : vector<1x1x1x128xf32> to vector<1x128xf32>
    %287 = arith.maximumf %284, %286 : vector<1x128xf32>
    %288 = arith.maximumf %282, %287 : vector<1x128xf32>
    %289 = arith.addf %288, %179 : vector<1x128xf32>
    %cst_106 = arith.constant 0.000000e+00 : f32
    %290 = vector.broadcast %cst_106 : f32 to vector<1x128xf32>
    %291 = arith.maximumf %289, %290 : vector<1x128xf32>
    %292 = vector.extract_strided_slice %178 {offsets = [0, 4, 0, 0], sizes = [1, 1, 1, 128], strides = [1, 1, 1, 1]} : vector<1x8x8x128xf32> to vector<1x1x1x128xf32>
    %293 = vector.shape_cast %292 : vector<1x1x1x128xf32> to vector<1x128xf32>
    %294 = vector.extract_strided_slice %178 {offsets = [0, 4, 1, 0], sizes = [1, 1, 1, 128], strides = [1, 1, 1, 1]} : vector<1x8x8x128xf32> to vector<1x1x1x128xf32>
    %295 = vector.shape_cast %294 : vector<1x1x1x128xf32> to vector<1x128xf32>
    %296 = arith.maximumf %293, %295 : vector<1x128xf32>
    %297 = vector.extract_strided_slice %178 {offsets = [0, 5, 0, 0], sizes = [1, 1, 1, 128], strides = [1, 1, 1, 1]} : vector<1x8x8x128xf32> to vector<1x1x1x128xf32>
    %298 = vector.shape_cast %297 : vector<1x1x1x128xf32> to vector<1x128xf32>
    %299 = vector.extract_strided_slice %178 {offsets = [0, 5, 1, 0], sizes = [1, 1, 1, 128], strides = [1, 1, 1, 1]} : vector<1x8x8x128xf32> to vector<1x1x1x128xf32>
    %300 = vector.shape_cast %299 : vector<1x1x1x128xf32> to vector<1x128xf32>
    %301 = arith.maximumf %298, %300 : vector<1x128xf32>
    %302 = arith.maximumf %296, %301 : vector<1x128xf32>
    %303 = arith.addf %302, %179 : vector<1x128xf32>
    %cst_107 = arith.constant 0.000000e+00 : f32
    %304 = vector.broadcast %cst_107 : f32 to vector<1x128xf32>
    %305 = arith.maximumf %303, %304 : vector<1x128xf32>
    %306 = vector.extract_strided_slice %178 {offsets = [0, 4, 2, 0], sizes = [1, 1, 1, 128], strides = [1, 1, 1, 1]} : vector<1x8x8x128xf32> to vector<1x1x1x128xf32>
    %307 = vector.shape_cast %306 : vector<1x1x1x128xf32> to vector<1x128xf32>
    %308 = vector.extract_strided_slice %178 {offsets = [0, 4, 3, 0], sizes = [1, 1, 1, 128], strides = [1, 1, 1, 1]} : vector<1x8x8x128xf32> to vector<1x1x1x128xf32>
    %309 = vector.shape_cast %308 : vector<1x1x1x128xf32> to vector<1x128xf32>
    %310 = arith.maximumf %307, %309 : vector<1x128xf32>
    %311 = vector.extract_strided_slice %178 {offsets = [0, 5, 2, 0], sizes = [1, 1, 1, 128], strides = [1, 1, 1, 1]} : vector<1x8x8x128xf32> to vector<1x1x1x128xf32>
    %312 = vector.shape_cast %311 : vector<1x1x1x128xf32> to vector<1x128xf32>
    %313 = vector.extract_strided_slice %178 {offsets = [0, 5, 3, 0], sizes = [1, 1, 1, 128], strides = [1, 1, 1, 1]} : vector<1x8x8x128xf32> to vector<1x1x1x128xf32>
    %314 = vector.shape_cast %313 : vector<1x1x1x128xf32> to vector<1x128xf32>
    %315 = arith.maximumf %312, %314 : vector<1x128xf32>
    %316 = arith.maximumf %310, %315 : vector<1x128xf32>
    %317 = arith.addf %316, %179 : vector<1x128xf32>
    %cst_108 = arith.constant 0.000000e+00 : f32
    %318 = vector.broadcast %cst_108 : f32 to vector<1x128xf32>
    %319 = arith.maximumf %317, %318 : vector<1x128xf32>
    %320 = vector.extract_strided_slice %178 {offsets = [0, 4, 4, 0], sizes = [1, 1, 1, 128], strides = [1, 1, 1, 1]} : vector<1x8x8x128xf32> to vector<1x1x1x128xf32>
    %321 = vector.shape_cast %320 : vector<1x1x1x128xf32> to vector<1x128xf32>
    %322 = vector.extract_strided_slice %178 {offsets = [0, 4, 5, 0], sizes = [1, 1, 1, 128], strides = [1, 1, 1, 1]} : vector<1x8x8x128xf32> to vector<1x1x1x128xf32>
    %323 = vector.shape_cast %322 : vector<1x1x1x128xf32> to vector<1x128xf32>
    %324 = arith.maximumf %321, %323 : vector<1x128xf32>
    %325 = vector.extract_strided_slice %178 {offsets = [0, 5, 4, 0], sizes = [1, 1, 1, 128], strides = [1, 1, 1, 1]} : vector<1x8x8x128xf32> to vector<1x1x1x128xf32>
    %326 = vector.shape_cast %325 : vector<1x1x1x128xf32> to vector<1x128xf32>
    %327 = vector.extract_strided_slice %178 {offsets = [0, 5, 5, 0], sizes = [1, 1, 1, 128], strides = [1, 1, 1, 1]} : vector<1x8x8x128xf32> to vector<1x1x1x128xf32>
    %328 = vector.shape_cast %327 : vector<1x1x1x128xf32> to vector<1x128xf32>
    %329 = arith.maximumf %326, %328 : vector<1x128xf32>
    %330 = arith.maximumf %324, %329 : vector<1x128xf32>
    %331 = arith.addf %330, %179 : vector<1x128xf32>
    %cst_109 = arith.constant 0.000000e+00 : f32
    %332 = vector.broadcast %cst_109 : f32 to vector<1x128xf32>
    %333 = arith.maximumf %331, %332 : vector<1x128xf32>
    %334 = vector.extract_strided_slice %178 {offsets = [0, 4, 6, 0], sizes = [1, 1, 1, 128], strides = [1, 1, 1, 1]} : vector<1x8x8x128xf32> to vector<1x1x1x128xf32>
    %335 = vector.shape_cast %334 : vector<1x1x1x128xf32> to vector<1x128xf32>
    %336 = vector.extract_strided_slice %178 {offsets = [0, 4, 7, 0], sizes = [1, 1, 1, 128], strides = [1, 1, 1, 1]} : vector<1x8x8x128xf32> to vector<1x1x1x128xf32>
    %337 = vector.shape_cast %336 : vector<1x1x1x128xf32> to vector<1x128xf32>
    %338 = arith.maximumf %335, %337 : vector<1x128xf32>
    %339 = vector.extract_strided_slice %178 {offsets = [0, 5, 6, 0], sizes = [1, 1, 1, 128], strides = [1, 1, 1, 1]} : vector<1x8x8x128xf32> to vector<1x1x1x128xf32>
    %340 = vector.shape_cast %339 : vector<1x1x1x128xf32> to vector<1x128xf32>
    %341 = vector.extract_strided_slice %178 {offsets = [0, 5, 7, 0], sizes = [1, 1, 1, 128], strides = [1, 1, 1, 1]} : vector<1x8x8x128xf32> to vector<1x1x1x128xf32>
    %342 = vector.shape_cast %341 : vector<1x1x1x128xf32> to vector<1x128xf32>
    %343 = arith.maximumf %340, %342 : vector<1x128xf32>
    %344 = arith.maximumf %338, %343 : vector<1x128xf32>
    %345 = arith.addf %344, %179 : vector<1x128xf32>
    %cst_110 = arith.constant 0.000000e+00 : f32
    %346 = vector.broadcast %cst_110 : f32 to vector<1x128xf32>
    %347 = arith.maximumf %345, %346 : vector<1x128xf32>
    %348 = vector.extract_strided_slice %178 {offsets = [0, 6, 0, 0], sizes = [1, 1, 1, 128], strides = [1, 1, 1, 1]} : vector<1x8x8x128xf32> to vector<1x1x1x128xf32>
    %349 = vector.shape_cast %348 : vector<1x1x1x128xf32> to vector<1x128xf32>
    %350 = vector.extract_strided_slice %178 {offsets = [0, 6, 1, 0], sizes = [1, 1, 1, 128], strides = [1, 1, 1, 1]} : vector<1x8x8x128xf32> to vector<1x1x1x128xf32>
    %351 = vector.shape_cast %350 : vector<1x1x1x128xf32> to vector<1x128xf32>
    %352 = arith.maximumf %349, %351 : vector<1x128xf32>
    %353 = vector.extract_strided_slice %178 {offsets = [0, 7, 0, 0], sizes = [1, 1, 1, 128], strides = [1, 1, 1, 1]} : vector<1x8x8x128xf32> to vector<1x1x1x128xf32>
    %354 = vector.shape_cast %353 : vector<1x1x1x128xf32> to vector<1x128xf32>
    %355 = vector.extract_strided_slice %178 {offsets = [0, 7, 1, 0], sizes = [1, 1, 1, 128], strides = [1, 1, 1, 1]} : vector<1x8x8x128xf32> to vector<1x1x1x128xf32>
    %356 = vector.shape_cast %355 : vector<1x1x1x128xf32> to vector<1x128xf32>
    %357 = arith.maximumf %354, %356 : vector<1x128xf32>
    %358 = arith.maximumf %352, %357 : vector<1x128xf32>
    %359 = arith.addf %358, %179 : vector<1x128xf32>
    %cst_111 = arith.constant 0.000000e+00 : f32
    %360 = vector.broadcast %cst_111 : f32 to vector<1x128xf32>
    %361 = arith.maximumf %359, %360 : vector<1x128xf32>
    %362 = vector.extract_strided_slice %178 {offsets = [0, 6, 2, 0], sizes = [1, 1, 1, 128], strides = [1, 1, 1, 1]} : vector<1x8x8x128xf32> to vector<1x1x1x128xf32>
    %363 = vector.shape_cast %362 : vector<1x1x1x128xf32> to vector<1x128xf32>
    %364 = vector.extract_strided_slice %178 {offsets = [0, 6, 3, 0], sizes = [1, 1, 1, 128], strides = [1, 1, 1, 1]} : vector<1x8x8x128xf32> to vector<1x1x1x128xf32>
    %365 = vector.shape_cast %364 : vector<1x1x1x128xf32> to vector<1x128xf32>
    %366 = arith.maximumf %363, %365 : vector<1x128xf32>
    %367 = vector.extract_strided_slice %178 {offsets = [0, 7, 2, 0], sizes = [1, 1, 1, 128], strides = [1, 1, 1, 1]} : vector<1x8x8x128xf32> to vector<1x1x1x128xf32>
    %368 = vector.shape_cast %367 : vector<1x1x1x128xf32> to vector<1x128xf32>
    %369 = vector.extract_strided_slice %178 {offsets = [0, 7, 3, 0], sizes = [1, 1, 1, 128], strides = [1, 1, 1, 1]} : vector<1x8x8x128xf32> to vector<1x1x1x128xf32>
    %370 = vector.shape_cast %369 : vector<1x1x1x128xf32> to vector<1x128xf32>
    %371 = arith.maximumf %368, %370 : vector<1x128xf32>
    %372 = arith.maximumf %366, %371 : vector<1x128xf32>
    %373 = arith.addf %372, %179 : vector<1x128xf32>
    %cst_112 = arith.constant 0.000000e+00 : f32
    %374 = vector.broadcast %cst_112 : f32 to vector<1x128xf32>
    %375 = arith.maximumf %373, %374 : vector<1x128xf32>
    %376 = vector.extract_strided_slice %178 {offsets = [0, 6, 4, 0], sizes = [1, 1, 1, 128], strides = [1, 1, 1, 1]} : vector<1x8x8x128xf32> to vector<1x1x1x128xf32>
    %377 = vector.shape_cast %376 : vector<1x1x1x128xf32> to vector<1x128xf32>
    %378 = vector.extract_strided_slice %178 {offsets = [0, 6, 5, 0], sizes = [1, 1, 1, 128], strides = [1, 1, 1, 1]} : vector<1x8x8x128xf32> to vector<1x1x1x128xf32>
    %379 = vector.shape_cast %378 : vector<1x1x1x128xf32> to vector<1x128xf32>
    %380 = arith.maximumf %377, %379 : vector<1x128xf32>
    %381 = vector.extract_strided_slice %178 {offsets = [0, 7, 4, 0], sizes = [1, 1, 1, 128], strides = [1, 1, 1, 1]} : vector<1x8x8x128xf32> to vector<1x1x1x128xf32>
    %382 = vector.shape_cast %381 : vector<1x1x1x128xf32> to vector<1x128xf32>
    %383 = vector.extract_strided_slice %178 {offsets = [0, 7, 5, 0], sizes = [1, 1, 1, 128], strides = [1, 1, 1, 1]} : vector<1x8x8x128xf32> to vector<1x1x1x128xf32>
    %384 = vector.shape_cast %383 : vector<1x1x1x128xf32> to vector<1x128xf32>
    %385 = arith.maximumf %382, %384 : vector<1x128xf32>
    %386 = arith.maximumf %380, %385 : vector<1x128xf32>
    %387 = arith.addf %386, %179 : vector<1x128xf32>
    %cst_113 = arith.constant 0.000000e+00 : f32
    %388 = vector.broadcast %cst_113 : f32 to vector<1x128xf32>
    %389 = arith.maximumf %387, %388 : vector<1x128xf32>
    %390 = vector.extract_strided_slice %178 {offsets = [0, 6, 6, 0], sizes = [1, 1, 1, 128], strides = [1, 1, 1, 1]} : vector<1x8x8x128xf32> to vector<1x1x1x128xf32>
    %391 = vector.shape_cast %390 : vector<1x1x1x128xf32> to vector<1x128xf32>
    %392 = vector.extract_strided_slice %178 {offsets = [0, 6, 7, 0], sizes = [1, 1, 1, 128], strides = [1, 1, 1, 1]} : vector<1x8x8x128xf32> to vector<1x1x1x128xf32>
    %393 = vector.shape_cast %392 : vector<1x1x1x128xf32> to vector<1x128xf32>
    %394 = arith.maximumf %391, %393 : vector<1x128xf32>
    %395 = vector.extract_strided_slice %178 {offsets = [0, 7, 6, 0], sizes = [1, 1, 1, 128], strides = [1, 1, 1, 1]} : vector<1x8x8x128xf32> to vector<1x1x1x128xf32>
    %396 = vector.shape_cast %395 : vector<1x1x1x128xf32> to vector<1x128xf32>
    %397 = vector.extract_strided_slice %178 {offsets = [0, 7, 7, 0], sizes = [1, 1, 1, 128], strides = [1, 1, 1, 1]} : vector<1x8x8x128xf32> to vector<1x1x1x128xf32>
    %398 = vector.shape_cast %397 : vector<1x1x1x128xf32> to vector<1x128xf32>
    %399 = arith.maximumf %396, %398 : vector<1x128xf32>
    %400 = arith.maximumf %394, %399 : vector<1x128xf32>
    %401 = arith.addf %400, %179 : vector<1x128xf32>
    %cst_114 = arith.constant 0.000000e+00 : f32
    %402 = vector.broadcast %cst_114 : f32 to vector<1x128xf32>
    %403 = arith.maximumf %401, %402 : vector<1x128xf32>
    %404 = tpu.concatenate %193, %207, %221, %235, %249, %263, %277, %291, %305, %319, %333, %347, %361, %375, %389, %403 in 1 : vector<1x128xf32>, vector<1x128xf32>, vector<1x128xf32>, vector<1x128xf32>, vector<1x128xf32>, vector<1x128xf32>, vector<1x128xf32>, vector<1x128xf32>, vector<1x128xf32>, vector<1x128xf32>, vector<1x128xf32>, vector<1x128xf32>, vector<1x128xf32>, vector<1x128xf32>, vector<1x128xf32>, vector<1x128xf32> -> vector<1x2048xf32>
    %c0_115 = arith.constant 0 : index
    %c0_116 = arith.constant 0 : index
    %405 = vector.load %arg6[%c0_115, %c0_116] : memref<2048x128xf32, #tpu.memory_space<vmem>>, vector<2048x128xf32>
    %cst_117 = arith.constant dense<0.000000e+00> : vector<1x128xf32>
    %406 = tpu.matmul %404, %405, %cst_117 {dimension_numbers = #tpu.dot_dimension_numbers<[1], [0], [0], [1], [0, 0, 1, 1], [], []>} : vector<1x2048xf32>, vector<2048x128xf32>, vector<1x128xf32> -> vector<1x128xf32>
    %c0_118 = arith.constant 0 : index
    %c0_119 = arith.constant 0 : index
    %407 = vector.load %arg7[%c0_118, %c0_119] : memref<1x128xf32, #tpu.memory_space<vmem>>, vector<1x128xf32>
    %408 = arith.addf %406, %407 : vector<1x128xf32>
    %cst_120 = arith.constant 0.000000e+00 : f32
    %409 = vector.broadcast %cst_120 : f32 to vector<1x128xf32>
    %410 = arith.maximumf %408, %409 : vector<1x128xf32>
    %c0_121 = arith.constant 0 : index
    %c0_122 = arith.constant 0 : index
    %411 = vector.load %arg8[%c0_121, %c0_122] : memref<128x128xf32, #tpu.memory_space<vmem>>, vector<128x128xf32>
    %cst_123 = arith.constant dense<0.000000e+00> : vector<1x128xf32>
    %412 = tpu.matmul %410, %411, %cst_123 {dimension_numbers = #tpu.dot_dimension_numbers<[1], [0], [0], [1], [0, 0, 1, 1], [], []>} : vector<1x128xf32>, vector<128x128xf32>, vector<1x128xf32> -> vector<1x128xf32>
    %c0_124 = arith.constant 0 : index
    %c0_125 = arith.constant 0 : index
    %413 = vector.load %arg9[%c0_124, %c0_125] : memref<1x128xf32, #tpu.memory_space<vmem>>, vector<1x128xf32>
    %414 = arith.addf %412, %413 : vector<1x128xf32>
    %415 = tpu.iota {dimensions = array<i32: 1>} : vector<1x128xi32>
    %c10_i32 = arith.constant 10 : i32
    %416 = vector.broadcast %c10_i32 : i32 to vector<1x128xi32>
    %417 = arith.cmpi slt, %415, %416 : vector<1x128xi32>
    %cst_126 = arith.constant -1.000000e+30 : f32
    %418 = vector.broadcast %cst_126 : f32 to vector<1x128xf32>
    %419 = arith.select %417, %414, %418 : vector<1x128xi1>, vector<1x128xf32>
    %cst_127 = arith.constant dense<0xFF800000> : vector<1xf32>
    %420 = vector.multi_reduction <maximumf>, %419, %cst_127 [1] : vector<1x128xf32> to vector<1xf32>
    %421 = vector.shape_cast %420 : vector<1xf32> to vector<1x1xf32>
    %422 = vector.broadcast %421 : vector<1x1xf32> to vector<1x128xf32>
    %423 = arith.subf %419, %422 : vector<1x128xf32>
    %424 = math.exp %423 : vector<1x128xf32>
    %cst_128 = arith.constant 0.000000e+00 : f32
    %425 = vector.broadcast %cst_128 : f32 to vector<1x128xf32>
    %426 = arith.select %417, %424, %425 : vector<1x128xi1>, vector<1x128xf32>
    %cst_129 = arith.constant dense<0.000000e+00> : vector<1xf32>
    %427 = vector.multi_reduction <add>, %426, %cst_129 [1] : vector<1x128xf32> to vector<1xf32>
    %428 = vector.shape_cast %427 : vector<1xf32> to vector<1x1xf32>
    %429 = math.log %428 : vector<1x1xf32>
    %430 = arith.addf %429, %421 : vector<1x1xf32>
    %431 = vector.broadcast %430 : vector<1x1xf32> to vector<1x128xf32>
    %432 = arith.subf %419, %431 : vector<1x128xf32>
    %cst_130 = arith.constant 0.000000e+00 : f32
    %433 = vector.broadcast %cst_130 : f32 to vector<1x128xf32>
    %434 = arith.select %417, %432, %433 : vector<1x128xi1>, vector<1x128xf32>
    %c0_131 = arith.constant 0 : index
    %c0_132 = arith.constant 0 : index
    %c0_133 = arith.constant 0 : index
    %435 = vector.load %arg10[%c0_131, %c0_132, %c0_133] : memref<1x1x128xf32, #tpu.memory_space<vmem>>, vector<1x1x128xf32>
    %436 = vector.shape_cast %435 : vector<1x1x128xf32> to vector<1x128xf32>
    %437 = vector.shape_cast %434 : vector<1x128xf32> to vector<1x1x128xf32>
    tpu.vector_store %arg10[%c0_131, %c0_132, %c0_133], %437 {strides = array<i32>} : memref<1x1x128xf32, #tpu.memory_space<vmem>>, vector<1x1x128xf32>,
    return
  }
  func.func @transform_0(%arg0: i32) -> (i32, i32, i32, i32) {
    %c0_i32 = arith.constant 0 : i32
    %c0_i32_0 = arith.constant 0 : i32
    %c0_i32_1 = arith.constant 0 : i32
    %c0_i32_2 = arith.constant 0 : i32
    return %arg0, %c0_i32, %c0_i32_0, %c0_i32_1 : i32, i32, i32, i32
  }
  func.func @transform_1(%arg0: i32) -> (i32, i32) {
    %c0_i32 = arith.constant 0 : i32
    %c0_i32_0 = arith.constant 0 : i32
    %c0_i32_1 = arith.constant 0 : i32
    return %c0_i32, %c0_i32_0 : i32, i32
  }
  func.func @transform_2(%arg0: i32) -> (i32, i32) {
    %c0_i32 = arith.constant 0 : i32
    %c0_i32_0 = arith.constant 0 : i32
    %c0_i32_1 = arith.constant 0 : i32
    return %c0_i32, %c0_i32_0 : i32, i32
  }
  func.func @transform_3(%arg0: i32) -> (i32, i32, i32) {
    %c0_i32 = arith.constant 0 : i32
    %c0_i32_0 = arith.constant 0 : i32
    %c0_i32_1 = arith.constant 0 : i32
    %c0_i32_2 = arith.constant 0 : i32
    return %c0_i32, %c0_i32_0, %c0_i32_1 : i32, i32, i32
  }
  func.func @transform_4(%arg0: i32) -> (i32, i32) {
    %c0_i32 = arith.constant 0 : i32
    %c0_i32_0 = arith.constant 0 : i32
    %c0_i32_1 = arith.constant 0 : i32
    return %c0_i32, %c0_i32_0 : i32, i32
  }
  func.func @transform_5(%arg0: i32) -> (i32, i32) {
    %c0_i32 = arith.constant 0 : i32
    %c0_i32_0 = arith.constant 0 : i32
    %c0_i32_1 = arith.constant 0 : i32
    return %c0_i32, %c0_i32_0 : i32, i32
  }
  func.func @transform_6(%arg0: i32) -> (i32, i32) {
    %c0_i32 = arith.constant 0 : i32
    %c0_i32_0 = arith.constant 0 : i32
    %c0_i32_1 = arith.constant 0 : i32
    return %c0_i32, %c0_i32_0 : i32, i32
  }
  func.func @transform_7(%arg0: i32) -> (i32, i32) {
    %c0_i32 = arith.constant 0 : i32
    %c0_i32_0 = arith.constant 0 : i32
    %c0_i32_1 = arith.constant 0 : i32
    return %c0_i32, %c0_i32_0 : i32, i32
  }
  func.func @transform_8(%arg0: i32) -> (i32, i32) {
    %c0_i32 = arith.constant 0 : i32
    %c0_i32_0 = arith.constant 0 : i32
    %c0_i32_1 = arith.constant 0 : i32
    return %c0_i32, %c0_i32_0 : i32, i32
  }
  func.func @transform_9(%arg0: i32) -> (i32, i32, i32) {
    %c0_i32 = arith.constant 0 : i32
    %c0_i32_0 = arith.constant 0 : i32
    %c0_i32_1 = arith.constant 0 : i32
    return %arg0, %c0_i32, %c0_i32_0 : i32, i32, i32
  }
}

</mosaic_0001>

<bundles_post_ra>
// kernel: net_forward.1
= control target key start
LH: loop header
LB: loop body
LE: loop exit
PB: predicated region body
PF: predicated region fallthrough
CT: control target
= control target key end

     0   :  { %14 = vsyncpa [#allocation3], 0  ;;  %s12634_s0 = inlined_call_operand.vmem [shape: f32[2,12,16,128], index: 0, kind: input, shape index: {}]   ;;  %s12635_s1 = inlined_call_operand.vmem [shape: f32[32,128], index: 1, kind: input, shape index: {}]   ;;  %s12636_s2 = inlined_call_operand.vmem [shape: f32[1,128], index: 2, kind: input, shape index: {}]   ;;  %s12637_s3 = inlined_call_operand.vmem [shape: f32[25,128,128], index: 3, kind: input, shape index: {}]   ;;  %s12638_s4 = inlined_call_operand.vmem [shape: f32[1,128], index: 4, kind: input, shape index: {}]   ;;  %s12639_s5 = inlined_call_operand.vmem [shape: f32[2048,128], index: 5, kind: input, shape index: {}]   ;;  %s12640_s6 = inlined_call_operand.vmem [shape: f32[1,128], index: 6, kind: input, shape index: {}]   ;;  %s12641_s7 = inlined_call_operand.vmem [shape: f32[128,128], index: 7, kind: input, shape index: {}]   ;;  %s12642_s8 = inlined_call_operand.vmem [shape: f32[1,128], index: 8, kind: input, shape index: {}]   ;;  %s12643_s9 = inlined_call_operand.hbm [shape: f32[2,1,128], index: 9, kind: output, shape index: {}]  }
   0x1   :  { %16 = vsyncpa [#allocation3 + $0x1], 0  ;;  %s9098_s30 = smov 0   ;;  %s9100_s10 = smov 0  }
   0x2   :  { %s9102_s11 = smov 0   ;;  %s9104_s12 = smov 0  }
   0x3 LB: > { %s9119_s13 = sadd.s32 4294967295, %s9040_s12   ;;  %s6120_s14 = sadd.s32 4294967294, %s9040_s12   ;;  %s9040_s12 = sphi %s9104_s12, %s12667_s12   ;;  %s9036_s11 = sphi %s9102_s11, %s12666_s11   ;;  %s9032_s10 = sphi %s9100_s10, %s12665_s10   ;;  %s9028_s30 = sphi %s9098_s30, %s12664_s30  }
   0x4   : > { %s9123_s15 = sadd.s32 1, %s9040_s12   ;;  %s223_s16 = sadd.s32 1, %s9036_s11 }
   0x5   : > { %s220_s17 = ssub.s32 %s9040_s12, %s9123_s15  ;;  %p233_p0 = scmp.ne.s32.totalorder %s9036_s11, %s9032_s10 }
   0x6   : > { %p221_p1 = scmp.eq.s32.totalorder %s220_s17, 0  ;;  %p234_p2 = scmp.eq.s32.totalorder %s9119_s13, 1 }
   0x7   : > { %p239_p3 = scmp.ne.s32.totalorder %s9032_s10, %s9028_s30  ;;  %p240_p4 = scmp.eq.s32.totalorder %s6120_s14, 1 }
   0x8   : > { %s9134_s18 = scalar_select %p221_p1, %s9036_s11, %s223_s16  }
   0x9   : > { %p9136_p5 = por %p234_p2, %p233_p0  ;;  %p9140_p6 = por %p240_p4, %p239_p3 }
   0xa   : > { %p6123_p7 = scmp.ge.s32.totalorder %s9040_s12, 1  ;;  %p290_p8 = scmp.lt.s32.totalorder %s9040_s12, 3 }
   0xc   : > { %p291_p9 = pnand %p6123_p7, %p290_p8 }
   0xe   : > { %294 = sbr.rel (%p291_p9) target bundleno = 1931 (0x78b), region = 56 }
  0x13   : > { %p325_p10 = scmp.lt.s32.totalorder %s9119_s13, 1  ;;  %v9150_v0 = vld [vmem:[%s12635_s1 + $0x18] sm:$0xff]  ;;  %v9155_v1 = vld [vmem:[%s12635_s1 + $0x10] sm:$0xff]  ;;  %v9164_v2 = vld [vmem:[%s12635_s1 + $0x8] sm:$0xff]  ;;  %vm358_vm0 = vcmask 261120   ;;  %s9042_s22 = smov 96  }
  0x14   : > { %7618 = vmatprep.subr.mxu0 %v9150_v0  ;;  %7662 = vmatprep.subr.mxu1 %v9150_v0  ;;  %v9173_v3 = vld [vmem:[%s12635_s1] sm:$0xff]  ;;  %s9043_s23 = smov 64   ;;  %s9044_s24 = smov 32   ;;  %vm1618_vm1 = vcmask 1046528   ;;  %vm2204_vm2 = vcmask 1043456   ;;  %vm2041_vm3 = vcmask 1044480  }
  0x15   : > { %s326_s25 = scalar_select %p325_p10, %s9119_s13, 1  ;;  %7619 = vmatpush3.msra.mxu0 %v9150_v0  ;;  %7663 = vmatpush3.msra.mxu1 %v9150_v0  ;;  %vm1878_vm4 = vcmask 1045504   ;;  %vm9046_vm5 = vmmov 0   ;;  %vm6035_vm7 = vcmask 1040384  }
  0x16   : > { %7620 = vmatprep.subr.mxu0 %v9155_v1  ;;  %7664 = vmatprep.subr.mxu1 %v9155_v1  ;;  %s6606_s26 = sshll.u32 %s9119_s13, 4 }
  0x17   : > { %s8929_s28 = smul.u32 192, %s326_s25  ;;  %7621 = vmatpush3.msra.mxu0 %v9155_v1  ;;  %7665 = vmatpush3.msra.mxu1 %v9155_v1  ;;  %s323_s25 = sand.u32 1, %s9032_s10  }
  0x18   : > { %7622 = vmatprep.subr.mxu0 %v9164_v2  ;;  %7666 = vmatprep.subr.mxu1 %v9164_v2  ;;  %s324_s27 = scalar_lea.vmem [#allocation2], %s323_s25  ;;  %s12598_s16 = scalar_lea.hbm %s12643_s9, %s6606_s26 }
  0x19   : > { %s9181_s21 = scalar_lea.vmem %s12634_s0, %s8929_s28  ;;  %7623 = vmatpush3.msra.mxu0 %v9164_v2  ;;  %7667 = vmatpush3.msra.mxu1 %v9164_v2  ;;  %s6065_s28 = sshll.u32 %s324_s27, 4  ;;  %s6066_s28 = int_to_ptr.vmem [resolvable:$true] %s6065_s28 }
  0x1a   : > { %v9186_v4 = vld [vmem:[%s9181_s21] sm:$0xff]  ;;  %v9189_v5 = vld [vmem:[%s9181_s21 + $0x10] sm:$0xff]  ;;  %7624 = vmatprep.subr.mxu0 %v9173_v3  ;;  %7668 = vmatprep.subr.mxu1 %v9173_v3  ;;  %v9198_v6 = vld [vmem:[%s9181_s21 + $0x8] sm:$0xff]  ;;  %s6053_s17 = scalar_lea.sflag [#allocation3], %s323_s25 }
  0x1b   : > { %616 = vrot.lane.b32.xlu0 %v9186_v4, %s9042_s22  ;;  %620 = vrot.lane.b32.xlu1 %v9189_v5, %s9042_s22  ;;  %v9201_v7 = vld [vmem:[%s9181_s21 + $0x18] sm:$0xff]  ;;  %v9217_v8 = vld [vmem:[%s9181_s21 + $0x20] sm:$0xff] }
  0x1c   : > { %7625 = vmatpush3.msra.mxu0 %v9173_v3  ;;  %7626 = vmatprep.mubr.msk.f32.mxu0 %vm358_vm0, %v9186_v4  ;;  %v9220_v9 = vld [vmem:[%s9181_s21 + $0x28] sm:$0xff]  ;;  %v9235_v10 = vld [vmem:[%s9181_s21 + $0x30] sm:$0xff]  ;;  %v9238_v11 = vld [vmem:[%s9181_s21 + $0x38] sm:$0xff] }
  0x1d   : > { %7627 = vmatmul.mubr.msk.f32.vlgmr.msra.gmra.mxu0 %vm358_vm0, %v9198_v6  ;;  %7669 = vmatpush3.msra.mxu1 %v9173_v3  ;;  %v9251_v12 = vld [vmem:[%s9181_s21 + $0x40] sm:$0xff]  ;;  %v9254_v13 = vld [vmem:[%s9181_s21 + $0x48] sm:$0xff]  ;;  %v9267_v14 = vld [vmem:[%s9181_s21 + $0x50] sm:$0xff] }
  0x1e   : > { %7629 = vmatprep.mubr.msk.f32.mxu0 %vm358_vm0, %v9189_v5  ;;  %7706 = vmatprep.subr.mxu0 %v9150_v0  ;;  %v9270_v15 = vld [vmem:[%s9181_s21 + $0x58] sm:$0xff]  ;;  %v9281_v16 = vld [vmem:[%s9181_s21 + $0x60] sm:$0xff]  ;;  %v9284_v17 = vld [vmem:[%s9181_s21 + $0x68] sm:$0xff] }
  0x1f   : > { %618 = vrot.lane.b32.xlu0 %v9198_v6, %s9042_s22  ;;  %622 = vrot.lane.b32.xlu1 %v9201_v7, %s9042_s22  ;;  %v348_v18 = vld [vmem:[%s9181_s21 + $0x70] sm:$0xff]  ;;  %v349_v19 = vld [vmem:[%s9181_s21 + $0x78] sm:$0xff] }
  0x20   : > { %7707 = vmatpush3.msra.mxu0 %v9150_v0  ;;  %7750 = vmatprep.subr.mxu1 %v9150_v0  ;;  %v9302_v20 = vld [vmem:[%s9181_s21 + $0x80] sm:$0xff]  ;;  %v9305_v21 = vld [vmem:[%s9181_s21 + $0x88] sm:$0xff]  ;;  %v9315_v22 = vld [vmem:[%s9181_s21 + $0x90] sm:$0xff] }
  0x21   : > { %7630 = vmatmul.mubr.msk.f32.gmra.mxu0 %vm358_vm0, %v9201_v7  ;;  %7708 = vmatprep.subr.mxu0 %v9155_v1  ;;  %v9318_v23 = vld [vmem:[%s9181_s21 + $0x98] sm:$0xff]  ;;  %v9329_v24 = vld [vmem:[%s9181_s21 + $0xa0] sm:$0xff]  ;;  %v9332_v25 = vld [vmem:[%s9181_s21 + $0xa8] sm:$0xff] }
  0x22   : > { %7632 = vmatprep.mubr.msk.f32.mxu0 %vm358_vm0, %v9217_v8  ;;  %7709 = vmatpush3.msra.mxu0 %v9155_v1  ;;  %v9343_v26 = vld [vmem:[%s9181_s21 + $0xb0] sm:$0xff]  ;;  %v9346_v27 = vld [vmem:[%s9181_s21 + $0xb8] sm:$0xff]  ;;  %s8980_s21 = scalar_lea.vmem %s6066_s28, 16 }
  0x23   : > { %624 = vrot.lane.b32.xlu0 %v9217_v8, %s9042_s22  ;;  %626 = vrot.lane.b32.xlu1 %v9220_v9, %s9042_s22  ;;  %p8981_p11 = scmp.ne.s32.totalorder %s6066_s28, %s8980_s21 }
  0x24   : > { %7710 = vmatprep.subr.mxu0 %v9164_v2 }
  0x25   : > { %7633 = vmatmul.mubr.msk.f32.gmra.mxu0 %vm358_vm0, %v9220_v9  ;;  %p8982_p12 = pnand %p8981_p11, %p9136_p5 }
  0x26   : > { %7635 = vmatprep.mubr.msk.f32.mxu0 %vm358_vm0, %v9235_v10  ;;  %7711 = vmatpush3.msra.mxu0 %v9164_v2 }
  0x27   : > { %628 = vrot.lane.b32.xlu0 %v9235_v10, %s9042_s22  ;;  %630 = vrot.lane.b32.xlu1 %v9238_v11, %s9042_s22  ;;  %p8983_p13 = pneg %p8982_p12 }
  0x28   : > { %7712 = vmatprep.subr.mxu0 %v9173_v3 }
  0x29   : > { %7636 = vmatmul.mubr.msk.f32.gmra.mxu0 %vm358_vm0, %v9238_v11 }
  0x2a   : > { %7638 = vmatprep.mubr.msk.f32.mxu0 %vm358_vm0, %v9251_v12  ;;  %7713 = vmatpush3.msra.mxu0 %v9173_v3 }
  0x2b   : > { %632 = vrot.lane.b32.xlu0 %v9251_v12, %s9042_s22  ;;  %634 = vrot.lane.b32.xlu1 %v9254_v13, %s9042_s22 }
  0x2d   : > { %7639 = vmatmul.mubr.msk.f32.gmra.mxu0 %vm358_vm0, %v9254_v13 }
  0x2e   : > { %7641 = vmatprep.mubr.msk.f32.mxu0 %vm358_vm0, %v9267_v14 }
  0x2f   : > { %636 = vrot.lane.b32.xlu0 %v9267_v14, %s9042_s22  ;;  %638 = vrot.lane.b32.xlu1 %v9270_v15, %s9042_s22 }
  0x31   : > { %7642 = vmatmul.mubr.msk.f32.gmra.mxu0 %vm358_vm0, %v9270_v15 }
  0x32   : > { %7644 = vmatprep.mubr.msk.f32.mxu0 %vm358_vm0, %v9281_v16 }
  0x33   : > { %640 = vrot.lane.b32.xlu0 %v9281_v16, %s9042_s22  ;;  %642 = vrot.lane.b32.xlu1 %v9284_v17, %s9042_s22 }
  0x35   : > { %7645 = vmatmul.mubr.msk.f32.gmra.mxu0 %vm358_vm0, %v9284_v17 }
  0x36   : > { %7647 = vmatprep.mubr.msk.f32.mxu0 %vm358_vm0, %v348_v18 }
  0x37   : > { %644 = vrot.lane.b32.xlu0 %v348_v18, %s9042_s22  ;;  %646 = vrot.lane.b32.xlu1 %v349_v19, %s9042_s22 }
  0x39   : > { %7648 = vmatmul.mubr.msk.f32.gmra.mxu0 %vm358_vm0, %v349_v19 }
  0x3a   : > { %7650 = vmatprep.mubr.msk.f32.mxu0 %vm358_vm0, %v9302_v20 }
  0x3b   : > { %648 = vrot.lane.b32.xlu0 %v9302_v20, %s9042_s22  ;;  %650 = vrot.lane.b32.xlu1 %v9305_v21, %s9042_s22 }
  0x3d   : > { %7651 = vmatmul.mubr.msk.f32.gmra.mxu0 %vm358_vm0, %v9305_v21 }
  0x3e   : > { %7653 = vmatprep.mubr.msk.f32.mxu0 %vm358_vm0, %v9315_v22 }
  0x3f   : > { %652 = vrot.lane.b32.xlu0 %v9315_v22, %s9042_s22  ;;  %654 = vrot.lane.b32.xlu1 %v9318_v23, %s9042_s22 }
  0x41   : > { %7654 = vmatmul.mubr.msk.f32.gmra.mxu0 %vm358_vm0, %v9318_v23 }
  0x42   : > { %7656 = vmatprep.mubr.msk.f32.mxu0 %vm358_vm0, %v9329_v24 }
  0x43   : > { %656 = vrot.lane.b32.xlu0 %v9329_v24, %s9042_s22  ;;  %658 = vrot.lane.b32.xlu1 %v9332_v25, %s9042_s22 }
  0x45   : > { %7657 = vmatmul.mubr.msk.f32.gmra.mxu0 %vm358_vm0, %v9332_v25 }
  0x46   : > { %7659 = vmatprep.mubr.msk.f32.mxu0 %vm358_vm0, %v9343_v26 }
  0x47   : > { %660 = vrot.lane.b32.xlu0 %v9343_v26, %s9042_s22  ;;  %662 = vrot.lane.b32.xlu1 %v9346_v27, %s9042_s22  ;;  %s9047_s22 = smov [#allocation2]  }
  0x48   : > { %s8984_s13 = sshll.u32 %s9047_s22, 4  ;;  %s8985_s13 = int_to_ptr.vmem [resolvable:$false] %s8984_s13 }
  0x49   : > { %7660 = vmatmul.mubr.msk.f32.gmra.mxu0 %vm358_vm0, %v9346_v27  ;;  %p8987_p0 = scmp.lt.s32.totalorder %s6066_s28, %s8985_s13 }
  0x4b   : > { %921 = vrot.lane.b32.xlu0 %v9186_v4, %s9043_s23  ;;  %923 = vrot.lane.b32.xlu1 %v9198_v6, %s9043_s23 }
  0x4f   : > { %1226 = vrot.lane.b32.xlu0 %v9186_v4, %s9044_s24  ;;  %1228 = vrot.lane.b32.xlu1 %v9198_v6, %s9044_s24 }
  0x53   : > { %925 = vrot.lane.b32.xlu0 %v9189_v5, %s9043_s23  ;;  %927 = vrot.lane.b32.xlu1 %v9201_v7, %s9043_s23 }
  0x57   : > { %1230 = vrot.lane.b32.xlu0 %v9189_v5, %s9044_s24  ;;  %1232 = vrot.lane.b32.xlu1 %v9201_v7, %s9044_s24 }
  0x5b   : > { %929 = vrot.lane.b32.xlu0 %v9217_v8, %s9043_s23  ;;  %931 = vrot.lane.b32.xlu1 %v9220_v9, %s9043_s23 }
  0x5f   : > { %1234 = vrot.lane.b32.xlu0 %v9217_v8, %s9044_s24  ;;  %1236 = vrot.lane.b32.xlu1 %v9220_v9, %s9044_s24 }
  0x63   : > { %933 = vrot.lane.b32.xlu0 %v9235_v10, %s9043_s23  ;;  %935 = vrot.lane.b32.xlu1 %v9238_v11, %s9043_s23 }
  0x67   : > { %1238 = vrot.lane.b32.xlu0 %v9235_v10, %s9044_s24  ;;  %1240 = vrot.lane.b32.xlu1 %v9238_v11, %s9044_s24 }
  0x6b   : > { %937 = vrot.lane.b32.xlu0 %v9251_v12, %s9043_s23  ;;  %939 = vrot.lane.b32.xlu1 %v9254_v13, %s9043_s23 }
  0x6f   : > { %1242 = vrot.lane.b32.xlu0 %v9251_v12, %s9044_s24  ;;  %1244 = vrot.lane.b32.xlu1 %v9254_v13, %s9044_s24 }
  0x73   : > { %941 = vrot.lane.b32.xlu0 %v9267_v14, %s9043_s23  ;;  %943 = vrot.lane.b32.xlu1 %v9270_v15, %s9043_s23 }
  0x77   : > { %1246 = vrot.lane.b32.xlu0 %v9267_v14, %s9044_s24  ;;  %1248 = vrot.lane.b32.xlu1 %v9270_v15, %s9044_s24 }
  0x7b   : > { %945 = vrot.lane.b32.xlu0 %v9281_v16, %s9043_s23  ;;  %947 = vrot.lane.b32.xlu1 %v9284_v17, %s9043_s23 }
  0x7f   : > { %1250 = vrot.lane.b32.xlu0 %v9281_v16, %s9044_s24  ;;  %1252 = vrot.lane.b32.xlu1 %v9284_v17, %s9044_s24  ;;  %v1601_v16 = vld [vmem:[%s12637_s3 + $0x78] sm:$0xff] }
  0x83   : > { %949 = vrot.lane.b32.xlu0 %v348_v18, %s9043_s23  ;;  %951 = vrot.lane.b32.xlu1 %v349_v19, %s9043_s23 }
  0x87   : > { %1254 = vrot.lane.b32.xlu0 %v348_v18, %s9044_s24  ;;  %1256 = vrot.lane.b32.xlu1 %v349_v19, %s9044_s24  ;;  %v1600_v19 = vld [vmem:[%s12637_s3 + $0x70] sm:$0xff] }
  0x8b   : > { %953 = vrot.lane.b32.xlu0 %v9302_v20, %s9043_s23  ;;  %955 = vrot.lane.b32.xlu1 %v9305_v21, %s9043_s23 }
  0x8d   : > { %v617_v28 = vpop.permute.xlu0 %616  ;;  %v621_v29 = vpop.permute.xlu1 %620 }
  0x8e   : > { %7670 = vmatprep.mubr.msk.f32.mxu1 %vm358_vm0, %v617_v28  ;;  %v6234_v28 = vld [vmem:[%s12637_s3 + $0xe0] sm:$0xff] }
  0x8f   : > { %1258 = vrot.lane.b32.xlu0 %v9302_v20, %s9044_s24  ;;  %1260 = vrot.lane.b32.xlu1 %v9305_v21, %s9044_s24  ;;  %v6237_v20 = vld [vmem:[%s12637_s3 + $0xf8] sm:$0xff]  ;;  %v1599_v21 = vld [vmem:[%s12637_s3 + $0x68] sm:$0xff] }
  0x90   : > { %7794 = vmatprep.subr.mxu0 %v6237_v20 }
  0x91   : > { %v619_v30 = vpop.permute.xlu0 %618  ;;  %v623_v31 = vpop.permute.xlu1 %622 }
  0x92   : > { %7671 = vmatmul.mubr.msk.f32.vlgmr.msra.gmra.mxu1 %vm358_vm0, %v619_v30 }
  0x93   : > { %957 = vrot.lane.b32.xlu0 %v9315_v22, %s9043_s23  ;;  %7673 = vmatprep.mubr.msk.f32.mxu1 %vm358_vm0, %v621_v29 }
  0x94   : > { %959 = vrot.lane.b32.xlu1 %v9318_v23, %s9043_s23  ;;  %7751 = vmatpush3.msra.mxu1 %v9150_v0 }
  0x95   : > { %v625_v32 = vpop.permute.xlu0 %624  ;;  %v627_v33 = vpop.permute.xlu1 %626  ;;  %7752 = vmatprep.subr.mxu1 %v9155_v1 }
  0x96   : > { %7674 = vmatmul.mubr.msk.f32.gmra.mxu1 %vm358_vm0, %v623_v31  ;;  %v1596_v31 = vld [vmem:[%s12637_s3 + $0x50] sm:$0xff] }
  0x97   : > { %1262 = vrot.lane.b32.xlu0 %v9315_v22, %s9044_s24  ;;  %7676 = vmatprep.mubr.msk.f32.mxu1 %vm358_vm0, %v625_v32  ;;  %v6236_v22 = vld [vmem:[%s12637_s3 + $0xf0] sm:$0xff]  ;;  %v6233_v32 = vld [vmem:[%s12637_s3 + $0xd8] sm:$0xff] }
  0x98   : > { %1264 = vrot.lane.b32.xlu1 %v9318_v23, %s9044_s24  ;;  %7753 = vmatpush3.msra.mxu1 %v9155_v1 }
  0x99   : > { %v629_v34 = vpop.permute.xlu0 %628  ;;  %v631_v35 = vpop.permute.xlu1 %630  ;;  %7754 = vmatprep.subr.mxu1 %v9164_v2 }
  0x9a   : > { %7677 = vmatmul.mubr.msk.f32.gmra.mxu1 %vm358_vm0, %v627_v33 }
  0x9b   : > { %961 = vrot.lane.b32.xlu0 %v9329_v24, %s9043_s23  ;;  %7679 = vmatprep.mubr.msk.f32.mxu1 %vm358_vm0, %v629_v34 }
  0x9c   : > { %963 = vrot.lane.b32.xlu1 %v9332_v25, %s9043_s23  ;;  %7755 = vmatpush3.msra.mxu1 %v9164_v2 }
  0x9d   : > { %v633_v36 = vpop.permute.xlu0 %632  ;;  %v635_v37 = vpop.permute.xlu1 %634  ;;  %7756 = vmatprep.subr.mxu1 %v9173_v3 }
  0x9e   : > { %7680 = vmatmul.mubr.msk.f32.gmra.mxu1 %vm358_vm0, %v631_v35  ;;  %v1595_v35 = vld [vmem:[%s12637_s3 + $0x48] sm:$0xff] }
  0x9f   : > { %965 = vrot.lane.b32.xlu0 %v9343_v26, %s9043_s23  ;;  %7682 = vmatprep.mubr.msk.f32.mxu1 %vm358_vm0, %v633_v36  ;;  %v6232_v36 = vld [vmem:[%s12637_s3 + $0xd0] sm:$0xff] }
  0xa0   : > { %967 = vrot.lane.b32.xlu1 %v9346_v27, %s9043_s23  ;;  %7757 = vmatpush3.msra.mxu1 %v9173_v3  ;;  %s8986_s23 = scalar_lea.vmem %s8985_s13, 32 }
  0xa1   : > { %v637_v38 = vpop.permute.xlu0 %636  ;;  %v639_v39 = vpop.permute.xlu1 %638  ;;  %7838 = vmatprep.subr.mxu1 %v1601_v16  ;;  %p8988_p1 = scmp.lt.s32.totalorder %s8986_s23, %s8980_s21 }
  0xa2   : > { %7683 = vmatmul.mubr.msk.f32.gmra.mxu1 %vm358_vm0, %v635_v37  ;;  %v1594_v37 = vld [vmem:[%s12637_s3 + $0x40] sm:$0xff] }
  0xa3   : > { %1266 = vrot.lane.b32.xlu0 %v9329_v24, %s9044_s24  ;;  %7685 = vmatprep.mubr.msk.f32.mxu1 %vm358_vm0, %v637_v38  ;;  %v6231_v38 = vld [vmem:[%s12637_s3 + $0xc8] sm:$0xff]  ;;  %p8989_p2 = por %p8988_p1, %p8987_p0 }
  0xa4   : > { %1268 = vrot.lane.b32.xlu1 %v9332_v25, %s9044_s24  ;;  %v1598_v25 = vld [vmem:[%s12637_s3 + $0x60] sm:$0xff] }
  0xa5   : > { %v641_v40 = vpop.permute.xlu0 %640  ;;  %v643_v41 = vpop.permute.xlu1 %642  ;;  %p8990_p3 = pnand %p8989_p2, %p8983_p13 }
  0xa6   : > { %7686 = vmatmul.mubr.msk.f32.gmra.mxu1 %vm358_vm0, %v639_v39 }
  0xa7   : > { %1270 = vrot.lane.b32.xlu0 %v9343_v26, %s9044_s24  ;;  %7688 = vmatprep.mubr.msk.f32.mxu1 %vm358_vm0, %v641_v40  ;;  %v6235_v26 = vld [vmem:[%s12637_s3 + $0xe8] sm:$0xff] }
  0xa8   : > { %1272 = vrot.lane.b32.xlu1 %v9346_v27, %s9044_s24  ;;  %v1597_v27 = vld [vmem:[%s12637_s3 + $0x58] sm:$0xff] }
  0xa9   : > { %v645_v42 = vpop.permute.xlu0 %644  ;;  %v647_v43 = vpop.permute.xlu1 %646 }
  0xaa   : > { %7689 = vmatmul.mubr.msk.f32.gmra.mxu1 %vm358_vm0, %v643_v41  ;;  %v1593_v41 = vld [vmem:[%s12637_s3 + $0x38] sm:$0xff] }
  0xab   : > { %7691 = vmatprep.mubr.msk.f32.mxu1 %vm358_vm0, %v645_v42  ;;  %v6230_v42 = vld [vmem:[%s12637_s3 + $0xc0] sm:$0xff] }
  0xad   : > { %v649_v44 = vpop.permute.xlu0 %648  ;;  %v651_v45 = vpop.permute.xlu1 %650 }
  0xae   : > { %7692 = vmatmul.mubr.msk.f32.gmra.mxu1 %vm358_vm0, %v647_v43 }
  0xaf   : > { %7694 = vmatprep.mubr.msk.f32.mxu1 %vm358_vm0, %v649_v44  ;;  %v1592_v44 = vld [vmem:[%s12637_s3 + $0x30] sm:$0xff] }
  0xb1   : > { %v653_v46 = vpop.permute.xlu0 %652  ;;  %v655_v47 = vpop.permute.xlu1 %654 }
  0xb2   : > { %7695 = vmatmul.mubr.msk.f32.gmra.mxu1 %vm358_vm0, %v651_v45  ;;  %v6229_v45 = vld [vmem:[%s12637_s3 + $0xb8] sm:$0xff] }
  0xb3   : > { %7697 = vmatprep.mubr.msk.f32.mxu1 %vm358_vm0, %v653_v46 }
  0xb5   : > { %v657_v48 = vpop.permute.xlu0 %656  ;;  %v659_v49 = vpop.permute.xlu1 %658 }
  0xb6   : > { %7698 = vmatmul.mubr.msk.f32.gmra.mxu1 %vm358_vm0, %v655_v47  ;;  %v1591_v47 = vld [vmem:[%s12637_s3 + $0x28] sm:$0xff] }
  0xb7   : > { %7700 = vmatprep.mubr.msk.f32.mxu1 %vm358_vm0, %v657_v48  ;;  %v6228_v48 = vld [vmem:[%s12637_s3 + $0xb0] sm:$0xff] }
  0xb9   : > { %v661_v50 = vpop.permute.xlu0 %660  ;;  %v663_v51 = vpop.permute.xlu1 %662 }
  0xba   : > { %7701 = vmatmul.mubr.msk.f32.gmra.mxu1 %vm358_vm0, %v659_v49 }
  0xbb   : > { %7703 = vmatprep.mubr.msk.f32.mxu1 %vm358_vm0, %v661_v50 }
  0xbd   : > { %v922_v52 = vpop.permute.xlu0 %921  ;;  %v924_v53 = vpop.permute.xlu1 %923 }
  0xbe   : > { %7704 = vmatmul.mubr.msk.f32.gmra.mxu1 %vm358_vm0, %v663_v51  ;;  %7714 = vmatprep.mubr.msk.f32.mxu0 %vm358_vm0, %v922_v52  ;;  %v1590_v51 = vld [vmem:[%s12637_s3 + $0x20] sm:$0xff]  ;;  %v6227_v52 = vld [vmem:[%s12637_s3 + $0xa8] sm:$0xff] }
  0xbf   : > { %7715 = vmatmul.mubr.msk.f32.vlgmr.msra.gmra.mxu0 %vm358_vm0, %v924_v53  ;;  %v1589_v53 = vld [vmem:[%s12637_s3 + $0x18] sm:$0xff] }
  0xc0   : > { %7795 = vmatpush3.msra.mxu0 %v6237_v20 }
  0xc1   : > { %v1227_v54 = vpop.permute.xlu0 %1226  ;;  %v1229_v55 = vpop.permute.xlu1 %1228  ;;  %7796 = vmatprep.subr.mxu0 %v6236_v22 }
  0xc2   : > { %7758 = vmatprep.mubr.msk.f32.mxu1 %vm358_vm0, %v1227_v54  ;;  %7797 = vmatpush3.msra.mxu0 %v6236_v22 }
  0xc3   : > { %7759 = vmatmul.mubr.msk.f32.vlgmr.msra.gmra.mxu1 %vm358_vm0, %v1229_v55  ;;  %7798 = vmatprep.subr.mxu0 %v6235_v26 }
  0xc4   : > { %7839 = vmatpush3.msra.mxu1 %v1601_v16  ;;  %7799 = vmatpush3.msra.mxu0 %v6235_v26 }
  0xc5   : > { %v926_v56 = vpop.permute.xlu0 %925  ;;  %v928_v57 = vpop.permute.xlu1 %927  ;;  %7840 = vmatprep.subr.mxu1 %v1600_v19  ;;  %7800 = vmatprep.subr.mxu0 %v6234_v28 }
  0xc6   : > { %7717 = vmatprep.mubr.msk.f32.mxu0 %vm358_vm0, %v926_v56  ;;  %7841 = vmatpush3.msra.mxu1 %v1600_v19  ;;  %v6226_v56 = vld [vmem:[%s12637_s3 + $0xa0] sm:$0xff] }
  0xc7   : > { %7718 = vmatmul.mubr.msk.f32.gmra.mxu0 %vm358_vm0, %v928_v57  ;;  %7842 = vmatprep.subr.mxu1 %v1599_v21  ;;  %v1588_v57 = vld [vmem:[%s12637_s3 + $0x10] sm:$0xff] }
  0xc8   : > { %7843 = vmatpush3.msra.mxu1 %v1599_v21  ;;  %7801 = vmatpush3.msra.mxu0 %v6234_v28 }
  0xc9   : > { %v1231_v58 = vpop.permute.xlu0 %1230  ;;  %v1233_v59 = vpop.permute.xlu1 %1232  ;;  %7844 = vmatprep.subr.mxu1 %v1598_v25  ;;  %7802 = vmatprep.subr.mxu0 %v6233_v32 }
  0xca   : > { %7761 = vmatprep.mubr.msk.f32.mxu1 %vm358_vm0, %v1231_v58  ;;  %7845 = vmatpush3.msra.mxu1 %v1598_v25  ;;  %v6225_v58 = vld [vmem:[%s12637_s3 + $0x98] sm:$0xff] }
  0xcb   : > { %7762 = vmatmul.mubr.msk.f32.gmra.mxu1 %vm358_vm0, %v1233_v59  ;;  %7846 = vmatprep.subr.mxu1 %v1597_v27 }
  0xcc   : > { %7847 = vmatpush3.msra.mxu1 %v1597_v27  ;;  %7803 = vmatpush3.msra.mxu0 %v6233_v32 }
  0xcd   : > { %v930_v60 = vpop.permute.xlu0 %929  ;;  %v932_v61 = vpop.permute.xlu1 %931  ;;  %7848 = vmatprep.subr.mxu1 %v1596_v31  ;;  %7804 = vmatprep.subr.mxu0 %v6232_v36 }
  0xce   : > { %7720 = vmatprep.mubr.msk.f32.mxu0 %vm358_vm0, %v930_v60  ;;  %7849 = vmatpush3.msra.mxu1 %v1596_v31 }
  0xcf   : > { %7721 = vmatmul.mubr.msk.f32.gmra.mxu0 %vm358_vm0, %v932_v61  ;;  %7850 = vmatprep.subr.mxu1 %v1595_v35  ;;  %v1587_v61 = vld [vmem:[%s12637_s3 + $0x8] sm:$0xff] }
  0xd0   : > { %7851 = vmatpush3.msra.mxu1 %v1595_v35  ;;  %7805 = vmatpush3.msra.mxu0 %v6232_v36 }
  0xd1   : > { %v1235_v62 = vpop.permute.xlu0 %1234  ;;  %v1237_v63 = vpop.permute.xlu1 %1236  ;;  %7852 = vmatprep.subr.mxu1 %v1594_v37  ;;  %7806 = vmatprep.subr.mxu0 %v6231_v38 }
  0xd2   : > { %7764 = vmatprep.mubr.msk.f32.mxu1 %vm358_vm0, %v1235_v62  ;;  %7853 = vmatpush3.msra.mxu1 %v1594_v37  ;;  %v6224_v62 = vld [vmem:[%s12637_s3 + $0x90] sm:$0xff] }
  0xd3   : > { %7765 = vmatmul.mubr.msk.f32.gmra.mxu1 %vm358_vm0, %v1237_v63  ;;  %7807 = vmatpush3.msra.mxu0 %v6231_v38 }
  0xd4   : > { %7854 = vmatprep.subr.mxu1 %v1593_v41  ;;  %7808 = vmatprep.subr.mxu0 %v6230_v42 }
  0xd5   : > { %v934_v0 = vpop.permute.xlu0 %933  ;;  %v936_v1 = vpop.permute.xlu1 %935  ;;  %7855 = vmatpush3.msra.mxu1 %v1593_v41  ;;  %7809 = vmatpush3.msra.mxu0 %v6230_v42 }
  0xd6   : > { %7723 = vmatprep.mubr.msk.f32.mxu0 %vm358_vm0, %v934_v0  ;;  %7856 = vmatprep.subr.mxu1 %v1592_v44  ;;  %v1586_v0 = vld [vmem:[%s12637_s3] sm:$0xff] }
  0xd7   : > { %7724 = vmatmul.mubr.msk.f32.gmra.mxu0 %vm358_vm0, %v936_v1  ;;  %7810 = vmatprep.subr.mxu0 %v6229_v45  ;;  %v6223_v1 = vld [vmem:[%s12637_s3 + $0x88] sm:$0xff] }
  0xd8   : > { %7857 = vmatpush3.msra.mxu1 %v1592_v44  ;;  %7811 = vmatpush3.msra.mxu0 %v6229_v45 }
  0xd9   : > { %v1239_v2 = vpop.permute.xlu0 %1238  ;;  %v1241_v3 = vpop.permute.xlu1 %1240  ;;  %7858 = vmatprep.subr.mxu1 %v1591_v47  ;;  %7812 = vmatprep.subr.mxu0 %v6228_v48 }
  0xda   : > { %7767 = vmatprep.mubr.msk.f32.mxu1 %vm358_vm0, %v1239_v2  ;;  %7859 = vmatpush3.msra.mxu1 %v1591_v47 }
  0xdb   : > { %7768 = vmatmul.mubr.msk.f32.gmra.mxu1 %vm358_vm0, %v1241_v3  ;;  %7813 = vmatpush3.msra.mxu0 %v6228_v48  ;;  %v6222_v3 = vld [vmem:[%s12637_s3 + $0x80] sm:$0xff] }
  0xdc   : > { %7860 = vmatprep.subr.mxu1 %v1590_v51  ;;  %7814 = vmatprep.subr.mxu0 %v6227_v52 }
  0xdd   : > { %v938_v4 = vpop.permute.xlu0 %937  ;;  %v940_v5 = vpop.permute.xlu1 %939  ;;  %7861 = vmatpush3.msra.mxu1 %v1590_v51  ;;  %7815 = vmatpush3.msra.mxu0 %v6227_v52 }
  0xde   : > { %7726 = vmatprep.mubr.msk.f32.mxu0 %vm358_vm0, %v938_v4  ;;  %7862 = vmatprep.subr.mxu1 %v1589_v53  ;;  %v7628_v4 = vpop.f32.mrf.mxu0 }
  0xdf   : > { %7727 = vmatmul.mubr.msk.f32.gmra.mxu0 %vm358_vm0, %v940_v5  ;;  %7863 = vmatpush3.msra.mxu1 %v1589_v53 }
  0xe0   : > { %7816 = vmatprep.subr.mxu0 %v6226_v56  ;;  %7864 = vmatprep.subr.mxu1 %v1588_v57  ;;  %v497_v5 = vpop.f32.mrf.mxu0 }
  0xe1   : > { %v1243_v6 = vpop.permute.xlu0 %1242  ;;  %v1245_v7 = vpop.permute.xlu1 %1244  ;;  %7817 = vmatpush3.msra.mxu0 %v6226_v56  ;;  %7865 = vmatpush3.msra.mxu1 %v1588_v57 }
  0xe2   : > { %7770 = vmatprep.mubr.msk.f32.mxu1 %vm358_vm0, %v1243_v6  ;;  %7818 = vmatprep.subr.mxu0 %v6225_v58  ;;  %v9628_v6 = vld [vmem:[%s12637_s3 + $0x1f8] sm:$0xff] }
  0xe3   : > { %7771 = vmatmul.mubr.msk.f32.gmra.mxu1 %vm358_vm0, %v1245_v7  ;;  %7819 = vmatpush3.msra.mxu0 %v6225_v58  ;;  %v9630_v7 = vpop.f32.mrf.mxu0 }
  0xe4   : > { %7866 = vmatprep.subr.mxu1 %v1587_v61  ;;  %7820 = vmatprep.subr.mxu0 %v6224_v62 }
  0xe5   : > { %v942_v8 = vpop.permute.xlu0 %941  ;;  %v944_v9 = vpop.permute.xlu1 %943  ;;  %7867 = vmatpush3.msra.mxu1 %v1587_v61  ;;  %7821 = vmatpush3.msra.mxu0 %v6224_v62 }
  0xe6   : > { %7729 = vmatprep.mubr.msk.f32.mxu0 %vm358_vm0, %v942_v8  ;;  %7868 = vmatprep.subr.mxu1 %v1586_v0  ;;  %v9636_v8 = vld [vmem:[%s12637_s3 + $0x178] sm:$0xff] }
  0xe7   : > { %7730 = vmatmul.mubr.msk.f32.gmra.mxu0 %vm358_vm0, %v944_v9  ;;  %7822 = vmatprep.subr.mxu0 %v6223_v1  ;;  %v9639_v9 = vpop.f32.mrf.mxu0 }
  0xe8   : > { %7869 = vmatpush3.msra.mxu1 %v1586_v0  ;;  %7823 = vmatpush3.msra.mxu0 %v6223_v1 }
  0xe9   : > { %v1247_v10 = vpop.permute.xlu0 %1246  ;;  %v1249_v11 = vpop.permute.xlu1 %1248  ;;  %7824 = vmatprep.subr.mxu0 %v6222_v3  ;;  %7926 = vmatprep.subr.mxu1 %v9628_v6 }
  0xea   : > { %7773 = vmatprep.mubr.msk.f32.mxu1 %vm358_vm0, %v1247_v10  ;;  %7825 = vmatpush3.msra.mxu0 %v6222_v3  ;;  %v9641_v10 = vpop.f32.mrf.mxu0 }
  0xeb   : > { %7774 = vmatmul.mubr.msk.f32.gmra.mxu1 %vm358_vm0, %v1249_v11  ;;  %7882 = vmatprep.subr.mxu0 %v9636_v8 }
  0xec   : > { %v9643_v11 = vpop.f32.mrf.mxu0 }
  0xed   : > { %v946_v12 = vpop.permute.xlu0 %945  ;;  %v948_v13 = vpop.permute.xlu1 %947 }
  0xee   : > { %7732 = vmatprep.mubr.msk.f32.mxu0 %vm358_vm0, %v946_v12  ;;  %v9645_v12 = vpop.f32.mrf.mxu0 }
  0xef   : > { %7733 = vmatmul.mubr.msk.f32.gmra.mxu0 %vm358_vm0, %v948_v13 }
  0xf0   : > { %v9647_v13 = vpop.f32.mrf.mxu0 }
  0xf1   : > { %v1251_v14 = vpop.permute.xlu0 %1250  ;;  %v1253_v15 = vpop.permute.xlu1 %1252 }
  0xf2   : > { %7776 = vmatprep.mubr.msk.f32.mxu1 %vm358_vm0, %v1251_v14  ;;  %v9649_v14 = vpop.f32.mrf.mxu0 }
  0xf3   : > { %7777 = vmatmul.mubr.msk.f32.gmra.mxu1 %vm358_vm0, %v1253_v15 }
  0xf4   : > { %v9651_v15 = vpop.f32.mrf.mxu0 }
  0xf5   : > { %v950_v17 = vpop.permute.xlu0 %949  ;;  %v952_v18 = vpop.permute.xlu1 %951 }
  0xf6   : > { %7735 = vmatprep.mubr.msk.f32.mxu0 %vm358_vm0, %v950_v17  ;;  %v9653_v16 = vpop.f32.mrf.mxu0 }
  0xf7   : > { %7736 = vmatmul.mubr.msk.f32.gmra.mxu0 %vm358_vm0, %v952_v18 }
  0xf8   : > { %v9655_v17 = vpop.f32.mrf.mxu0 }
  0xf9   : > { %v1255_v23 = vpop.permute.xlu0 %1254  ;;  %v1257_v24 = vpop.permute.xlu1 %1256 }
  0xfa   : > { %7779 = vmatprep.mubr.msk.f32.mxu1 %vm358_vm0, %v1255_v23  ;;  %v9657_v18 = vpop.f32.mrf.mxu0 }
  0xfb   : > { %7780 = vmatmul.mubr.msk.f32.gmra.mxu1 %vm358_vm0, %v1257_v24 }
  0xfc   : > { %v9659_v20 = vpop.f32.mrf.mxu0 }
  0xfd   : > { %v954_v29 = vpop.permute.xlu0 %953  ;;  %v956_v30 = vpop.permute.xlu1 %955 }
  0xfe   : > { %7738 = vmatprep.mubr.msk.f32.mxu0 %vm358_vm0, %v954_v29  ;;  %v9661_v23 = vpop.f32.mrf.mxu0 }
  0xff   : > { %7739 = vmatmul.mubr.msk.f32.gmra.mxu0 %vm358_vm0, %v956_v30 }
 0x100   : > { %v9665_v26 = vpop.f32.mrf.mxu0 }
 0x101   : > { %v1259_v33 = vpop.permute.xlu0 %1258  ;;  %v1261_v34 = vpop.permute.xlu1 %1260 }
 0x102   : > { %7782 = vmatprep.mubr.msk.f32.mxu1 %vm358_vm0, %v1259_v33  ;;  %v9671_v29 = vpop.f32.mrf.mxu0 }
 0x103   : > { %7783 = vmatmul.mubr.msk.f32.gmra.mxu1 %vm358_vm0, %v1261_v34 }
 0x104   : > { %v9677_v32 = vpop.f32.mrf.mxu0 }
 0x105   : > { %v958_v39 = vpop.permute.xlu0 %957 }
 0x106   : > { %v960_v40 = vpop.permute.xlu1 %959  ;;  %7741 = vmatprep.mubr.msk.f32.mxu0 %vm358_vm0, %v958_v39  ;;  %v9683_v35 = vpop.f32.mrf.mxu0 }
 0x107   : > { %7742 = vmatmul.mubr.msk.f32.gmra.mxu0 %vm358_vm0, %v960_v40 }
 0x108   : > { %v9689_v38 = vpop.f32.mrf.mxu0 }
 0x109   : > { %v1263_v43 = vpop.permute.xlu0 %1262 }
 0x10a   : > { %v1265_v46 = vpop.permute.xlu1 %1264  ;;  %7785 = vmatprep.mubr.msk.f32.mxu1 %vm358_vm0, %v1263_v43  ;;  %v9695_v41 = vpop.f32.mrf.mxu0 }
 0x10b   : > { %7786 = vmatmul.mubr.msk.f32.gmra.mxu1 %vm358_vm0, %v1265_v46 }
 0x10c   : > { %v9701_v44 = vpop.f32.mrf.mxu0 }
 0x10d   : > { %v962_v49 = vpop.permute.xlu0 %961 }
 0x10e   : > { %v964_v50 = vpop.permute.xlu1 %963  ;;  %7744 = vmatprep.mubr.msk.f32.mxu0 %vm358_vm0, %v962_v49  ;;  %v9707_v47 = vpop.f32.mrf.mxu0 }
 0x10f   : > { %7745 = vmatmul.mubr.msk.f32.gmra.mxu0 %vm358_vm0, %v964_v50  ;;  %12646 = vst [vmem:[#allocation5_spill] sm:$0xff] %v9707_v47 }
 0x110   : > { %v9713_v50 = vpop.f32.mrf.mxu0 }
 0x111   : > { %v966_v54 = vpop.permute.xlu0 %965  ;;  %12647 = vst [vmem:[#allocation6_spill] sm:$0xff] %v9713_v50 }
 0x112   : > { %v968_v55 = vpop.permute.xlu1 %967  ;;  %7747 = vmatprep.mubr.msk.f32.mxu0 %vm358_vm0, %v966_v54 }
 0x113   : > { %7748 = vmatmul.mubr.msk.f32.gmra.mxu0 %vm358_vm0, %v968_v55 }
 0x115   : > { %v1267_v59 = vpop.permute.xlu0 %1266 }
 0x116   : > { %v1269_v60 = vpop.permute.xlu1 %1268  ;;  %7788 = vmatprep.mubr.msk.f32.mxu1 %vm358_vm0, %v1267_v59 }
 0x117   : > { %7789 = vmatmul.mubr.msk.f32.gmra.mxu1 %vm358_vm0, %v1269_v60  ;;  %v9724_v60 = vld [vmem:[%s12636_s2] ss:$0 sm:$0xff] }
 0x119   : > { %v1271_v63 = vpop.permute.xlu0 %1270 }
 0x11a   : > { %v1273_v2 = vpop.permute.xlu1 %1272  ;;  %7791 = vmatprep.mubr.msk.f32.mxu1 %vm358_vm0, %v1271_v63 }
 0x11b   : > { %7792 = vmatmul.mubr.msk.f32.gmra.mxu1 %vm358_vm0, %v1273_v2 }
 0x152   : > { %v7672_v19 = vpop.f32.mrf.mxu1 }
 0x153   : > { %v898_v54 = vmax.f32 %v7628_v4, %v7672_v19 }
 0x154   : > { %v778_v21 = vpop.f32.mrf.mxu1 }
 0x155   : > { %v897_v57 = vmax.f32 %v497_v5, %v778_v21 }
 0x156   : > { %v7675_v22 = vpop.f32.mrf.mxu1 }
 0x157   : > { %v900_v3 = vmax.f32 %v9630_v7, %v7675_v22 }
 0x158   : > { %v788_v24 = vpop.f32.mrf.mxu1 }
 0x159   : > { %v899_v21 = vmax.f32 %v9639_v9, %v788_v24 }
 0x15a   : > { %v9663_v25 = vpop.f32.mrf.mxu1 }
 0x15c   : > { %v9667_v27 = vpop.f32.mrf.mxu1 }
 0x15e   : > { %v9669_v28 = vpop.f32.mrf.mxu1 }
 0x160   : > { %v9673_v30 = vpop.f32.mrf.mxu1 }
 0x162   : > { %v9675_v31 = vpop.f32.mrf.mxu1 }
 0x164   : > { %v9679_v33 = vpop.f32.mrf.mxu1 }
 0x166   : > { %v9681_v34 = vpop.f32.mrf.mxu1 }
 0x168   : > { %v9685_v36 = vpop.f32.mrf.mxu1 }
 0x16a   : > { %v9687_v37 = vpop.f32.mrf.mxu1 }
 0x16c   : > { %v9691_v39 = vpop.f32.mrf.mxu1 }
 0x16e   : > { %v9693_v40 = vpop.f32.mrf.mxu1 }
 0x170   : > { %v9697_v42 = vpop.f32.mrf.mxu1 }
 0x172   : > { %v9699_v43 = vpop.f32.mrf.mxu1 }
 0x174   : > { %v9703_v45 = vpop.f32.mrf.mxu1 }
 0x176   : > { %v9705_v46 = vpop.f32.mrf.mxu1 }
 0x178   : > { %v9709_v48 = vpop.f32.mrf.mxu1 }
 0x17a   : > { %v9711_v49 = vpop.f32.mrf.mxu1 }
 0x17c   : > { %v9715_v51 = vpop.f32.mrf.mxu1 }
 0x17e   : > { %v9717_v52 = vpop.f32.mrf.mxu1 }
 0x17f   : > { %12648 = vst [vmem:[#allocation7_spill] sm:$0xff] %v9717_v52  ;;  %v7716_v53 = vpop.f32.mrf.mxu0 }
 0x180   : > { %v9719_v55 = vpop.f32.mrf.mxu1  ;;  %v1203_v58 = vmax.f32 %v898_v54, %v7716_v53 }
 0x181   : > { %12649 = vst [vmem:[#allocation8_spill] sm:$0xff] %v9719_v55  ;;  %v1083_v56 = vpop.f32.mrf.mxu0 }
 0x182   : > { %v1202_v61 = vmax.f32 %v897_v57, %v1083_v56 }
 0x183   : > { %v7760_v59 = vpop.f32.mrf.mxu1 }
 0x184   : > { %v1508_v62 = vmax.f32 %v1203_v58, %v7760_v59 }
 0x185   : > { %v1388_v63 = vpop.f32.mrf.mxu1 }
 0x186   : > { %v1539_v0 = vadd.f32 %v9724_v60, %v1508_v62  ;;  %v1507_v1 = vmax.f32 %v1202_v61, %v1388_v63 }
 0x187   : > { %v7719_v2 = vpop.f32.mrf.mxu0 }
 0x188   : > { %v9728_v4 = vmax.f32 %v1539_v0, 0.0  ;;  %v1538_v5 = vadd.f32 %v9724_v60, %v1507_v1  ;;  %v1205_v54 = vmax.f32 %v900_v3, %v7719_v2  ;;  %v902_v0 = vmax.f32 %v9641_v10, %v9663_v25 }
 0x189   : > { %v1093_v19 = vpop.f32.mrf.mxu0 }
 0x18a   : > { %v9732_v53 = vmax.f32 %v1538_v5, 0.0  ;;  %v1204_v56 = vmax.f32 %v899_v21, %v1093_v19  ;;  %v1620_v7 = vrot.slane %v9728_v4, 1  ;;  %v2206_v61 = vrot.slane %v9728_v4, 4 }
 0x18b   : > { %v7763_v47 = vpop.f32.mrf.mxu1  ;;  %v901_v5 = vmax.f32 %v9643_v11, %v9667_v27  ;;  %v6267_v11 = vld [vmem:[%s12637_s3 + $0x1e8] sm:$0xff] }
 0x18c   : > { %v1510_v57 = vmax.f32 %v1205_v54, %v7763_v47  ;;  %7870 = vmatprep.mubr.f32.mxu1 %v9732_v53  ;;  %v1619_v58 = vrot.slane %v9732_v53, 1  ;;  %v2205_v59 = vrot.slane %v9732_v53, 4 }
 0x18d   : > { %v1398_v22 = vpop.f32.mrf.mxu1 }
 0x18e   : > { %v1541_v9 = vadd.f32 %v9724_v60, %v1510_v57  ;;  %v1509_v24 = vmax.f32 %v1204_v56, %v1398_v22  ;;  %v1621_v62 = vsel %vm1618_vm1, %v1619_v58, %v1620_v7  ;;  %v9742_v47 = vsel %vm2204_vm2, %v2205_v59, %v2206_v61  ;;  %v6268_v56 = vld [vmem:[%s12637_s3 + $0x1f0] sm:$0xff] }
 0x18f   : > { %v7722_v63 = vpop.f32.mrf.mxu0  ;;  %7826 = vmatprep.mubr.f32.mxu0 %v1621_v62  ;;  %v6252_v61 = vld [vmem:[%s12637_s3 + $0x170] sm:$0xff] }
 0x190   : > { %v9746_v1 = vmax.f32 %v1541_v9, 0.0  ;;  %v1540_v2 = vadd.f32 %v9724_v60, %v1509_v24  ;;  %v1207_v21 = vmax.f32 %v902_v0, %v7722_v63  ;;  %v904_v24 = vmax.f32 %v9645_v12, %v9669_v28  ;;  %v6251_v0 = vld [vmem:[%s12637_s3 + $0x168] sm:$0xff]  ;;  %v6250_v28 = vld [vmem:[%s12637_s3 + $0x160] sm:$0xff] }
 0x191   : > { %v1103_v3 = vpop.f32.mrf.mxu0 }
 0x192   : > { %v9751_v19 = vmax.f32 %v1540_v2, 0.0  ;;  %v1206_v57 = vmax.f32 %v901_v5, %v1103_v3  ;;  %v1623_v25 = vrot.slane %v9746_v1, 1  ;;  %v903_v3 = vmax.f32 %v9647_v13, %v9673_v30 }
 0x193   : > { %v7766_v54 = vpop.f32.mrf.mxu1 }
 0x194   : > { %v1512_v58 = vmax.f32 %v1207_v21, %v7766_v54  ;;  %7871 = vmatmul.mubr.f32.vlgmr.msra.gmra.mxu1 %v9751_v19  ;;  %v1622_v10 = vrot.slane %v9751_v19, 1 }
 0x195   : > { %v1408_v7 = vpop.f32.mrf.mxu1  ;;  %7927 = vmatpush3.msra.mxu1 %v9628_v6  ;;  %v6266_v6 = vld [vmem:[%s12637_s3 + $0x1e0] sm:$0xff] }
 0x196   : > { %v1543_v27 = vadd.f32 %v9724_v60, %v1512_v58  ;;  %v1511_v22 = vmax.f32 %v1206_v57, %v1408_v7  ;;  %v9765_v59 = vsel %vm1618_vm1, %v1622_v10, %v1623_v25  ;;  %7928 = vmatprep.subr.mxu1 %v6268_v56  ;;  %v6264_v57 = vld [vmem:[%s12637_s3 + $0x1d0] sm:$0xff]  ;;  %v6249_v10 = vld [vmem:[%s12637_s3 + $0x158] sm:$0xff] }
 0x197   : > { %v7725_v9 = vpop.f32.mrf.mxu0  ;;  %7827 = vmatmul.mubr.f32.vlgmr.msra.gmra.mxu0 %v9765_v59  ;;  %7929 = vmatpush3.msra.mxu1 %v6268_v56 }
 0x198   : > { %v9776_v62 = vmax.f32 %v1543_v27, 0.0  ;;  %v1542_v63 = vadd.f32 %v9724_v60, %v1511_v22  ;;  %7883 = vmatpush3.msra.mxu0 %v9636_v8  ;;  %7930 = vmatprep.subr.mxu1 %v6267_v11  ;;  %v1209_v12 = vmax.f32 %v904_v24, %v7725_v9  ;;  %v6265_v8 = vld [vmem:[%s12637_s3 + $0x1d8] sm:$0xff]  ;;  %v6263_v27 = vld [vmem:[%s12637_s3 + $0x1c8] sm:$0xff]  ;;  %v906_v9 = vmax.f32 %v9649_v14, %v9675_v31 }
 0x199   : > { %v1113_v2 = vpop.f32.mrf.mxu0  ;;  %7884 = vmatprep.subr.mxu0 %v6252_v61  ;;  %7931 = vmatpush3.msra.mxu1 %v6267_v11  ;;  %v905_v14 = vmax.f32 %v9651_v15, %v9679_v33 }
 0x19a   : > { %v9785_v5 = vmax.f32 %v1542_v63, 0.0  ;;  %7885 = vmatpush3.msra.mxu0 %v6252_v61  ;;  %7932 = vmatprep.subr.mxu1 %v6266_v6  ;;  %v1208_v54 = vmax.f32 %v903_v3, %v1113_v2  ;;  %v1626_v30 = vrot.slane %v9776_v62, 1  ;;  %v6248_v61 = vld [vmem:[%s12637_s3 + $0x150] sm:$0xff]  ;;  %v6262_v63 = vld [vmem:[%s12637_s3 + $0x1c0] sm:$0xff]  ;;  %v6247_v2 = vld [vmem:[%s12637_s3 + $0x148] sm:$0xff] }
 0x19b   : > { %v7769_v21 = vpop.f32.mrf.mxu1  ;;  %7886 = vmatprep.subr.mxu0 %v6251_v0  ;;  %7933 = vmatpush3.msra.mxu1 %v6266_v6 }
 0x19c   : > { %v1514_v56 = vmax.f32 %v1209_v12, %v7769_v21  ;;  %7873 = vmatprep.mubr.f32.mxu1 %v9785_v5  ;;  %v1625_v13 = vrot.slane %v9785_v5, 1  ;;  %7887 = vmatpush3.msra.mxu0 %v6251_v0 }
 0x19d   : > { %v1418_v58 = vpop.f32.mrf.mxu1  ;;  %7934 = vmatprep.subr.mxu1 %v6265_v8  ;;  %7888 = vmatprep.subr.mxu0 %v6250_v28 }
 0x19e   : > { %v1545_v25 = vadd.f32 %v9724_v60, %v1514_v56  ;;  %v1513_v7 = vmax.f32 %v1208_v54, %v1418_v58  ;;  %v9804_v11 = vsel %vm1618_vm1, %v1625_v13, %v1626_v30  ;;  %7935 = vmatpush3.msra.mxu1 %v6265_v8  ;;  %7889 = vmatpush3.msra.mxu0 %v6250_v28  ;;  %v6261_v8 = vld [vmem:[%s12637_s3 + $0x1b8] sm:$0xff]  ;;  %v6246_v28 = vld [vmem:[%s12637_s3 + $0x140] sm:$0xff]  ;;  %v6260_v13 = vld [vmem:[%s12637_s3 + $0x1b0] sm:$0xff] }
 0x19f   : > { %v7728_v22 = vpop.f32.mrf.mxu0  ;;  %7829 = vmatprep.mubr.f32.mxu0 %v9804_v11  ;;  %7936 = vmatprep.subr.mxu1 %v6264_v57 }
 0x1a0   : > { %v9815_v6 = vmax.f32 %v1545_v25, 0.0  ;;  %v1544_v24 = vadd.f32 %v9724_v60, %v1513_v7  ;;  %7890 = vmatprep.subr.mxu0 %v6249_v10  ;;  %7937 = vmatpush3.msra.mxu1 %v6264_v57  ;;  %v1211_v3 = vmax.f32 %v906_v9, %v7728_v22  ;;  %v6259_v7 = vld [vmem:[%s12637_s3 + $0x1a8] sm:$0xff]  ;;  %v6244_v9 = vld [vmem:[%s12637_s3 + $0x130] sm:$0xff] }
 0x1a1   : > { %v1123_v0 = vpop.f32.mrf.mxu0  ;;  %7891 = vmatpush3.msra.mxu0 %v6249_v10  ;;  %7938 = vmatprep.subr.mxu1 %v6263_v27  ;;  %v6245_v10 = vld [vmem:[%s12637_s3 + $0x138] sm:$0xff] }
 0x1a2   : > { %v9826_v31 = vmax.f32 %v1544_v24, 0.0  ;;  %7892 = vmatprep.subr.mxu0 %v6248_v61  ;;  %7939 = vmatpush3.msra.mxu1 %v6263_v27  ;;  %v1210_v21 = vmax.f32 %v905_v14, %v1123_v0  ;;  %v1629_v33 = vrot.slane %v9815_v6, 1  ;;  %v908_v27 = vmax.f32 %v9653_v16, %v9681_v34  ;;  %v6258_v16 = vld [vmem:[%s12637_s3 + $0x1a0] sm:$0xff]  ;;  %v6243_v34 = vld [vmem:[%s12637_s3 + $0x128] sm:$0xff] }
 0x1a3   : > { %v7772_v12 = vpop.f32.mrf.mxu1  ;;  %7893 = vmatpush3.msra.mxu0 %v6248_v61  ;;  %7940 = vmatprep.subr.mxu1 %v6262_v63 }
 0x1a4   : > { %v1516_v54 = vmax.f32 %v1211_v3, %v7772_v12  ;;  %7874 = vmatmul.mubr.f32.gmra.mxu1 %v9826_v31  ;;  %v1628_v15 = vrot.slane %v9826_v31, 1  ;;  %7894 = vmatprep.subr.mxu0 %v6247_v2 }
 0x1a5   : > { %v1428_v56 = vpop.f32.mrf.mxu1  ;;  %7941 = vmatpush3.msra.mxu1 %v6262_v63  ;;  %7895 = vmatpush3.msra.mxu0 %v6247_v2  ;;  %v907_v63 = vmax.f32 %v9655_v17, %v9685_v36 }
 0x1a6   : > { %v1547_v30 = vadd.f32 %v9724_v60, %v1516_v54  ;;  %v1515_v57 = vmax.f32 %v1210_v21, %v1428_v56  ;;  %v9842_v58 = vsel %vm1618_vm1, %v1628_v15, %v1629_v33  ;;  %7942 = vmatprep.subr.mxu1 %v6261_v8  ;;  %7896 = vmatprep.subr.mxu0 %v6246_v28  ;;  %v6242_v21 = vld [vmem:[%s12637_s3 + $0x120] sm:$0xff]  ;;  %v6256_v56 = vld [vmem:[%s12637_s3 + $0x190] sm:$0xff] }
 0x1a7   : > { %v7731_v25 = vpop.f32.mrf.mxu0  ;;  %7830 = vmatmul.mubr.f32.gmra.mxu0 %v9842_v58  ;;  %7943 = vmatpush3.msra.mxu1 %v6261_v8  ;;  %v6257_v8 = vld [vmem:[%s12637_s3 + $0x198] sm:$0xff] }
 0x1a8   : > { %v9853_v22 = vmax.f32 %v1547_v30, 0.0  ;;  %v1546_v61 = vadd.f32 %v9724_v60, %v1515_v57  ;;  %7897 = vmatpush3.msra.mxu0 %v6246_v28  ;;  %7944 = vmatprep.subr.mxu1 %v6260_v13  ;;  %v1213_v2 = vmax.f32 %v908_v27, %v7731_v25  ;;  %v6241_v30 = vld [vmem:[%s12637_s3 + $0x118] sm:$0xff]  ;;  %v910_v57 = vmax.f32 %v9657_v18, %v9687_v37 }
 0x1a9   : > { %v1133_v24 = vpop.f32.mrf.mxu0  ;;  %7898 = vmatprep.subr.mxu0 %v6245_v10  ;;  %7945 = vmatpush3.msra.mxu1 %v6260_v13  ;;  %v909_v18 = vmax.f32 %v9659_v20, %v9691_v39 }
 0x1aa   : > { %v9861_v0 = vmax.f32 %v1546_v61, 0.0  ;;  %7899 = vmatpush3.msra.mxu0 %v6245_v10  ;;  %7946 = vmatprep.subr.mxu1 %v6259_v7  ;;  %v1212_v3 = vmax.f32 %v907_v63, %v1133_v24  ;;  %v1632_v36 = vrot.slane %v9853_v22, 1  ;;  %v6240_v61 = vld [vmem:[%s12637_s3 + $0x110] sm:$0xff]  ;;  %v6254_v63 = vld [vmem:[%s12637_s3 + $0x180] sm:$0xff] }
 0x1ab   : > { %v7775_v14 = vpop.f32.mrf.mxu1  ;;  %7900 = vmatprep.subr.mxu0 %v6244_v9  ;;  %7947 = vmatpush3.msra.mxu1 %v6259_v7  ;;  %v6255_v7 = vld [vmem:[%s12637_s3 + $0x188] sm:$0xff] }
 0x1ac   : > { %v1518_v12 = vmax.f32 %v1213_v2, %v7775_v14  ;;  %7876 = vmatprep.mubr.f32.mxu1 %v9861_v0  ;;  %v1631_v17 = vrot.slane %v9861_v0, 1  ;;  %7901 = vmatpush3.msra.mxu0 %v6244_v9  ;;  %v6239_v2 = vld [vmem:[%s12637_s3 + $0x108] sm:$0xff] }
 0x1ad   : > { %v1438_v28 = vpop.f32.mrf.mxu1  ;;  %7948 = vmatprep.subr.mxu1 %v6258_v16  ;;  %7902 = vmatprep.subr.mxu0 %v6243_v34 }
 0x1ae   : > { %v1549_v54 = vadd.f32 %v9724_v60, %v1518_v12  ;;  %v1517_v15 = vmax.f32 %v1212_v3, %v1438_v28  ;;  %v9880_v33 = vsel %vm1618_vm1, %v1631_v17, %v1632_v36  ;;  %7949 = vmatpush3.msra.mxu1 %v6258_v16  ;;  %7903 = vmatpush3.msra.mxu0 %v6243_v34  ;;  %v9916_v3 = vld [vmem:[%s12637_s3 + $0x2f8] sm:$0xff] }
 0x1af   : > { %v7734_v13 = vpop.f32.mrf.mxu0  ;;  %7832 = vmatprep.mubr.f32.mxu0 %v9880_v33  ;;  %7950 = vmatprep.subr.mxu1 %v6257_v8 }
 0x1b0   : > { %v9891_v10 = vmax.f32 %v1549_v54, 0.0  ;;  %v1548_v25 = vadd.f32 %v9724_v60, %v1517_v15  ;;  %7904 = vmatprep.subr.mxu0 %v6242_v21  ;;  %7951 = vmatpush3.msra.mxu1 %v6257_v8  ;;  %v1215_v9 = vmax.f32 %v910_v57, %v7734_v13  ;;  %v6238_v8 = vld [vmem:[%s12637_s3 + $0x100] sm:$0xff] }
 0x1b1   : > { %v1143_v27 = vpop.f32.mrf.mxu0  ;;  %7905 = vmatpush3.msra.mxu0 %v6242_v21  ;;  %7952 = vmatprep.subr.mxu1 %v6256_v56  ;;  %v912_v21 = vmax.f32 %v9661_v23, %v9693_v40 }
 0x1b2   : > { %v9902_v37 = vmax.f32 %v1548_v25, 0.0  ;;  %7906 = vmatprep.subr.mxu0 %v6241_v30  ;;  %7953 = vmatpush3.msra.mxu1 %v6256_v56  ;;  %v1214_v16 = vmax.f32 %v909_v18, %v1143_v27  ;;  %v1635_v39 = vrot.slane %v9891_v10, 1  ;;  %v6285_v56 = vld [vmem:[%s12637_s3 + $0x278] sm:$0xff] }
 0x1b3   : > { %v7778_v24 = vpop.f32.mrf.mxu1  ;;  %7907 = vmatpush3.msra.mxu0 %v6241_v30  ;;  %7954 = vmatprep.subr.mxu1 %v6255_v7  ;;  %v911_v30 = vmax.f32 %v9665_v26, %v9697_v42 }
 0x1b4   : > { %v1520_v34 = vmax.f32 %v1215_v9, %v7778_v24  ;;  %7877 = vmatmul.mubr.f32.gmra.mxu1 %v9902_v37  ;;  %v1634_v20 = vrot.slane %v9902_v37, 1  ;;  %7908 = vmatprep.subr.mxu0 %v6240_v61 }
 0x1b5   : > { %v1448_v14 = vpop.f32.mrf.mxu1  ;;  %7955 = vmatpush3.msra.mxu1 %v6255_v7  ;;  %7909 = vmatpush3.msra.mxu0 %v6240_v61 }
 0x1b6   : > { %v1551_v12 = vadd.f32 %v9724_v60, %v1520_v34  ;;  %v1519_v17 = vmax.f32 %v1214_v16, %v1448_v14  ;;  %v9920_v36 = vsel %vm1618_vm1, %v1634_v20, %v1635_v39  ;;  %7956 = vmatprep.subr.mxu1 %v6254_v63  ;;  %7910 = vmatprep.subr.mxu0 %v6239_v2  ;;  %v2043_v34 = vrot.slane %v9728_v4, 3 }
 0x1b7   : > { %v7737_v28 = vpop.f32.mrf.mxu0  ;;  %7833 = vmatmul.mubr.f32.gmra.mxu0 %v9920_v36  ;;  %7957 = vmatpush3.msra.mxu1 %v6254_v63  ;;  %v1879_v20 = vrot.slane %v9732_v53, 2  ;;  %v2045_v39 = vrot.slane %v9751_v19, 3 }
 0x1b8   : > { %v9928_v54 = vmax.f32 %v1551_v12, 0.0  ;;  %v1550_v15 = vadd.f32 %v9724_v60, %v1519_v17  ;;  %7911 = vmatpush3.msra.mxu0 %v6239_v2  ;;  %8014 = vmatprep.subr.mxu1 %v9916_v3  ;;  %v1217_v25 = vmax.f32 %v912_v21, %v7737_v28  ;;  %v2042_v2 = vrot.slane %v9732_v53, 3 }
 0x1b9   : > { %v1153_v13 = vpop.f32.mrf.mxu0  ;;  %7912 = vmatprep.subr.mxu0 %v6238_v8  ;;  %v1880_v28 = vrot.slane %v9728_v4, 2  ;;  %v2046_v21 = vrot.slane %v9746_v1, 3  ;;  %v2049_v53 = vrot.slane %v9776_v62, 3  ;;  %v6300_v4 = vld [vmem:[%s12637_s3 + $0x2f0] sm:$0xff] }
 0x1ba   : > { %v9937_v57 = vmax.f32 %v1550_v15, 0.0  ;;  %7913 = vmatpush3.msra.mxu0 %v6238_v8  ;;  %v1216_v40 = vmax.f32 %v911_v30, %v1153_v13  ;;  %v1638_v61 = vrot.slane %v9928_v54, 1  ;;  %v2044_v14 = vsel %vm2041_vm3, %v2042_v2, %v2043_v34 }
 0x1bb   : > { %v7781_v23 = vpop.f32.mrf.mxu1  ;;  %7970 = vmatprep.subr.mxu0 %v6285_v56  ;;  %v2048_v8 = vrot.slane %v9785_v5, 3  ;;  %v1882_v13 = vrot.slane %v9751_v19, 2  ;;  %v1881_v30 = vsel %vm1878_vm4, %v1879_v20, %v1880_v28  ;;  %v2055_v20 = vrot.slane %v9853_v22, 3 }
 0x1bc   : > { %v1522_v7 = vmax.f32 %v1217_v25, %v7781_v23  ;;  %7879 = vmatprep.mubr.f32.mxu1 %v9937_v57  ;;  %v1637_v27 = vrot.slane %v9937_v57, 1  ;;  %v9971_v25 = vsel %vm2041_vm3, %v2045_v39, %v2046_v21  ;;  %v1888_v39 = vrot.slane %v9826_v31, 2  ;;  %v6297_v21 = vld [vmem:[%s12637_s3 + $0x2d8] sm:$0xff] }
 0x1bd   : > { %v1458_v18 = vpop.f32.mrf.mxu1  ;;  %v9978_v23 = vsel %vm2041_vm3, %v2048_v8, %v2049_v53  ;;  %v1891_v8 = vrot.slane %v9861_v0, 2  ;;  %v2057_v28 = vrot.slane %v9902_v37, 3 }
 0x1be   : > { %v1553_v9 = vadd.f32 %v9724_v60, %v1522_v7  ;;  %v1521_v24 = vmax.f32 %v1216_v40, %v1458_v18  ;;  %v9944_v26 = vsel %vm1618_vm1, %v1637_v27, %v1638_v61  ;;  %v1883_v40 = vrot.slane %v9746_v1, 2  ;;  %v6299_v61 = vld [vmem:[%s12637_s3 + $0x2e8] sm:$0xff] }
 0x1bf   : > { %7835 = vmatprep.mubr.f32.mxu0 %v9944_v26  ;;  %v1885_v7 = vrot.slane %v9785_v5, 2  ;;  %v2051_v27 = vrot.slane %v9826_v31, 3 }
 0x1c0   : > { %v9947_v42 = vmax.f32 %v1553_v9, 0.0  ;;  %v1552_v63 = vadd.f32 %v9724_v60, %v1521_v24  ;;  %v9989_v18 = vsel %vm1878_vm4, %v1882_v13, %v1883_v40  ;;  %v1886_v9 = vrot.slane %v9776_v62, 2  ;;  %v6282_v40 = vld [vmem:[%s12637_s3 + $0x260] sm:$0xff] }
 0x1c1   : > { %v2052_v24 = vrot.slane %v9815_v6, 3  ;;  %v1892_v13 = vrot.slane %v9853_v22, 2 }
 0x1c2   : > { %v9951_v16 = vmax.f32 %v1552_v63, 0.0  ;;  %v1641_v17 = vrot.slane %v9947_v42, 1  ;;  %v2054_v63 = vrot.slane %v9861_v0, 3  ;;  %v9999_v2 = vsel %vm1878_vm4, %v1885_v7, %v1886_v9 }
 0x1c3   : > { %v10002_v34 = vsel %vm2041_vm3, %v2051_v27, %v2052_v24  ;;  %v10035_v7 = vsel %vm1878_vm4, %v1891_v8, %v1892_v13  ;;  %v1894_v9 = vrot.slane %v9902_v37, 2  ;;  %v6296_v24 = vld [vmem:[%s12637_s3 + $0x2d0] sm:$0xff]  ;;  %v1898_v8 = vrot.slane %v9928_v54, 2 }
 0x1c4   : > { %7880 = vmatmul.mubr.f32.gmra.mxu1 %v9951_v16  ;;  %v1640_v12 = vrot.slane %v9951_v16, 1 }
 0x1c5   : > { %7958 = vmatprep.mubr.f32.mxu1 %v2044_v14  ;;  %v6298_v14 = vld [vmem:[%s12637_s3 + $0x2e0] sm:$0xff] }
 0x1c6   : > { %v9964_v15 = vsel %vm1618_vm1, %v1640_v12, %v1641_v17  ;;  %v10015_v12 = vsel %vm2041_vm3, %v2054_v63, %v2055_v20  ;;  %v1889_v17 = vrot.slane %v9815_v6, 2  ;;  %v6281_v63 = vld [vmem:[%s12637_s3 + $0x258] sm:$0xff]  ;;  %v1895_v20 = vrot.slane %v9891_v10, 2 }
 0x1c7   : > { %7836 = vmatmul.mubr.f32.gmra.mxu0 %v9964_v15 }
 0x1c8   : > { %7914 = vmatprep.mubr.f32.mxu0 %v1881_v30  ;;  %7959 = vmatmul.mubr.f32.vlgmr.msra.gmra.mxu1 %v9971_v25  ;;  %v10025_v53 = vsel %vm1878_vm4, %v1888_v39, %v1889_v17  ;;  %v2058_v30 = vrot.slane %v9891_v10, 3  ;;  %v1897_v39 = vrot.slane %v9937_v57, 2  ;;  %v10061_v17 = vsel %vm1878_vm4, %v1894_v9, %v1895_v20  ;;  %v6278_v20 = vld [vmem:[%s12637_s3 + $0x240] sm:$0xff] }
 0x1c9   : > { %8015 = vmatpush3.msra.mxu1 %v9916_v3  ;;  %7961 = vmatprep.mubr.f32.mxu1 %v9978_v23  ;;  %v6284_v3 = vld [vmem:[%s12637_s3 + $0x270] sm:$0xff]  ;;  %v1901_v9 = vrot.slane %v9947_v42, 2 }
 0x1ca   : > { %8016 = vmatprep.subr.mxu1 %v6300_v4  ;;  %v10038_v27 = vsel %vm2041_vm3, %v2057_v28, %v2058_v30  ;;  %v2064_v28 = vrot.slane %v9947_v42, 3  ;;  %v10070_v13 = vsel %vm1878_vm4, %v1897_v39, %v1898_v8  ;;  %v6292_v39 = vld [vmem:[%s12637_s3 + $0x2b0] sm:$0xff] }
 0x1cb   : > { %8017 = vmatpush3.msra.mxu1 %v6300_v4  ;;  %7915 = vmatmul.mubr.f32.vlgmr.msra.gmra.mxu0 %v9989_v18  ;;  %v2060_v4 = vrot.slane %v9937_v57, 3  ;;  %v6276_v8 = vld [vmem:[%s12637_s3 + $0x230] sm:$0xff] }
 0x1cc   : > { %7971 = vmatpush3.msra.mxu0 %v6285_v56  ;;  %8018 = vmatprep.subr.mxu1 %v6299_v61  ;;  %v6283_v56 = vld [vmem:[%s12637_s3 + $0x268] sm:$0xff] }
 0x1cd   : > { %7917 = vmatprep.mubr.f32.mxu0 %v9999_v2  ;;  %7962 = vmatmul.mubr.f32.gmra.mxu1 %v10002_v34 }
 0x1ce   : > { %7972 = vmatprep.subr.mxu0 %v6284_v3  ;;  %8019 = vmatpush3.msra.mxu1 %v6299_v61  ;;  %v2061_v61 = vrot.slane %v9928_v54, 3 }
 0x1cf   : > { %7964 = vmatprep.mubr.f32.mxu1 %v10015_v12  ;;  %7973 = vmatpush3.msra.mxu0 %v6284_v3 }
 0x1d0   : > { %8020 = vmatprep.subr.mxu1 %v6298_v14  ;;  %7974 = vmatprep.subr.mxu0 %v6283_v56  ;;  %v10051_v3 = vsel %vm2041_vm3, %v2060_v4, %v2061_v61  ;;  %v6294_v4 = vld [vmem:[%s12637_s3 + $0x2c0] sm:$0xff]  ;;  %v6279_v61 = vld [vmem:[%s12637_s3 + $0x248] sm:$0xff] }
 0x1d1   : > { %8021 = vmatpush3.msra.mxu1 %v6298_v14  ;;  %7918 = vmatmul.mubr.f32.gmra.mxu0 %v10025_v53  ;;  %v2063_v14 = vrot.slane %v9951_v16, 3 }
 0x1d2   : > { %7975 = vmatpush3.msra.mxu0 %v6283_v56  ;;  %8022 = vmatprep.subr.mxu1 %v6297_v21  ;;  %v6295_v56 = vld [vmem:[%s12637_s3 + $0x2c8] sm:$0xff] }
 0x1d3   : > { %7920 = vmatprep.mubr.f32.mxu0 %v10035_v7  ;;  %7965 = vmatmul.mubr.f32.gmra.mxu1 %v10038_v27  ;;  %v10073_v30 = vsel %vm2041_vm3, %v2063_v14, %v2064_v28  ;;  %v6277_v14 = vld [vmem:[%s12637_s3 + $0x238] sm:$0xff]  ;;  %v6290_v28 = vld [vmem:[%s12637_s3 + $0x2a0] sm:$0xff] }
 0x1d4   : > { %7976 = vmatprep.subr.mxu0 %v6282_v40  ;;  %8023 = vmatpush3.msra.mxu1 %v6297_v21  ;;  %v6280_v21 = vld [vmem:[%s12637_s3 + $0x250] sm:$0xff] }
 0x1d5   : > { %7967 = vmatprep.mubr.f32.mxu1 %v10051_v3  ;;  %7977 = vmatpush3.msra.mxu0 %v6282_v40  ;;  %v1900_v40 = vrot.slane %v9951_v16, 2 }
 0x1d6   : > { %8024 = vmatprep.subr.mxu1 %v6296_v24  ;;  %7978 = vmatprep.subr.mxu0 %v6281_v63 }
 0x1d7   : > { %8025 = vmatpush3.msra.mxu1 %v6296_v24  ;;  %7921 = vmatmul.mubr.f32.gmra.mxu0 %v10061_v17  ;;  %v6293_v24 = vld [vmem:[%s12637_s3 + $0x2b8] sm:$0xff] }
 0x1d8   : > { %7979 = vmatpush3.msra.mxu0 %v6281_v63  ;;  %8026 = vmatprep.subr.mxu1 %v6295_v56  ;;  %v10090_v63 = vsel %vm1878_vm4, %v1900_v40, %v1901_v9  ;;  %v6288_v40 = vld [vmem:[%s12637_s3 + $0x290] sm:$0xff]  ;;  %v6287_v9 = vld [vmem:[%s12637_s3 + $0x288] sm:$0xff] }
 0x1d9   : > { %7923 = vmatprep.mubr.f32.mxu0 %v10070_v13  ;;  %7968 = vmatmul.mubr.f32.gmra.mxu1 %v10073_v30 }
 0x1da   : > { %7980 = vmatprep.subr.mxu0 %v6280_v21  ;;  %8027 = vmatpush3.msra.mxu1 %v6295_v56  ;;  %v6291_v56 = vld [vmem:[%s12637_s3 + $0x2a8] sm:$0xff] }
 0x1db   : > { %7981 = vmatpush3.msra.mxu0 %v6280_v21  ;;  %8028 = vmatprep.subr.mxu1 %v6294_v4  ;;  %v6289_v21 = vld [vmem:[%s12637_s3 + $0x298] sm:$0xff] }
 0x1dc   : > { %8046 = vmatprep.mubr.f32.mxu1 %v9751_v19  ;;  %7982 = vmatprep.subr.mxu0 %v6279_v61 }
 0x1dd   : > { %8029 = vmatpush3.msra.mxu1 %v6294_v4  ;;  %7924 = vmatmul.mubr.f32.gmra.mxu0 %v10090_v63  ;;  %v6274_v4 = vld [vmem:[%s12637_s3 + $0x220] sm:$0xff] }
 0x1de   : > { %7983 = vmatpush3.msra.mxu0 %v6279_v61  ;;  %8030 = vmatprep.subr.mxu1 %v6293_v24  ;;  %v6273_v61 = vld [vmem:[%s12637_s3 + $0x218] sm:$0xff] }
 0x1df   : > { %7984 = vmatprep.subr.mxu0 %v6278_v20  ;;  %8002 = vmatprep.mubr.f32.mxu0 %v9742_v47  ;;  %v6275_v47 = vld [vmem:[%s12637_s3 + $0x228] sm:$0xff] }
 0x1e0   : > { %8031 = vmatpush3.msra.mxu1 %v6293_v24  ;;  %7985 = vmatpush3.msra.mxu0 %v6278_v20  ;;  %v6272_v24 = vld [vmem:[%s12637_s3 + $0x210] sm:$0xff]  ;;  %v6286_v20 = vld [vmem:[%s12637_s3 + $0x280] sm:$0xff] }
 0x1e1   : > { %8032 = vmatprep.subr.mxu1 %v6292_v39  ;;  %7986 = vmatprep.subr.mxu0 %v6277_v14 }
 0x1e2   : > { %8033 = vmatpush3.msra.mxu1 %v6292_v39  ;;  %7987 = vmatpush3.msra.mxu0 %v6277_v14  ;;  %v6271_v39 = vld [vmem:[%s12637_s3 + $0x208] sm:$0xff]  ;;  %v6333_v14 = vld [vmem:[%s12637_s3 + $0x3f8] sm:$0xff] }
 0x1e3   : > { %8034 = vmatprep.subr.mxu1 %v6291_v56  ;;  %7988 = vmatprep.subr.mxu0 %v6276_v8 }
 0x1e4   : > { %8035 = vmatpush3.msra.mxu1 %v6291_v56  ;;  %7989 = vmatpush3.msra.mxu0 %v6276_v8  ;;  %v10142_v56 = vpop.f32.mrf.mxu0  ;;  %v6270_v8 = vld [vmem:[%s12637_s3 + $0x200] sm:$0xff] }
 0x1e5   : > { %8036 = vmatprep.subr.mxu1 %v6290_v28  ;;  %7990 = vmatprep.subr.mxu0 %v6275_v47 }
 0x1e6   : > { %8037 = vmatpush3.msra.mxu1 %v6290_v28  ;;  %7991 = vmatpush3.msra.mxu0 %v6275_v47  ;;  %v2208_v28 = vrot.slane %v9751_v19, 4  ;;  %v10148_v47 = vpop.f32.mrf.mxu1  ;;  %v6317_v19 = vld [vmem:[%s12637_s3 + $0x378] sm:$0xff] }
 0x1e7   : > { %8038 = vmatprep.subr.mxu1 %v6289_v21  ;;  %7992 = vmatprep.subr.mxu0 %v6274_v4 }
 0x1e8   : > { %8039 = vmatpush3.msra.mxu1 %v6289_v21  ;;  %7993 = vmatpush3.msra.mxu0 %v6274_v4  ;;  %v6332_v21 = vld [vmem:[%s12637_s3 + $0x3f0] sm:$0xff]  ;;  %v2209_v4 = vrot.slane %v9746_v1, 4  ;;  %v913_v1 = vmax.f32 %v9677_v32, %v9703_v45  ;;  %v6330_v45 = vld [vmem:[%s12637_s3 + $0x3e0] sm:$0xff] }
 0x1e9   : > { %8040 = vmatprep.subr.mxu1 %v6288_v40  ;;  %7994 = vmatprep.subr.mxu0 %v6273_v61 }
 0x1ea   : > { %8041 = vmatpush3.msra.mxu1 %v6288_v40  ;;  %7995 = vmatpush3.msra.mxu0 %v6273_v61  ;;  %v2211_v40 = vrot.slane %v9785_v5, 4  ;;  %v1163_v61 = vpop.f32.mrf.mxu0 }
 0x1eb   : > { %8042 = vmatprep.subr.mxu1 %v6287_v9  ;;  %7996 = vmatprep.subr.mxu0 %v6272_v24  ;;  %v1218_v32 = vmax.f32 %v913_v1, %v1163_v61  ;;  %v2218_v61 = vrot.slane %v9853_v22, 4  ;;  %v6314_v1 = vld [vmem:[%s12637_s3 + $0x360] sm:$0xff] }
 0x1ec   : > { %8043 = vmatpush3.msra.mxu1 %v6287_v9  ;;  %7997 = vmatpush3.msra.mxu0 %v6272_v24  ;;  %v10161_v9 = vsel %vm2204_vm2, %v2208_v28, %v2209_v4  ;;  %v2212_v24 = vrot.slane %v9776_v62, 4  ;;  %v6316_v62 = vld [vmem:[%s12637_s3 + $0x370] sm:$0xff]  ;;  %v2215_v28 = vrot.slane %v9815_v6, 4  ;;  %v6329_v6 = vld [vmem:[%s12637_s3 + $0x3d8] sm:$0xff] }
 0x1ed   : > { %8044 = vmatprep.subr.mxu1 %v6286_v20  ;;  %7998 = vmatprep.subr.mxu0 %v6271_v39 }
 0x1ee   : > { %8045 = vmatpush3.msra.mxu1 %v6286_v20  ;;  %7999 = vmatpush3.msra.mxu0 %v6271_v39  ;;  %v6331_v20 = vld [vmem:[%s12637_s3 + $0x3e8] sm:$0xff]  ;;  %v1468_v39 = vpop.f32.mrf.mxu1 }
 0x1ef   : > { %8047 = vmatmul.mubr.f32.vlgmr.msra.gmra.mxu1 %v9785_v5  ;;  %8102 = vmatprep.subr.mxu1 %v6333_v14  ;;  %v1523_v4 = vmax.f32 %v1218_v32, %v1468_v39  ;;  %v6328_v39 = vld [vmem:[%s12637_s3 + $0x3d0] sm:$0xff] }
 0x1f0   : > { %8000 = vmatprep.subr.mxu0 %v6270_v8  ;;  %8049 = vmatprep.mubr.f32.mxu1 %v9826_v31 }
 0x1f1   : > { %8103 = vmatpush3.msra.mxu1 %v6333_v14  ;;  %8001 = vmatpush3.msra.mxu0 %v6270_v8  ;;  %v10171_v14 = vsel %vm2204_vm2, %v2211_v40, %v2212_v24  ;;  %v2214_v8 = vrot.slane %v9826_v31, 4  ;;  %v6315_v40 = vld [vmem:[%s12637_s3 + $0x368] sm:$0xff]  ;;  %v1554_v22 = vadd.f32 %v9724_v60, %v1523_v4  ;;  %v6313_v60 = vld [vmem:[%s12637_s3 + $0x358] sm:$0xff]  ;;  %v6312_v4 = vld [vmem:[%s12637_s3 + $0x350] sm:$0xff] }
 0x1f2   : > { %8104 = vmatprep.subr.mxu1 %v6332_v21  ;;  %8003 = vmatmul.mubr.f32.vlgmr.msra.gmra.mxu0 %v10161_v9 }
 0x1f3   : > { %8058 = vmatprep.subr.mxu0 %v6317_v19  ;;  %8105 = vmatpush3.msra.mxu1 %v6332_v21  ;;  %v2217_v21 = vrot.slane %v9861_v0, 4 }
 0x1f4   : > { %8005 = vmatprep.mubr.f32.mxu0 %v10171_v14  ;;  %8050 = vmatmul.mubr.f32.gmra.mxu1 %v9861_v0 }
 0x1f5   : > { %8059 = vmatpush3.msra.mxu0 %v6317_v19  ;;  %8106 = vmatprep.subr.mxu1 %v6331_v20  ;;  %v10189_v19 = vsel %vm2204_vm2, %v2214_v8, %v2215_v28  ;;  %v10197_v24 = vsel %vm2204_vm2, %v2217_v21, %v2218_v61  ;;  %v2223_v8 = vrot.slane %v9937_v57, 4  ;;  %v10219_v28 = vmax.f32 %v1554_v22, 0.0  ;;  %v6309_v22 = vld [vmem:[%s12637_s3 + $0x338] sm:$0xff] }
 0x1f6   : > { %8052 = vmatprep.mubr.f32.mxu1 %v9902_v37  ;;  %8060 = vmatprep.subr.mxu0 %v6316_v62  ;;  %v2227_v61 = vrot.slane %v9947_v42, 4  ;;  %v6310_v42 = vld [vmem:[%s12637_s3 + $0x340] sm:$0xff] }
 0x1f7   : > { %8107 = vmatpush3.msra.mxu1 %v6331_v20  ;;  %8061 = vmatpush3.msra.mxu0 %v6316_v62  ;;  %v2220_v20 = vrot.slane %v9902_v37, 4  ;;  %v2221_v62 = vrot.slane %v9891_v10, 4  ;;  %v6327_v10 = vld [vmem:[%s12637_s3 + $0x3c8] sm:$0xff] }
 0x1f8   : > { %8108 = vmatprep.subr.mxu1 %v6330_v45  ;;  %8006 = vmatmul.mubr.f32.gmra.mxu0 %v10189_v19 }
 0x1f9   : > { %8062 = vmatprep.subr.mxu0 %v6315_v40  ;;  %8109 = vmatpush3.msra.mxu1 %v6330_v45  ;;  %v10216_v32 = vsel %vm2204_vm2, %v2220_v20, %v2221_v62  ;;  %v2224_v45 = vrot.slane %v9928_v54, 4  ;;  %v2226_v54 = vrot.slane %v9951_v16, 4  ;;  %v6325_v20 = vld [vmem:[%s12637_s3 + $0x3b8] sm:$0xff]  ;;  %v6322_v62 = vld [vmem:[%s12637_s3 + $0x3a0] sm:$0xff] }
 0x1fa   : > { %8008 = vmatprep.mubr.f32.mxu0 %v10197_v24  ;;  %8053 = vmatmul.mubr.f32.gmra.mxu1 %v9937_v57 }
 0x1fb   : > { %8063 = vmatpush3.msra.mxu0 %v6315_v40  ;;  %8110 = vmatprep.subr.mxu1 %v6329_v6  ;;  %v10226_v21 = vsel %vm2204_vm2, %v2223_v8, %v2224_v45  ;;  %v6326_v40 = vld [vmem:[%s12637_s3 + $0x3c0] sm:$0xff]  ;;  %v6307_v8 = vld [vmem:[%s12637_s3 + $0x328] sm:$0xff] }
 0x1fc   : > { %8055 = vmatprep.mubr.f32.mxu1 %v9951_v16  ;;  %8064 = vmatprep.subr.mxu0 %v6314_v1  ;;  %v6306_v45 = vld [vmem:[%s12637_s3 + $0x320] sm:$0xff] }
 0x1fd   : > { %8111 = vmatpush3.msra.mxu1 %v6329_v6  ;;  %8065 = vmatpush3.msra.mxu0 %v6314_v1  ;;  %v6311_v6 = vld [vmem:[%s12637_s3 + $0x348] sm:$0xff]  ;;  %v10243_v1 = vsel %vm2204_vm2, %v2226_v54, %v2227_v61  ;;  %v6318_v61 = vld [vmem:[%s12637_s3 + $0x380] sm:$0xff] }
 0x1fe   : > { %8112 = vmatprep.subr.mxu1 %v6328_v39  ;;  %8009 = vmatmul.mubr.f32.gmra.mxu0 %v10216_v32  ;;  %v6319_v54 = vld [vmem:[%s12637_s3 + $0x388] sm:$0xff] }
 0x1ff   : > { %8066 = vmatprep.subr.mxu0 %v6313_v60  ;;  %8113 = vmatpush3.msra.mxu1 %v6328_v39  ;;  %v6323_v39 = vld [vmem:[%s12637_s3 + $0x3a8] sm:$0xff] }
 0x200   : > { %8011 = vmatprep.mubr.f32.mxu0 %v10226_v21  ;;  %8056 = vmatmul.mubr.f32.gmra.mxu1 %v10219_v28 }
 0x201   : > { %8067 = vmatpush3.msra.mxu0 %v6313_v60  ;;  %8114 = vmatprep.subr.mxu1 %v6327_v10  ;;  %v6321_v60 = vld [vmem:[%s12637_s3 + $0x398] sm:$0xff] }
 0x202   : > { %8068 = vmatprep.subr.mxu0 %v6312_v4  ;;  %8115 = vmatpush3.msra.mxu1 %v6327_v10  ;;  %v6320_v10 = vld [vmem:[%s12637_s3 + $0x390] sm:$0xff] }
 0x203   : > { %8134 = vmatprep.mubr.f32.mxu1 %v9989_v18  ;;  %8069 = vmatpush3.msra.mxu0 %v6312_v4  ;;  %v6324_v18 = vld [vmem:[%s12637_s3 + $0x3b0] sm:$0xff]  ;;  %v6305_v4 = vld [vmem:[%s12637_s3 + $0x318] sm:$0xff] }
 0x204   : > { %8116 = vmatprep.subr.mxu1 %v6326_v40  ;;  %8012 = vmatmul.mubr.f32.gmra.mxu0 %v10243_v1 }
 0x205   : > { %8070 = vmatprep.subr.mxu0 %v6311_v6  ;;  %8117 = vmatpush3.msra.mxu1 %v6326_v40  ;;  %v6304_v40 = vld [vmem:[%s12637_s3 + $0x310] sm:$0xff] }
 0x206   : > { %8071 = vmatpush3.msra.mxu0 %v6311_v6  ;;  %8090 = vmatprep.mubr.f32.mxu0 %v9765_v59  ;;  %v6308_v59 = vld [vmem:[%s12637_s3 + $0x330] sm:$0xff]  ;;  %v6303_v6 = vld [vmem:[%s12637_s3 + $0x308] sm:$0xff] }
 0x207   : > { %8118 = vmatprep.subr.mxu1 %v6325_v20  ;;  %8072 = vmatprep.subr.mxu0 %v6310_v42 }
 0x208   : > { %8119 = vmatpush3.msra.mxu1 %v6325_v20  ;;  %8073 = vmatpush3.msra.mxu0 %v6310_v42  ;;  %v6365_v20 = vld [vmem:[%s12637_s3 + $0x4f8] sm:$0xff]  ;;  %v914_v42 = vmax.f32 %v9671_v29, %v9699_v43 }
 0x209   : > { %8120 = vmatprep.subr.mxu1 %v6324_v18  ;;  %8074 = vmatprep.subr.mxu0 %v6309_v22  ;;  %v6349_v29 = vld [vmem:[%s12637_s3 + $0x478] sm:$0xff] }
 0x20a   : > { %8121 = vmatpush3.msra.mxu1 %v6324_v18  ;;  %8075 = vmatpush3.msra.mxu0 %v6309_v22  ;;  %v6302_v18 = vld [vmem:[%s12637_s3 + $0x300] sm:$0xff]  ;;  %v1219_v22 = vmax.f32 %v914_v42, %v10142_v56  ;;  %v6363_v56 = vld [vmem:[%s12637_s3 + $0x4e8] sm:$0xff] }
 0x20b   : > { %8122 = vmatprep.subr.mxu1 %v6323_v39  ;;  %8076 = vmatprep.subr.mxu0 %v6308_v59 }
 0x20c   : > { %8123 = vmatpush3.msra.mxu1 %v6323_v39  ;;  %8077 = vmatpush3.msra.mxu0 %v6308_v59  ;;  %v6364_v39 = vld [vmem:[%s12637_s3 + $0x4f0] sm:$0xff]  ;;  %v1524_v43 = vmax.f32 %v1219_v22, %v10148_v47  ;;  %v10325_v47 = vld [vmem:[%s12636_s2] ss:$0 sm:$0xff]  ;;  %v2499_v22 = vrot.slane %v10219_v28, 1 }
 0x20d   : > { %8124 = vmatprep.subr.mxu1 %v6322_v62  ;;  %8078 = vmatprep.subr.mxu0 %v6307_v8  ;;  %v6348_v59 = vld [vmem:[%s12637_s3 + $0x470] sm:$0xff] }
 0x20e   : > { %8125 = vmatpush3.msra.mxu1 %v6322_v62  ;;  %8079 = vmatpush3.msra.mxu0 %v6307_v8  ;;  %v1555_v62 = vadd.f32 %v10325_v47, %v1524_v43  ;;  %v6362_v8 = vld [vmem:[%s12637_s3 + $0x4e0] sm:$0xff]  ;;  %v6343_v43 = vld [vmem:[%s12637_s3 + $0x448] sm:$0xff] }
 0x20f   : > { %8126 = vmatprep.subr.mxu1 %v6321_v60  ;;  %8080 = vmatprep.subr.mxu0 %v6306_v45 }
 0x210   : > { %8127 = vmatpush3.msra.mxu1 %v6321_v60  ;;  %8081 = vmatpush3.msra.mxu0 %v6306_v45  ;;  %v6347_v60 = vld [vmem:[%s12637_s3 + $0x468] sm:$0xff]  ;;  %v6361_v45 = vld [vmem:[%s12637_s3 + $0x4d8] sm:$0xff] }
 0x211   : > { %8128 = vmatprep.subr.mxu1 %v6320_v10  ;;  %8082 = vmatprep.subr.mxu0 %v6305_v4 }
 0x212   : > { %8129 = vmatpush3.msra.mxu1 %v6320_v10  ;;  %8083 = vmatpush3.msra.mxu0 %v6305_v4  ;;  %v10339_v10 = vmax.f32 %v1555_v62, 0.0  ;;  %v6346_v4 = vld [vmem:[%s12637_s3 + $0x460] sm:$0xff] }
 0x213   : > { %8130 = vmatprep.subr.mxu1 %v6319_v54  ;;  %8084 = vmatprep.subr.mxu0 %v6304_v40  ;;  %v6342_v62 = vld [vmem:[%s12637_s3 + $0x440] sm:$0xff] }
 0x214   : > { %8131 = vmatpush3.msra.mxu1 %v6319_v54  ;;  %8085 = vmatpush3.msra.mxu0 %v6304_v40  ;;  %v6360_v54 = vld [vmem:[%s12637_s3 + $0x4d0] sm:$0xff]  ;;  %v2633_v40 = vrot.slane %v10219_v28, 2 }
 0x215   : > { %8132 = vmatprep.subr.mxu1 %v6318_v61  ;;  %8086 = vmatprep.subr.mxu0 %v6303_v6 }
 0x216   : > { %8133 = vmatpush3.msra.mxu1 %v6318_v61  ;;  %8087 = vmatpush3.msra.mxu0 %v6303_v6  ;;  %v6345_v61 = vld [vmem:[%s12637_s3 + $0x458] sm:$0xff]  ;;  %v2634_v6 = vrot.slane %v10339_v10, 2 }
 0x217   : > { %8135 = vmatmul.mubr.f32.vlgmr.msra.gmra.mxu1 %v9999_v2  ;;  %8190 = vmatprep.subr.mxu1 %v6365_v20 }
 0x218   : > { %8088 = vmatprep.subr.mxu0 %v6302_v18  ;;  %8137 = vmatprep.mubr.f32.mxu1 %v10025_v53  ;;  %v10360_v42 = vsel %vm1878_vm4, %v2633_v40, %v2634_v6  ;;  %v6338_v40 = vld [vmem:[%s12637_s3 + $0x420] sm:$0xff]  ;;  %v6337_v6 = vld [vmem:[%s12637_s3 + $0x418] sm:$0xff] }
 0x219   : > { %8191 = vmatpush3.msra.mxu1 %v6365_v20  ;;  %8089 = vmatpush3.msra.mxu0 %v6302_v18  ;;  %v6359_v20 = vld [vmem:[%s12637_s3 + $0x4c8] sm:$0xff]  ;;  %v6344_v18 = vld [vmem:[%s12637_s3 + $0x450] sm:$0xff] }
 0x21a   : > { %8192 = vmatprep.subr.mxu1 %v6364_v39  ;;  %8091 = vmatmul.mubr.f32.vlgmr.msra.gmra.mxu0 %v9804_v11 }
 0x21b   : > { %8146 = vmatprep.subr.mxu0 %v6349_v29  ;;  %8193 = vmatpush3.msra.mxu1 %v6364_v39  ;;  %v6358_v39 = vld [vmem:[%s12637_s3 + $0x4c0] sm:$0xff] }
 0x21c   : > { %8093 = vmatprep.mubr.f32.mxu0 %v9842_v58  ;;  %8138 = vmatmul.mubr.f32.gmra.mxu1 %v10035_v7 }
 0x21d   : > { %8147 = vmatpush3.msra.mxu0 %v6349_v29  ;;  %8194 = vmatprep.subr.mxu1 %v6363_v56  ;;  %v2500_v29 = vrot.slane %v10339_v10, 1 }
 0x21e   : > { %8140 = vmatprep.mubr.f32.mxu1 %v10061_v17  ;;  %8148 = vmatprep.subr.mxu0 %v6348_v59 }
 0x21f   : > { %8195 = vmatpush3.msra.mxu1 %v6363_v56  ;;  %8149 = vmatpush3.msra.mxu0 %v6348_v59  ;;  %v10377_v56 = vsel %vm1618_vm1, %v2499_v22, %v2500_v29  ;;  %v6357_v59 = vld [vmem:[%s12637_s3 + $0x4b8] sm:$0xff]  ;;  %v6350_v22 = vld [vmem:[%s12637_s3 + $0x480] sm:$0xff] }
 0x220   : > { %8196 = vmatprep.subr.mxu1 %v6362_v8  ;;  %8094 = vmatmul.mubr.f32.gmra.mxu0 %v9880_v33  ;;  %v6397_v29 = vld [vmem:[%s12637_s3 + $0x5f8] sm:$0xff] }
 0x221   : > { %8150 = vmatprep.subr.mxu0 %v6347_v60  ;;  %8197 = vmatpush3.msra.mxu1 %v6362_v8  ;;  %v6341_v8 = vld [vmem:[%s12637_s3 + $0x438] sm:$0xff] }
 0x222   : > { %8096 = vmatprep.mubr.f32.mxu0 %v9920_v36  ;;  %8141 = vmatmul.mubr.f32.gmra.mxu1 %v10070_v13 }
 0x223   : > { %8151 = vmatpush3.msra.mxu0 %v6347_v60  ;;  %8198 = vmatprep.subr.mxu1 %v6361_v45  ;;  %v6355_v60 = vld [vmem:[%s12637_s3 + $0x4a8] sm:$0xff] }
 0x224   : > { %8143 = vmatprep.mubr.f32.mxu1 %v10090_v63  ;;  %8152 = vmatprep.subr.mxu0 %v6346_v4 }
 0x225   : > { %8199 = vmatpush3.msra.mxu1 %v6361_v45  ;;  %8153 = vmatpush3.msra.mxu0 %v6346_v4  ;;  %v6354_v45 = vld [vmem:[%s12637_s3 + $0x4a0] sm:$0xff]  ;;  %v6339_v4 = vld [vmem:[%s12637_s3 + $0x428] sm:$0xff] }
 0x226   : > { %8200 = vmatprep.subr.mxu1 %v6360_v54  ;;  %8097 = vmatmul.mubr.f32.gmra.mxu0 %v9944_v26 }
 0x227   : > { %8154 = vmatprep.subr.mxu0 %v6345_v61  ;;  %8201 = vmatpush3.msra.mxu1 %v6360_v54  ;;  %v6353_v54 = vld [vmem:[%s12637_s3 + $0x498] sm:$0xff] }
 0x228   : > { %8099 = vmatprep.mubr.f32.mxu0 %v9964_v15  ;;  %8144 = vmatmul.mubr.f32.gmra.mxu1 %v10360_v42 }
 0x229   : > { %8155 = vmatpush3.msra.mxu0 %v6345_v61  ;;  %8202 = vmatprep.subr.mxu1 %v6359_v20  ;;  %v6352_v61 = vld [vmem:[%s12637_s3 + $0x490] sm:$0xff] }
 0x22a   : > { %8156 = vmatprep.subr.mxu0 %v6344_v18  ;;  %8203 = vmatpush3.msra.mxu1 %v6359_v20  ;;  %v6351_v20 = vld [vmem:[%s12637_s3 + $0x488] sm:$0xff] }
 0x22b   : > { %8222 = vmatprep.mubr.f32.mxu1 %v10161_v9  ;;  %8157 = vmatpush3.msra.mxu0 %v6344_v18  ;;  %v6356_v9 = vld [vmem:[%s12637_s3 + $0x4b0] sm:$0xff] }
 0x22c   : > { %8204 = vmatprep.subr.mxu1 %v6358_v39  ;;  %8100 = vmatmul.mubr.f32.gmra.mxu0 %v10377_v56  ;;  %v6336_v18 = vld [vmem:[%s12637_s3 + $0x410] sm:$0xff] }
 0x22d   : > { %8158 = vmatprep.subr.mxu0 %v6343_v43  ;;  %8205 = vmatpush3.msra.mxu1 %v6358_v39  ;;  %v6335_v39 = vld [vmem:[%s12637_s3 + $0x408] sm:$0xff] }
 0x22e   : > { %8159 = vmatpush3.msra.mxu0 %v6343_v43  ;;  %8178 = vmatprep.mubr.f32.mxu0 %v9971_v25  ;;  %v6340_v25 = vld [vmem:[%s12637_s3 + $0x430] sm:$0xff]  ;;  %v6334_v43 = vld [vmem:[%s12637_s3 + $0x400] sm:$0xff] }
 0x22f   : > { %8206 = vmatprep.subr.mxu1 %v6357_v59  ;;  %8160 = vmatprep.subr.mxu0 %v6342_v62 }
 0x230   : > { %8207 = vmatpush3.msra.mxu1 %v6357_v59  ;;  %8161 = vmatpush3.msra.mxu0 %v6342_v62  ;;  %v6396_v59 = vld [vmem:[%s12637_s3 + $0x5f0] sm:$0xff]  ;;  %v6381_v62 = vld [vmem:[%s12637_s3 + $0x578] sm:$0xff] }
 0x231   : > { %8208 = vmatprep.subr.mxu1 %v6356_v9  ;;  %8162 = vmatprep.subr.mxu0 %v6341_v8 }
 0x232   : > { %8209 = vmatpush3.msra.mxu1 %v6356_v9  ;;  %8163 = vmatpush3.msra.mxu0 %v6341_v8  ;;  %v10443_v9 = vpop.f32.mrf.mxu1  ;;  %v6395_v8 = vld [vmem:[%s12637_s3 + $0x5e8] sm:$0xff] }
 0x233   : > { %8210 = vmatprep.subr.mxu1 %v6355_v60  ;;  %8164 = vmatprep.subr.mxu0 %v6340_v25 }
 0x234   : > { %8211 = vmatpush3.msra.mxu1 %v6355_v60  ;;  %8165 = vmatpush3.msra.mxu0 %v6340_v25  ;;  %v10449_v60 = vpop.f32.mrf.mxu0  ;;  %v6380_v25 = vld [vmem:[%s12637_s3 + $0x570] sm:$0xff] }
 0x235   : > { %8212 = vmatprep.subr.mxu1 %v6354_v45  ;;  %8166 = vmatprep.subr.mxu0 %v6339_v4 }
 0x236   : > { %8213 = vmatpush3.msra.mxu1 %v6354_v45  ;;  %8167 = vmatpush3.msra.mxu0 %v6339_v4  ;;  %v10456_v45 = vpop.f32.mrf.mxu1  ;;  %v6394_v4 = vld [vmem:[%s12637_s3 + $0x5e0] sm:$0xff] }
 0x237   : > { %8214 = vmatprep.subr.mxu1 %v6353_v54  ;;  %8168 = vmatprep.subr.mxu0 %v6338_v40 }
 0x238   : > { %8215 = vmatpush3.msra.mxu1 %v6353_v54  ;;  %8169 = vmatpush3.msra.mxu0 %v6338_v40  ;;  %v6379_v54 = vld [vmem:[%s12637_s3 + $0x568] sm:$0xff]  ;;  %v10465_v40 = vpop.f32.mrf.mxu0 }
 0x239   : > { %8216 = vmatprep.subr.mxu1 %v6352_v61  ;;  %8170 = vmatprep.subr.mxu0 %v6337_v6 }
 0x23a   : > { %8217 = vmatpush3.msra.mxu1 %v6352_v61  ;;  %8171 = vmatpush3.msra.mxu0 %v6337_v6  ;;  %v10467_v61 = vpop.f32.mrf.mxu1  ;;  %v6393_v6 = vld [vmem:[%s12637_s3 + $0x5d8] sm:$0xff] }
 0x23b   : > { %8218 = vmatprep.subr.mxu1 %v6351_v20  ;;  %8172 = vmatprep.subr.mxu0 %v6336_v18 }
 0x23c   : > { %8219 = vmatpush3.msra.mxu1 %v6351_v20  ;;  %8173 = vmatpush3.msra.mxu0 %v6336_v18  ;;  %v10473_v20 = vpop.f32.mrf.mxu0  ;;  %v6378_v18 = vld [vmem:[%s12637_s3 + $0x560] sm:$0xff] }
 0x23d   : > { %8220 = vmatprep.subr.mxu1 %v6350_v22  ;;  %8174 = vmatprep.subr.mxu0 %v6335_v39 }
 0x23e   : > { %8221 = vmatpush3.msra.mxu1 %v6350_v22  ;;  %8175 = vmatpush3.msra.mxu0 %v6335_v39  ;;  %v10480_v22 = vpop.f32.mrf.mxu1  ;;  %v6392_v39 = vld [vmem:[%s12637_s3 + $0x5d0] sm:$0xff] }
 0x23f   : > { %8223 = vmatmul.mubr.f32.vlgmr.msra.gmra.mxu1 %v10171_v14  ;;  %8278 = vmatprep.subr.mxu1 %v6397_v29 }
 0x240   : > { %8176 = vmatprep.subr.mxu0 %v6334_v43  ;;  %8225 = vmatprep.mubr.f32.mxu1 %v10189_v19 }
 0x241   : > { %8279 = vmatpush3.msra.mxu1 %v6397_v29  ;;  %8177 = vmatpush3.msra.mxu0 %v6334_v43  ;;  %v2901_v29 = vrot.slane %v10219_v28, 4  ;;  %v6377_v43 = vld [vmem:[%s12637_s3 + $0x558] sm:$0xff] }
 0x242   : > { %8280 = vmatprep.subr.mxu1 %v6396_v59  ;;  %8179 = vmatmul.mubr.f32.vlgmr.msra.gmra.mxu0 %v9978_v23 }
 0x243   : > { %8234 = vmatprep.subr.mxu0 %v6381_v62  ;;  %8281 = vmatpush3.msra.mxu1 %v6396_v59  ;;  %v10490_v59 = vpop.f32.mrf.mxu0 }
 0x244   : > { %8181 = vmatprep.mubr.f32.mxu0 %v10002_v34  ;;  %8226 = vmatmul.mubr.f32.gmra.mxu1 %v10197_v24 }
 0x245   : > { %8235 = vmatpush3.msra.mxu0 %v6381_v62  ;;  %8282 = vmatprep.subr.mxu1 %v6395_v8  ;;  %v2902_v62 = vrot.slane %v10339_v10, 4 }
 0x246   : > { %8228 = vmatprep.mubr.f32.mxu1 %v10216_v32  ;;  %8236 = vmatprep.subr.mxu0 %v6380_v25 }
 0x247   : > { %8283 = vmatpush3.msra.mxu1 %v6395_v8  ;;  %8237 = vmatpush3.msra.mxu0 %v6380_v25  ;;  %v6391_v8 = vld [vmem:[%s12637_s3 + $0x5c8] sm:$0xff]  ;;  %v10497_v25 = vpop.f32.mrf.mxu1 }
 0x248   : > { %8284 = vmatprep.subr.mxu1 %v6394_v4  ;;  %8182 = vmatmul.mubr.f32.gmra.mxu0 %v10015_v12  ;;  %12650 = vst [vmem:[#allocation9_spill] sm:$0xff] %v10497_v25 }
 0x249   : > { %8238 = vmatprep.subr.mxu0 %v6379_v54  ;;  %8285 = vmatpush3.msra.mxu1 %v6394_v4  ;;  %v10500_v4 = vsel %vm2204_vm2, %v2901_v29, %v2902_v62  ;;  %v2768_v29 = vrot.slane %v10339_v10, 3  ;;  %v6375_v62 = vld [vmem:[%s12637_s3 + $0x548] sm:$0xff]  ;;  %v10517_v25 = vpop.f32.mrf.mxu1  ;;  %v6389_v10 = vld [vmem:[%s12637_s3 + $0x5b8] sm:$0xff] }
 0x24a   : > { %8184 = vmatprep.mubr.f32.mxu0 %v10038_v27  ;;  %8229 = vmatmul.mubr.f32.gmra.mxu1 %v10226_v21  ;;  %12652 = vst [vmem:[#allocation11_spill] sm:$0xff] %v10517_v25 }
 0x24b   : > { %8239 = vmatpush3.msra.mxu0 %v6379_v54  ;;  %8286 = vmatprep.subr.mxu1 %v6393_v6  ;;  %v6376_v54 = vld [vmem:[%s12637_s3 + $0x550] sm:$0xff] }
 0x24c   : > { %8231 = vmatprep.mubr.f32.mxu1 %v10243_v1  ;;  %8240 = vmatprep.subr.mxu0 %v6378_v18 }
 0x24d   : > { %8287 = vmatpush3.msra.mxu1 %v6393_v6  ;;  %8241 = vmatpush3.msra.mxu0 %v6378_v18  ;;  %v2767_v6 = vrot.slane %v10219_v28, 3  ;;  %v10508_v18 = vpop.f32.mrf.mxu0 }
 0x24e   : > { %8288 = vmatprep.subr.mxu1 %v6392_v39  ;;  %8185 = vmatmul.mubr.f32.gmra.mxu0 %v10051_v3  ;;  %12651 = vst [vmem:[#allocation10_spill] sm:$0xff] %v10508_v18 }
 0x24f   : > { %8242 = vmatprep.subr.mxu0 %v6377_v43  ;;  %8289 = vmatpush3.msra.mxu1 %v6392_v39  ;;  %v6390_v39 = vld [vmem:[%s12637_s3 + $0x5c0] sm:$0xff]  ;;  %v10530_v18 = vpop.f32.mrf.mxu0 }
 0x250   : > { %8187 = vmatprep.mubr.f32.mxu0 %v10073_v30  ;;  %8232 = vmatmul.mubr.f32.gmra.mxu1 %v10500_v4  ;;  %12653 = vst [vmem:[#allocation12_spill] sm:$0xff] %v10530_v18 }
 0x251   : > { %8243 = vmatpush3.msra.mxu0 %v6377_v43  ;;  %8290 = vmatprep.subr.mxu1 %v6391_v8  ;;  %v10521_v43 = vsel %vm2041_vm3, %v2767_v6, %v2768_v29  ;;  %v6373_v6 = vld [vmem:[%s12637_s3 + $0x538] sm:$0xff] }
 0x252   : > { %8244 = vmatprep.subr.mxu0 %v6376_v54  ;;  %8291 = vmatpush3.msra.mxu1 %v6391_v8  ;;  %v6374_v8 = vld [vmem:[%s12637_s3 + $0x540] sm:$0xff] }
 0x253   : > { %8310 = vmatprep.mubr.f32.mxu1 %v9804_v11  ;;  %8245 = vmatpush3.msra.mxu0 %v6376_v54  ;;  %v6388_v54 = vld [vmem:[%s12637_s3 + $0x5b0] sm:$0xff] }
 0x254   : > { %8292 = vmatprep.subr.mxu1 %v6390_v39  ;;  %8188 = vmatmul.mubr.f32.gmra.mxu0 %v10521_v43  ;;  %v7872_v11 = vpop.f32.mrf.mxu1 }
 0x255   : > { %8246 = vmatprep.subr.mxu0 %v6375_v62  ;;  %8293 = vmatpush3.msra.mxu1 %v6390_v39  ;;  %v6387_v39 = vld [vmem:[%s12637_s3 + $0x5a8] sm:$0xff] }
 0x256   : > { %8247 = vmatpush3.msra.mxu0 %v6375_v62  ;;  %8266 = vmatprep.mubr.f32.mxu0 %v9785_v5  ;;  %v6372_v5 = vld [vmem:[%s12637_s3 + $0x530] sm:$0xff]  ;;  %v1839_v25 = vpop.f32.mrf.mxu1 }
 0x257   : > { %8294 = vmatprep.subr.mxu1 %v6389_v10  ;;  %8248 = vmatprep.subr.mxu0 %v6374_v8  ;;  %v7828_v29 = vpop.f32.mrf.mxu0 }
 0x258   : > { %8295 = vmatpush3.msra.mxu1 %v6389_v10  ;;  %8249 = vmatpush3.msra.mxu0 %v6374_v8  ;;  %v10545_v62 = vadd.f32 %v7872_v11, %v7828_v29  ;;  %v6386_v10 = vld [vmem:[%s12637_s3 + $0x5a0] sm:$0xff]  ;;  %v6371_v8 = vld [vmem:[%s12637_s3 + $0x528] sm:$0xff]  ;;  %v6385_v11 = vld [vmem:[%s12637_s3 + $0x598] sm:$0xff] }
 0x259   : > { %8296 = vmatprep.subr.mxu1 %v6388_v54  ;;  %8250 = vmatprep.subr.mxu0 %v6373_v6  ;;  %v1734_v18 = vpop.f32.mrf.mxu0  ;;  %v6368_v29 = vld [vmem:[%s12637_s3 + $0x510] sm:$0xff] }
 0x25a   : > { %8297 = vmatpush3.msra.mxu1 %v6388_v54  ;;  %8251 = vmatpush3.msra.mxu0 %v6373_v6  ;;  %v10553_v52 = vadd.f32 %v1839_v25, %v1734_v18  ;;  %v6370_v54 = vld [vmem:[%s12637_s3 + $0x520] sm:$0xff]  ;;  %v6384_v25 = vld [vmem:[%s12637_s3 + $0x590] sm:$0xff]  ;;  %v6369_v18 = vld [vmem:[%s12637_s3 + $0x518] sm:$0xff] }
 0x25b   : > { %8298 = vmatprep.subr.mxu1 %v6387_v39  ;;  %8252 = vmatprep.subr.mxu0 %v6372_v5  ;;  %v6383_v6 = vld [vmem:[%s12637_s3 + $0x588] sm:$0xff] }
 0x25c   : > { %8299 = vmatpush3.msra.mxu1 %v6387_v39  ;;  %8253 = vmatpush3.msra.mxu0 %v6372_v5  ;;  %v6382_v39 = vld [vmem:[%s12637_s3 + $0x580] sm:$0xff]  ;;  %v6367_v5 = vld [vmem:[%s12637_s3 + $0x508] sm:$0xff] }
 0x25d   : > { %8300 = vmatprep.subr.mxu1 %v6386_v10  ;;  %8254 = vmatprep.subr.mxu0 %v6371_v8 }
 0x25e   : > { %8301 = vmatpush3.msra.mxu1 %v6386_v10  ;;  %8255 = vmatpush3.msra.mxu0 %v6371_v8  ;;  %v915_v10 = vmax.f32 %v9689_v38, %v9709_v48  ;;  %v6429_v8 = vld [vmem:[%s12637_s3 + $0x6f8] sm:$0xff] }
 0x25f   : > { %8302 = vmatprep.subr.mxu1 %v6385_v11  ;;  %8256 = vmatprep.subr.mxu0 %v6370_v54 }
 0x260   : > { %8303 = vmatpush3.msra.mxu1 %v6385_v11  ;;  %8257 = vmatpush3.msra.mxu0 %v6370_v54  ;;  %v916_v11 = vmax.f32 %v9683_v35, %v9705_v46  ;;  %v1220_v54 = vmax.f32 %v915_v10, %v10465_v40  ;;  %v6428_v35 = vld [vmem:[%s12637_s3 + $0x6f0] sm:$0xff]  ;;  %v6413_v40 = vld [vmem:[%s12637_s3 + $0x678] sm:$0xff] }
 0x261   : > { %8304 = vmatprep.subr.mxu1 %v6384_v25  ;;  %8258 = vmatprep.subr.mxu0 %v6369_v18 }
 0x262   : > { %8305 = vmatpush3.msra.mxu1 %v6384_v25  ;;  %8259 = vmatpush3.msra.mxu0 %v6369_v18  ;;  %v6366_v25 = vld [vmem:[%s12637_s3 + $0x500] sm:$0xff]  ;;  %v1221_v48 = vmax.f32 %v916_v11, %v10449_v60  ;;  %v1525_v18 = vmax.f32 %v1220_v54, %v10456_v45  ;;  %v6411_v54 = vld [vmem:[%s12637_s3 + $0x668] sm:$0xff] }
 0x263   : > { %8306 = vmatprep.subr.mxu1 %v6383_v6  ;;  %8260 = vmatprep.subr.mxu0 %v6368_v29  ;;  %v6426_v11 = vld [vmem:[%s12637_s3 + $0x6e0] sm:$0xff] }
 0x264   : > { %8307 = vmatpush3.msra.mxu1 %v6383_v6  ;;  %8261 = vmatpush3.msra.mxu0 %v6368_v29  ;;  %v7875_v38 = vpop.f32.mrf.mxu1  ;;  %v1526_v60 = vmax.f32 %v1221_v48, %v10443_v9  ;;  %v1556_v10 = vadd.f32 %v10325_v47, %v1525_v18  ;;  %v6412_v9 = vld [vmem:[%s12637_s3 + $0x670] sm:$0xff]  ;;  %v6410_v48 = vld [vmem:[%s12637_s3 + $0x660] sm:$0xff] }
 0x265   : > { %8308 = vmatprep.subr.mxu1 %v6382_v39  ;;  %8262 = vmatprep.subr.mxu0 %v6367_v5  ;;  %v6424_v18 = vld [vmem:[%s12637_s3 + $0x6d0] sm:$0xff] }
 0x266   : > { %8309 = vmatpush3.msra.mxu1 %v6382_v39  ;;  %8263 = vmatpush3.msra.mxu0 %v6367_v5  ;;  %v1849_v45 = vpop.f32.mrf.mxu1  ;;  %v6427_v39 = vld [vmem:[%s12637_s3 + $0x6e8] sm:$0xff] }
 0x267   : > { %8311 = vmatmul.mubr.f32.vlgmr.msra.gmra.mxu1 %v9842_v58  ;;  %8366 = vmatprep.subr.mxu1 %v6429_v8  ;;  %v7831_v46 = vpop.f32.mrf.mxu0 }
 0x268   : > { %8264 = vmatprep.subr.mxu0 %v6366_v25  ;;  %8313 = vmatprep.mubr.f32.mxu1 %v9880_v33  ;;  %v10600_v6 = vadd.f32 %v7875_v38, %v7831_v46  ;;  %v6409_v46 = vld [vmem:[%s12637_s3 + $0x658] sm:$0xff] }
 0x269   : > { %8367 = vmatpush3.msra.mxu1 %v6429_v8  ;;  %8265 = vmatpush3.msra.mxu0 %v6366_v25  ;;  %v1744_v29 = vpop.f32.mrf.mxu0  ;;  %v1557_v8 = vadd.f32 %v10325_v47, %v1526_v60  ;;  %v10623_v25 = vmax.f32 %v1556_v10, 0.0  ;;  %v6425_v47 = vld [vmem:[%s12637_s3 + $0x6d8] sm:$0xff] }
 0x26a   : > { %8368 = vmatprep.subr.mxu1 %v6428_v35  ;;  %8267 = vmatmul.mubr.f32.vlgmr.msra.gmra.mxu0 %v9826_v31  ;;  %v10607_v5 = vadd.f32 %v1849_v45, %v1744_v29  ;;  %v6423_v45 = vld [vmem:[%s12637_s3 + $0x6c8] sm:$0xff] }
 0x26b   : > { %8322 = vmatprep.subr.mxu0 %v6413_v40  ;;  %8369 = vmatpush3.msra.mxu1 %v6428_v35  ;;  %v10629_v38 = vmax.f32 %v1557_v8, 0.0  ;;  %v3167_v35 = vrot.slane %v10623_v25, 1  ;;  %v6422_v8 = vld [vmem:[%s12637_s3 + $0x6c0] sm:$0xff] }
 0x26c   : > { %8269 = vmatprep.mubr.f32.mxu0 %v9861_v0  ;;  %8314 = vmatmul.mubr.f32.gmra.mxu1 %v9920_v36 }
 0x26d   : > { %8323 = vmatpush3.msra.mxu0 %v6413_v40  ;;  %8370 = vmatprep.subr.mxu1 %v6427_v39  ;;  %v3168_v40 = vrot.slane %v10629_v38, 1 }
 0x26e   : > { %8316 = vmatprep.mubr.f32.mxu1 %v9944_v26  ;;  %8324 = vmatprep.subr.mxu0 %v6412_v9 }
 0x26f   : > { %8371 = vmatpush3.msra.mxu1 %v6427_v39  ;;  %8325 = vmatpush3.msra.mxu0 %v6412_v9  ;;  %v10650_v29 = vsel %vm1618_vm1, %v3167_v35, %v3168_v40  ;;  %v6408_v39 = vld [vmem:[%s12637_s3 + $0x650] sm:$0xff]  ;;  %v6406_v35 = vld [vmem:[%s12637_s3 + $0x640] sm:$0xff]  ;;  %v6419_v40 = vld [vmem:[%s12637_s3 + $0x6a8] sm:$0xff] }
 0x270   : > { %8372 = vmatprep.subr.mxu1 %v6426_v11  ;;  %8270 = vmatmul.mubr.f32.gmra.mxu0 %v9902_v37 }
 0x271   : > { %8326 = vmatprep.subr.mxu0 %v6411_v54  ;;  %8373 = vmatpush3.msra.mxu1 %v6426_v11 }
 0x272   : > { %8272 = vmatprep.mubr.f32.mxu0 %v9937_v57  ;;  %8317 = vmatmul.mubr.f32.gmra.mxu1 %v9964_v15 }
 0x273   : > { %8327 = vmatpush3.msra.mxu0 %v6411_v54  ;;  %8374 = vmatprep.subr.mxu1 %v6425_v47 }
 0x274   : > { %8319 = vmatprep.mubr.f32.mxu1 %v10377_v56  ;;  %8328 = vmatprep.subr.mxu0 %v6410_v48  ;;  %v7878_v60 = vpop.f32.mrf.mxu1 }
 0x275   : > { %8375 = vmatpush3.msra.mxu1 %v6425_v47  ;;  %8329 = vmatpush3.msra.mxu0 %v6410_v48  ;;  %v6407_v47 = vld [vmem:[%s12637_s3 + $0x648] sm:$0xff] }
 0x276   : > { %8376 = vmatprep.subr.mxu1 %v6424_v18  ;;  %8273 = vmatmul.mubr.f32.gmra.mxu0 %v9951_v16  ;;  %v1859_v11 = vpop.f32.mrf.mxu1 }
 0x277   : > { %8330 = vmatprep.subr.mxu0 %v6409_v46  ;;  %8377 = vmatpush3.msra.mxu1 %v6424_v18  ;;  %v7834_v10 = vpop.f32.mrf.mxu0  ;;  %v6421_v18 = vld [vmem:[%s12637_s3 + $0x6b8] sm:$0xff] }
 0x278   : > { %8275 = vmatprep.mubr.f32.mxu0 %v10219_v28  ;;  %8320 = vmatmul.mubr.f32.gmra.mxu1 %v10650_v29  ;;  %v10657_v9 = vadd.f32 %v7878_v60, %v7834_v10  ;;  %v6418_v60 = vld [vmem:[%s12637_s3 + $0x6a0] sm:$0xff] }
 0x279   : > { %8331 = vmatpush3.msra.mxu0 %v6409_v46  ;;  %8378 = vmatprep.subr.mxu1 %v6423_v45  ;;  %v1754_v54 = vpop.f32.mrf.mxu0  ;;  %v6405_v46 = vld [vmem:[%s12637_s3 + $0x638] sm:$0xff]  ;;  %v6402_v10 = vld [vmem:[%s12637_s3 + $0x620] sm:$0xff] }
 0x27a   : > { %8332 = vmatprep.subr.mxu0 %v6408_v39  ;;  %8379 = vmatpush3.msra.mxu1 %v6423_v45  ;;  %v10665_v48 = vadd.f32 %v1859_v11, %v1754_v54  ;;  %v6403_v45 = vld [vmem:[%s12637_s3 + $0x628] sm:$0xff]  ;;  %v6416_v11 = vld [vmem:[%s12637_s3 + $0x690] sm:$0xff]  ;;  %v6401_v54 = vld [vmem:[%s12637_s3 + $0x618] sm:$0xff] }
 0x27b   : > { %8398 = vmatprep.mubr.f32.mxu1 %v9978_v23  ;;  %8333 = vmatpush3.msra.mxu0 %v6408_v39  ;;  %v6420_v23 = vld [vmem:[%s12637_s3 + $0x6b0] sm:$0xff]  ;;  %v6417_v39 = vld [vmem:[%s12637_s3 + $0x698] sm:$0xff] }
 0x27c   : > { %8380 = vmatprep.subr.mxu1 %v6422_v8  ;;  %8276 = vmatmul.mubr.f32.gmra.mxu0 %v10623_v25 }
 0x27d   : > { %8334 = vmatprep.subr.mxu0 %v6407_v47  ;;  %8381 = vmatpush3.msra.mxu1 %v6422_v8 }
 0x27e   : > { %8335 = vmatpush3.msra.mxu0 %v6407_v47  ;;  %8354 = vmatprep.mubr.f32.mxu0 %v9999_v2  ;;  %v6404_v2 = vld [vmem:[%s12637_s3 + $0x630] sm:$0xff] }
 0x27f   : > { %8382 = vmatprep.subr.mxu1 %v6421_v18  ;;  %8336 = vmatprep.subr.mxu0 %v6406_v35 }
 0x280   : > { %8383 = vmatpush3.msra.mxu1 %v6421_v18  ;;  %8337 = vmatpush3.msra.mxu0 %v6406_v35  ;;  %v6415_v35 = vld [vmem:[%s12637_s3 + $0x688] sm:$0xff] }
 0x281   : > { %8384 = vmatprep.subr.mxu1 %v6420_v23  ;;  %8338 = vmatprep.subr.mxu0 %v6405_v46 }
 0x282   : > { %8385 = vmatpush3.msra.mxu1 %v6420_v23  ;;  %8339 = vmatpush3.msra.mxu0 %v6405_v46  ;;  %v6400_v23 = vld [vmem:[%s12637_s3 + $0x610] sm:$0xff] }
 0x283   : > { %8386 = vmatprep.subr.mxu1 %v6419_v40  ;;  %8340 = vmatprep.subr.mxu0 %v6404_v2 }
 0x284   : > { %8387 = vmatpush3.msra.mxu1 %v6419_v40  ;;  %8341 = vmatpush3.msra.mxu0 %v6404_v2  ;;  %v7881_v8 = vpop.f32.mrf.mxu1 }
 0x285   : > { %8388 = vmatprep.subr.mxu1 %v6418_v60  ;;  %8342 = vmatprep.subr.mxu0 %v6403_v45 }
 0x286   : > { %8389 = vmatpush3.msra.mxu1 %v6418_v60  ;;  %8343 = vmatpush3.msra.mxu0 %v6403_v45  ;;  %v1869_v47 = vpop.f32.mrf.mxu1  ;;  %v6414_v60 = vld [vmem:[%s12637_s3 + $0x680] sm:$0xff]  ;;  %v6399_v45 = vld [vmem:[%s12637_s3 + $0x608] sm:$0xff] }
 0x287   : > { %8390 = vmatprep.subr.mxu1 %v6417_v39  ;;  %8344 = vmatprep.subr.mxu0 %v6402_v10  ;;  %v7837_v18 = vpop.f32.mrf.mxu0 }
 0x288   : > { %8391 = vmatpush3.msra.mxu1 %v6417_v39  ;;  %8345 = vmatpush3.msra.mxu0 %v6402_v10  ;;  %v10712_v46 = vadd.f32 %v7881_v8, %v7837_v18  ;;  %v7960_v40 = vpop.f32.mrf.mxu1  ;;  %v6398_v18 = vld [vmem:[%s12637_s3 + $0x600] sm:$0xff] }
 0x289   : > { %8392 = vmatprep.subr.mxu1 %v6416_v11  ;;  %8346 = vmatprep.subr.mxu0 %v6401_v54  ;;  %v1764_v2 = vpop.f32.mrf.mxu0 }
 0x28a   : > { %8393 = vmatpush3.msra.mxu1 %v6416_v11  ;;  %8347 = vmatpush3.msra.mxu0 %v6401_v54  ;;  %v10720_v39 = vadd.f32 %v1869_v47, %v1764_v2  ;;  %v2157_v10 = vpop.f32.mrf.mxu1  ;;  %v6461_v11 = vld [vmem:[%s12637_s3 + $0x7f8] sm:$0xff] }
 0x28b   : > { %8394 = vmatprep.subr.mxu1 %v6415_v35  ;;  %8348 = vmatprep.subr.mxu0 %v6400_v23  ;;  %v7916_v8 = vpop.f32.mrf.mxu0 }
 0x28c   : > { %8395 = vmatpush3.msra.mxu1 %v6415_v35  ;;  %8349 = vmatpush3.msra.mxu0 %v6400_v23  ;;  %v2034_v54 = vadd.f32 %v7916_v8, %v10545_v62  ;;  %v6460_v62 = vld [vmem:[%s12637_s3 + $0x7f0] sm:$0xff]  ;;  %v6445_v23 = vld [vmem:[%s12637_s3 + $0x778] sm:$0xff] }
 0x28d   : > { %8396 = vmatprep.subr.mxu1 %v6414_v60  ;;  %8350 = vmatprep.subr.mxu0 %v6399_v45  ;;  %v7963_v47 = vpop.f32.mrf.mxu1  ;;  %v1994_v2 = vpop.f32.mrf.mxu0 }
 0x28e   : > { %8397 = vmatpush3.msra.mxu1 %v6414_v60  ;;  %8351 = vmatpush3.msra.mxu0 %v6399_v45  ;;  %v2033_v50 = vadd.f32 %v1994_v2, %v10553_v52  ;;  %v10730_v35 = vadd.f32 %v7960_v40, %v2034_v54  ;;  %v6459_v45 = vld [vmem:[%s12637_s3 + $0x7e8] sm:$0xff] }
 0x28f   : > { %8399 = vmatmul.mubr.f32.vlgmr.msra.gmra.mxu1 %v10002_v34  ;;  %8454 = vmatprep.subr.mxu1 %v6461_v11  ;;  %v2167_v52 = vpop.f32.mrf.mxu1  ;;  %v6443_v2 = vld [vmem:[%s12637_s3 + $0x768] sm:$0xff] }
 0x290   : > { %8352 = vmatprep.subr.mxu0 %v6398_v18  ;;  %8401 = vmatprep.mubr.f32.mxu1 %v10015_v12  ;;  %v10740_v60 = vadd.f32 %v2157_v10, %v2033_v50  ;;  %v6444_v50 = vld [vmem:[%s12637_s3 + $0x770] sm:$0xff] }
 0x291   : > { %8455 = vmatpush3.msra.mxu1 %v6461_v11  ;;  %8353 = vmatpush3.msra.mxu0 %v6398_v18  ;;  %v7919_v40 = vpop.f32.mrf.mxu0 }
 0x292   : > { %8456 = vmatprep.subr.mxu1 %v6460_v62  ;;  %8355 = vmatmul.mubr.f32.vlgmr.msra.gmra.mxu0 %v10025_v53  ;;  %v2036_v8 = vadd.f32 %v7919_v40, %v10600_v6  ;;  %v6458_v6 = vld [vmem:[%s12637_s3 + $0x7e0] sm:$0xff] }
 0x293   : > { %8410 = vmatprep.subr.mxu0 %v6445_v23  ;;  %8457 = vmatpush3.msra.mxu1 %v6460_v62  ;;  %v2004_v10 = vpop.f32.mrf.mxu0  ;;  %v7966_v18 = vpop.f32.mrf.mxu1  ;;  %v6442_v40 = vld [vmem:[%s12637_s3 + $0x760] sm:$0xff] }
 0x294   : > { %8357 = vmatprep.mubr.f32.mxu0 %v10035_v7  ;;  %8402 = vmatmul.mubr.f32.gmra.mxu1 %v10038_v27  ;;  %v2035_v11 = vadd.f32 %v2004_v10, %v10607_v5  ;;  %v10753_v54 = vadd.f32 %v7963_v47, %v2036_v8  ;;  %v6457_v47 = vld [vmem:[%s12637_s3 + $0x7d8] sm:$0xff]  ;;  %v3435_v10 = vrot.slane %v10623_v25, 3 }
 0x295   : > { %8411 = vmatpush3.msra.mxu0 %v6445_v23  ;;  %8458 = vmatprep.subr.mxu1 %v6459_v45 }
 0x296   : > { %8404 = vmatprep.mubr.f32.mxu1 %v10051_v3  ;;  %8412 = vmatprep.subr.mxu0 %v6444_v50  ;;  %v10762_v62 = vadd.f32 %v2167_v52, %v2035_v11  ;;  %v2177_v52 = vpop.f32.mrf.mxu1  ;;  %v6441_v11 = vld [vmem:[%s12637_s3 + $0x758] sm:$0xff] }
 0x297   : > { %8459 = vmatpush3.msra.mxu1 %v6459_v45  ;;  %8413 = vmatpush3.msra.mxu0 %v6444_v50  ;;  %v7922_v5 = vpop.f32.mrf.mxu0 }
 0x298   : > { %8460 = vmatprep.subr.mxu1 %v6458_v6  ;;  %8358 = vmatmul.mubr.f32.gmra.mxu0 %v10061_v17  ;;  %v2038_v23 = vadd.f32 %v7922_v5, %v10657_v9  ;;  %v6456_v9 = vld [vmem:[%s12637_s3 + $0x7d0] sm:$0xff]  ;;  %v6455_v5 = vld [vmem:[%s12637_s3 + $0x7c8] sm:$0xff] }
 0x299   : > { %8414 = vmatprep.subr.mxu0 %v6443_v2  ;;  %8461 = vmatpush3.msra.mxu1 %v6458_v6  ;;  %v2014_v8 = vpop.f32.mrf.mxu0 }
 0x29a   : > { %8360 = vmatprep.mubr.f32.mxu0 %v10070_v13  ;;  %8405 = vmatmul.mubr.f32.gmra.mxu1 %v10073_v30  ;;  %v2037_v45 = vadd.f32 %v2014_v8, %v10665_v48  ;;  %v10775_v50 = vadd.f32 %v7966_v18, %v2038_v23  ;;  %v3436_v48 = vrot.slane %v10629_v38, 3  ;;  %v7969_v18 = vpop.f32.mrf.mxu1 }
 0x29b   : > { %8415 = vmatpush3.msra.mxu0 %v6443_v2  ;;  %8462 = vmatprep.subr.mxu1 %v6457_v47 }
 0x29c   : > { %8407 = vmatprep.mubr.f32.mxu1 %v10521_v43  ;;  %8416 = vmatprep.subr.mxu0 %v6442_v40  ;;  %v10785_v6 = vadd.f32 %v2177_v52, %v2037_v45  ;;  %v10794_v52 = vsel %vm2041_vm3, %v3435_v10, %v3436_v48  ;;  %v2187_v10 = vpop.f32.mrf.mxu1  ;;  %v6439_v48 = vld [vmem:[%s12637_s3 + $0x748] sm:$0xff] }
 0x29d   : > { %8463 = vmatpush3.msra.mxu1 %v6457_v47  ;;  %8417 = vmatpush3.msra.mxu0 %v6442_v40  ;;  %v7925_v2 = vpop.f32.mrf.mxu0  ;;  %v6440_v47 = vld [vmem:[%s12637_s3 + $0x750] sm:$0xff]  ;;  %v3301_v40 = vrot.slane %v10623_v25, 2 }
 0x29e   : > { %8464 = vmatprep.subr.mxu1 %v6456_v9  ;;  %8361 = vmatmul.mubr.f32.gmra.mxu0 %v10090_v63  ;;  %v2040_v23 = vadd.f32 %v7925_v2, %v10712_v46  ;;  %v6454_v46 = vld [vmem:[%s12637_s3 + $0x7c0] sm:$0xff] }
 0x29f   : > { %8418 = vmatprep.subr.mxu0 %v6441_v11  ;;  %8465 = vmatpush3.msra.mxu1 %v6456_v9  ;;  %v2024_v8 = vpop.f32.mrf.mxu0  ;;  %v3302_v9 = vrot.slane %v10629_v38, 2 }
 0x2a0   : > { %8363 = vmatprep.mubr.f32.mxu0 %v10360_v42  ;;  %8408 = vmatmul.mubr.f32.gmra.mxu1 %v10794_v52  ;;  %v2039_v45 = vadd.f32 %v2024_v8, %v10720_v39  ;;  %v10803_v55 = vadd.f32 %v7969_v18, %v2040_v23  ;;  %v6438_v18 = vld [vmem:[%s12637_s3 + $0x740] sm:$0xff]  ;;  %v6451_v23 = vld [vmem:[%s12637_s3 + $0x7a8] sm:$0xff]  ;;  %v6449_v8 = vld [vmem:[%s12637_s3 + $0x798] sm:$0xff] }
 0x2a1   : > { %8419 = vmatpush3.msra.mxu0 %v6441_v11  ;;  %8466 = vmatprep.subr.mxu1 %v6455_v5  ;;  %v10816_v39 = vsel %vm1878_vm4, %v3301_v40, %v3302_v9  ;;  %v6453_v11 = vld [vmem:[%s12637_s3 + $0x7b8] sm:$0xff]  ;;  %v6435_v40 = vld [vmem:[%s12637_s3 + $0x728] sm:$0xff] }
 0x2a2   : > { %8420 = vmatprep.subr.mxu0 %v6440_v47  ;;  %8467 = vmatpush3.msra.mxu1 %v6455_v5  ;;  %v10812_v2 = vadd.f32 %v2187_v10, %v2039_v45  ;;  %v6437_v5 = vld [vmem:[%s12637_s3 + $0x738] sm:$0xff]  ;;  %v6434_v45 = vld [vmem:[%s12637_s3 + $0x720] sm:$0xff] }
 0x2a3   : > { %8486 = vmatprep.mubr.f32.mxu1 %v9826_v31  ;;  %8421 = vmatpush3.msra.mxu0 %v6440_v47  ;;  %v6452_v31 = vld [vmem:[%s12637_s3 + $0x7b0] sm:$0xff]  ;;  %v6450_v47 = vld [vmem:[%s12637_s3 + $0x7a0] sm:$0xff]  ;;  %v6433_v9 = vld [vmem:[%s12637_s3 + $0x718] sm:$0xff] }
 0x2a4   : > { %8468 = vmatprep.subr.mxu1 %v6454_v46  ;;  %8364 = vmatmul.mubr.f32.gmra.mxu0 %v10816_v39 }
 0x2a5   : > { %8422 = vmatprep.subr.mxu0 %v6439_v48  ;;  %8469 = vmatpush3.msra.mxu1 %v6454_v46  ;;  %v6448_v46 = vld [vmem:[%s12637_s3 + $0x790] sm:$0xff] }
 0x2a6   : > { %8423 = vmatpush3.msra.mxu0 %v6439_v48  ;;  %8442 = vmatprep.mubr.f32.mxu0 %v10171_v14  ;;  %v6436_v14 = vld [vmem:[%s12637_s3 + $0x730] sm:$0xff]  ;;  %v6447_v48 = vld [vmem:[%s12637_s3 + $0x788] sm:$0xff] }
 0x2a7   : > { %8470 = vmatprep.subr.mxu1 %v6453_v11  ;;  %8424 = vmatprep.subr.mxu0 %v6438_v18 }
 0x2a8   : > { %8471 = vmatpush3.msra.mxu1 %v6453_v11  ;;  %8425 = vmatpush3.msra.mxu0 %v6438_v18  ;;  %v6432_v11 = vld [vmem:[%s12637_s3 + $0x710] sm:$0xff] }
 0x2a9   : > { %8472 = vmatprep.subr.mxu1 %v6452_v31  ;;  %8426 = vmatprep.subr.mxu0 %v6437_v5 }
 0x2aa   : > { %8473 = vmatpush3.msra.mxu1 %v6452_v31  ;;  %8427 = vmatpush3.msra.mxu0 %v6437_v5  ;;  %v6446_v31 = vld [vmem:[%s12637_s3 + $0x780] sm:$0xff]  ;;  %v6431_v5 = vld [vmem:[%s12637_s3 + $0x708] sm:$0xff] }
 0x2ab   : > { %8474 = vmatprep.subr.mxu1 %v6451_v23  ;;  %8428 = vmatprep.subr.mxu0 %v6436_v14 }
 0x2ac   : > { %8475 = vmatpush3.msra.mxu1 %v6451_v23  ;;  %8429 = vmatpush3.msra.mxu0 %v6436_v14 }
 0x2ad   : > { %8476 = vmatprep.subr.mxu1 %v6450_v47  ;;  %8430 = vmatprep.subr.mxu0 %v6435_v40 }
 0x2ae   : > { %8477 = vmatpush3.msra.mxu1 %v6450_v47  ;;  %8431 = vmatpush3.msra.mxu0 %v6435_v40  ;;  %v6493_v47 = vld [vmem:[%s12637_s3 + $0x8f8] sm:$0xff] }
 0x2af   : > { %8478 = vmatprep.subr.mxu1 %v6449_v8  ;;  %8432 = vmatprep.subr.mxu0 %v6434_v45  ;;  %v8048_v10 = vpop.f32.mrf.mxu1 }
 0x2b0   : > { %8479 = vmatpush3.msra.mxu1 %v6449_v8  ;;  %8433 = vmatpush3.msra.mxu0 %v6434_v45  ;;  %v6430_v45 = vld [vmem:[%s12637_s3 + $0x700] sm:$0xff] }
 0x2b1   : > { %8480 = vmatprep.subr.mxu1 %v6448_v46  ;;  %8434 = vmatprep.subr.mxu0 %v6433_v9  ;;  %v2450_v18 = vpop.f32.mrf.mxu1 }
 0x2b2   : > { %8481 = vmatpush3.msra.mxu1 %v6448_v46  ;;  %8435 = vmatpush3.msra.mxu0 %v6433_v9  ;;  %v8004_v23 = vpop.f32.mrf.mxu0 }
 0x2b3   : > { %8482 = vmatprep.subr.mxu1 %v6447_v48  ;;  %8436 = vmatprep.subr.mxu0 %v6432_v11  ;;  %v2360_v14 = vadd.f32 %v8004_v23, %v10730_v35  ;;  %v6492_v35 = vld [vmem:[%s12637_s3 + $0x8f0] sm:$0xff] }
 0x2b4   : > { %8483 = vmatpush3.msra.mxu1 %v6447_v48  ;;  %8437 = vmatpush3.msra.mxu0 %v6432_v11  ;;  %v8051_v40 = vpop.f32.mrf.mxu1  ;;  %v2320_v8 = vpop.f32.mrf.mxu0 }
 0x2b5   : > { %8484 = vmatprep.subr.mxu1 %v6446_v31  ;;  %8438 = vmatprep.subr.mxu0 %v6431_v5  ;;  %v2359_v46 = vadd.f32 %v2320_v8, %v10740_v60  ;;  %v10876_v9 = vadd.f32 %v8048_v10, %v2360_v14  ;;  %v6477_v60 = vld [vmem:[%s12637_s3 + $0x878] sm:$0xff]  ;;  %v6476_v14 = vld [vmem:[%s12637_s3 + $0x870] sm:$0xff]  ;;  %v6490_v8 = vld [vmem:[%s12637_s3 + $0x8e0] sm:$0xff] }
 0x2b6   : > { %8485 = vmatpush3.msra.mxu1 %v6446_v31  ;;  %8439 = vmatpush3.msra.mxu0 %v6431_v5  ;;  %v2460_v10 = vpop.f32.mrf.mxu1  ;;  %v917_v5 = vmax.f32 %v9701_v44, %v9715_v51 }
 0x2b7   : > { %8487 = vmatmul.mubr.f32.vlgmr.msra.gmra.mxu1 %v9861_v0  ;;  %8542 = vmatprep.subr.mxu1 %v6493_v47  ;;  %v10882_v48 = vadd.f32 %v2450_v18, %v2359_v46  ;;  %v6491_v18 = vld [vmem:[%s12637_s3 + $0x8e8] sm:$0xff] }
 0x2b8   : > { %8440 = vmatprep.subr.mxu0 %v6430_v45  ;;  %8489 = vmatprep.mubr.f32.mxu1 %v9902_v37  ;;  %v8007_v11 = vpop.f32.mrf.mxu0  ;;  %v1222_v44 = vmax.f32 %v917_v5, %v10490_v59  ;;  %v6475_v59 = vld [vmem:[%s12637_s3 + $0x868] sm:$0xff] }
 0x2b9   : > { %8543 = vmatpush3.msra.mxu1 %v6493_v47  ;;  %8441 = vmatpush3.msra.mxu0 %v6430_v45  ;;  %v2362_v31 = vadd.f32 %v8007_v11, %v10753_v54 }
 0x2ba   : > { %8544 = vmatprep.subr.mxu1 %v6492_v35  ;;  %8443 = vmatmul.mubr.f32.vlgmr.msra.gmra.mxu0 %v10189_v19  ;;  %v2330_v23 = vpop.f32.mrf.mxu0  ;;  %v8054_v51 = vpop.f32.mrf.mxu1  ;;  %v1527_v46 = vmax.f32 %v1222_v44, %v10480_v22 }
 0x2bb   : > { %8498 = vmatprep.subr.mxu0 %v6477_v60  ;;  %8545 = vmatpush3.msra.mxu1 %v6492_v35  ;;  %v2361_v47 = vadd.f32 %v2330_v23, %v10762_v62  ;;  %v10899_v54 = vadd.f32 %v8051_v40, %v2362_v31  ;;  %v6489_v35 = vld [vmem:[%s12637_s3 + $0x8d8] sm:$0xff] }
 0x2bc   : > { %8445 = vmatprep.mubr.f32.mxu0 %v10197_v24  ;;  %8490 = vmatmul.mubr.f32.gmra.mxu1 %v9937_v57  ;;  %v2470_v22 = vpop.f32.mrf.mxu1  ;;  %v6473_v23 = vld [vmem:[%s12637_s3 + $0x858] sm:$0xff] }
 0x2bd   : > { %8499 = vmatpush3.msra.mxu0 %v6477_v60  ;;  %8546 = vmatprep.subr.mxu1 %v6491_v18  ;;  %v10907_v45 = vadd.f32 %v2460_v10, %v2361_v47  ;;  %v6474_v10 = vld [vmem:[%s12637_s3 + $0x860] sm:$0xff] }
 0x2be   : > { %8492 = vmatprep.mubr.f32.mxu1 %v9951_v16  ;;  %8500 = vmatprep.subr.mxu0 %v6476_v14  ;;  %v8010_v62 = vpop.f32.mrf.mxu0 }
 0x2bf   : > { %8547 = vmatpush3.msra.mxu1 %v6491_v18  ;;  %8501 = vmatpush3.msra.mxu0 %v6476_v14  ;;  %v2364_v40 = vadd.f32 %v8010_v62, %v10775_v50  ;;  %v10928_v50 = vld [vmem:[%s12636_s2] ss:$0 sm:$0xff]  ;;  %v6488_v18 = vld [vmem:[%s12637_s3 + $0x8d0] sm:$0xff]  ;;  %v3569_v62 = vrot.slane %v10623_v25, 4 }
 0x2c0   : > { %8548 = vmatprep.subr.mxu1 %v6490_v8  ;;  %8446 = vmatmul.mubr.f32.gmra.mxu0 %v10216_v32  ;;  %v2340_v60 = vpop.f32.mrf.mxu0  ;;  %v1558_v5 = vadd.f32 %v10928_v50, %v1527_v46  ;;  %v8057_v14 = vpop.f32.mrf.mxu1 }
 0x2c1   : > { %8502 = vmatprep.subr.mxu0 %v6475_v59  ;;  %8549 = vmatpush3.msra.mxu1 %v6490_v8  ;;  %v2363_v11 = vadd.f32 %v2340_v60, %v10785_v6  ;;  %v10923_v31 = vadd.f32 %v8054_v51, %v2364_v40  ;;  %v6487_v8 = vld [vmem:[%s12637_s3 + $0x8c8] sm:$0xff]  ;;  %v3570_v60 = vrot.slane %v10629_v38, 4  ;;  %v6485_v38 = vld [vmem:[%s12637_s3 + $0x8b8] sm:$0xff] }
 0x2c2   : > { %8448 = vmatprep.mubr.f32.mxu0 %v10226_v21  ;;  %8493 = vmatmul.mubr.f32.gmra.mxu1 %v10219_v28  ;;  %v10943_v51 = vmax.f32 %v1558_v5, 0.0  ;;  %v6470_v5 = vld [vmem:[%s12637_s3 + $0x840] sm:$0xff] }
 0x2c3   : > { %8503 = vmatpush3.msra.mxu0 %v6475_v59  ;;  %8550 = vmatprep.subr.mxu1 %v6489_v35  ;;  %v10936_v6 = vadd.f32 %v2470_v22, %v2363_v11  ;;  %v6472_v59 = vld [vmem:[%s12637_s3 + $0x850] sm:$0xff]  ;;  %v6486_v22 = vld [vmem:[%s12637_s3 + $0x8c0] sm:$0xff]  ;;  %v10969_v11 = vsel %vm2204_vm2, %v3569_v62, %v3570_v60 }
 0x2c4   : > { %8495 = vmatprep.mubr.f32.mxu1 %v10623_v25  ;;  %8504 = vmatprep.subr.mxu0 %v6474_v10  ;;  %v8013_v47 = vpop.f32.mrf.mxu0  ;;  %v6478_v60 = vld [vmem:[%s12637_s3 + $0x880] sm:$0xff] }
 0x2c5   : > { %8551 = vmatpush3.msra.mxu1 %v6489_v35  ;;  %8505 = vmatpush3.msra.mxu0 %v6474_v10  ;;  %v2366_v44 = vadd.f32 %v8013_v47, %v10803_v55  ;;  %v2480_v35 = vpop.f32.mrf.mxu1  ;;  %v6467_v47 = vld [vmem:[%s12637_s3 + $0x828] sm:$0xff] }
 0x2c6   : > { %8552 = vmatprep.subr.mxu1 %v6488_v18  ;;  %8449 = vmatmul.mubr.f32.gmra.mxu0 %v10243_v1  ;;  %v2350_v46 = vpop.f32.mrf.mxu0 }
 0x2c7   : > { %8506 = vmatprep.subr.mxu0 %v6473_v23  ;;  %8553 = vmatpush3.msra.mxu1 %v6488_v18  ;;  %v2365_v55 = vadd.f32 %v2350_v46, %v10812_v2  ;;  %v10954_v40 = vadd.f32 %v8057_v14, %v2366_v44  ;;  %v6471_v2 = vld [vmem:[%s12637_s3 + $0x848] sm:$0xff]  ;;  %v6469_v18 = vld [vmem:[%s12637_s3 + $0x838] sm:$0xff]  ;;  %v6482_v14 = vld [vmem:[%s12637_s3 + $0x8a0] sm:$0xff] }
 0x2c8   : > { %8451 = vmatprep.mubr.f32.mxu0 %v10500_v4  ;;  %8496 = vmatmul.mubr.f32.gmra.mxu1 %v10943_v51  ;;  %v6481_v44 = vld [vmem:[%s12637_s3 + $0x898] sm:$0xff]  ;;  %v6480_v46 = vld [vmem:[%s12637_s3 + $0x890] sm:$0xff] }
 0x2c9   : > { %8507 = vmatpush3.msra.mxu0 %v6473_v23  ;;  %8554 = vmatprep.subr.mxu1 %v6487_v8  ;;  %v10962_v10 = vadd.f32 %v2480_v35, %v2365_v55  ;;  %v6483_v23 = vld [vmem:[%s12637_s3 + $0x8a8] sm:$0xff]  ;;  %v6464_v35 = vld [vmem:[%s12637_s3 + $0x810] sm:$0xff] }
 0x2ca   : > { %8508 = vmatprep.subr.mxu0 %v6472_v59  ;;  %8555 = vmatpush3.msra.mxu1 %v6487_v8  ;;  %v6466_v8 = vld [vmem:[%s12637_s3 + $0x820] sm:$0xff]  ;;  %v6479_v55 = vld [vmem:[%s12637_s3 + $0x888] sm:$0xff] }
 0x2cb   : > { %8574 = vmatprep.mubr.f32.mxu1 %v10025_v53  ;;  %8509 = vmatpush3.msra.mxu0 %v6472_v59  ;;  %v6484_v53 = vld [vmem:[%s12637_s3 + $0x8b0] sm:$0xff]  ;;  %v6465_v59 = vld [vmem:[%s12637_s3 + $0x818] sm:$0xff] }
 0x2cc   : > { %8556 = vmatprep.subr.mxu1 %v6486_v22  ;;  %8452 = vmatmul.mubr.f32.gmra.mxu0 %v10969_v11 }
 0x2cd   : > { %8510 = vmatprep.subr.mxu0 %v6471_v2  ;;  %8557 = vmatpush3.msra.mxu1 %v6486_v22 }
 0x2ce   : > { %8511 = vmatpush3.msra.mxu0 %v6471_v2  ;;  %8530 = vmatprep.mubr.f32.mxu0 %v9842_v58  ;;  %v6468_v58 = vld [vmem:[%s12637_s3 + $0x830] sm:$0xff]  ;;  %v6463_v2 = vld [vmem:[%s12637_s3 + $0x808] sm:$0xff] }
 0x2cf   : > { %8558 = vmatprep.subr.mxu1 %v6485_v38  ;;  %8512 = vmatprep.subr.mxu0 %v6470_v5 }
 0x2d0   : > { %8559 = vmatpush3.msra.mxu1 %v6485_v38  ;;  %8513 = vmatpush3.msra.mxu0 %v6470_v5 }
 0x2d1   : > { %8560 = vmatprep.subr.mxu1 %v6484_v53  ;;  %8514 = vmatprep.subr.mxu0 %v6469_v18 }
 0x2d2   : > { %8561 = vmatpush3.msra.mxu1 %v6484_v53  ;;  %8515 = vmatpush3.msra.mxu0 %v6469_v18  ;;  %v6525_v53 = vld [vmem:[%s12637_s3 + $0x9f8] sm:$0xff] }
 0x2d3   : > { %8562 = vmatprep.subr.mxu1 %v6483_v23  ;;  %8516 = vmatprep.subr.mxu0 %v6468_v58 }
 0x2d4   : > { %8563 = vmatpush3.msra.mxu1 %v6483_v23  ;;  %8517 = vmatpush3.msra.mxu0 %v6468_v58  ;;  %v918_v58 = vmax.f32 %v9695_v41, %v9711_v49  ;;  %v6524_v41 = vld [vmem:[%s12637_s3 + $0x9f0] sm:$0xff] }
 0x2d5   : > { %8564 = vmatprep.subr.mxu1 %v6482_v14  ;;  %8518 = vmatprep.subr.mxu0 %v6467_v47 }
 0x2d6   : > { %8565 = vmatpush3.msra.mxu1 %v6482_v14  ;;  %8519 = vmatpush3.msra.mxu0 %v6467_v47  ;;  %v6462_v14 = vld [vmem:[%s12637_s3 + $0x800] sm:$0xff] }
 0x2d7   : > { %8566 = vmatprep.subr.mxu1 %v6481_v44  ;;  %8520 = vmatprep.subr.mxu0 %v6466_v8  ;;  %v8136_v62 = vpop.f32.mrf.mxu1 }
 0x2d8   : > { %8567 = vmatpush3.msra.mxu1 %v6481_v44  ;;  %8521 = vmatpush3.msra.mxu0 %v6466_v8  ;;  %v1223_v44 = vmax.f32 %v918_v58, %v10473_v20 }
 0x2d9   : > { %8568 = vmatprep.subr.mxu1 %v6480_v46  ;;  %8522 = vmatprep.subr.mxu0 %v6465_v59  ;;  %v2720_v22 = vpop.f32.mrf.mxu1 }
 0x2da   : > { %8569 = vmatpush3.msra.mxu1 %v6480_v46  ;;  %8523 = vmatpush3.msra.mxu0 %v6465_v59  ;;  %v8092_v38 = vpop.f32.mrf.mxu0  ;;  %v1528_v20 = vmax.f32 %v1223_v44, %v10467_v61 }
 0x2db   : > { %8570 = vmatprep.subr.mxu1 %v6479_v55  ;;  %8524 = vmatprep.subr.mxu0 %v6464_v35  ;;  %v2626_v5 = vadd.f32 %v8092_v38, %v10876_v9 }
 0x2dc   : > { %8571 = vmatpush3.msra.mxu1 %v6479_v55  ;;  %8525 = vmatpush3.msra.mxu0 %v6464_v35  ;;  %v8139_v18 = vpop.f32.mrf.mxu1  ;;  %v2586_v23 = vpop.f32.mrf.mxu0  ;;  %v6508_v35 = vld [vmem:[%s12637_s3 + $0x970] sm:$0xff] }
 0x2dd   : > { %8572 = vmatprep.subr.mxu1 %v6478_v60  ;;  %8526 = vmatprep.subr.mxu0 %v6463_v2  ;;  %v2625_v47 = vadd.f32 %v2586_v23, %v10882_v48  ;;  %v11031_v9 = vadd.f32 %v8136_v62, %v2626_v5  ;;  %v6509_v48 = vld [vmem:[%s12637_s3 + $0x978] sm:$0xff]  ;;  %v6523_v62 = vld [vmem:[%s12637_s3 + $0x9e8] sm:$0xff] }
 0x2de   : > { %8573 = vmatpush3.msra.mxu1 %v6478_v60  ;;  %8527 = vmatpush3.msra.mxu0 %v6463_v2  ;;  %v2730_v8 = vpop.f32.mrf.mxu1  ;;  %v1559_v60 = vadd.f32 %v10928_v50, %v1528_v20  ;;  %v6522_v2 = vld [vmem:[%s12637_s3 + $0x9e0] sm:$0xff] }
 0x2df   : > { %8575 = vmatmul.mubr.f32.vlgmr.msra.gmra.mxu1 %v10035_v7  ;;  %8630 = vmatprep.subr.mxu1 %v6525_v53  ;;  %v11038_v49 = vadd.f32 %v2720_v22, %v2625_v47  ;;  %v6506_v47 = vld [vmem:[%s12637_s3 + $0x960] sm:$0xff] }
 0x2e0   : > { %8528 = vmatprep.subr.mxu0 %v6462_v14  ;;  %8577 = vmatprep.mubr.f32.mxu1 %v10061_v17  ;;  %v8095_v46 = vpop.f32.mrf.mxu0 }
 0x2e1   : > { %8631 = vmatpush3.msra.mxu1 %v6525_v53  ;;  %8529 = vmatpush3.msra.mxu0 %v6462_v14  ;;  %v2628_v59 = vadd.f32 %v8095_v46, %v10899_v54  ;;  %v11073_v14 = vmax.f32 %v1559_v60, 0.0  ;;  %v3835_v60 = vrot.slane %v10943_v51, 1 }
 0x2e2   : > { %8632 = vmatprep.subr.mxu1 %v6524_v41  ;;  %8531 = vmatmul.mubr.f32.vlgmr.msra.gmra.mxu0 %v9880_v33  ;;  %v2596_v55 = vpop.f32.mrf.mxu0  ;;  %v8142_v54 = vpop.f32.mrf.mxu1 }
 0x2e3   : > { %8586 = vmatprep.subr.mxu0 %v6509_v48  ;;  %8633 = vmatpush3.msra.mxu1 %v6524_v41  ;;  %v2627_v61 = vadd.f32 %v2596_v55, %v10907_v45  ;;  %v11054_v22 = vadd.f32 %v8139_v18, %v2628_v59  ;;  %v6507_v45 = vld [vmem:[%s12637_s3 + $0x968] sm:$0xff]  ;;  %v6521_v18 = vld [vmem:[%s12637_s3 + $0x9d8] sm:$0xff]  ;;  %v6520_v41 = vld [vmem:[%s12637_s3 + $0x9d0] sm:$0xff]  ;;  %v3970_v59 = vrot.slane %v11073_v14, 2 }
 0x2e4   : > { %8533 = vmatprep.mubr.f32.mxu0 %v9920_v36  ;;  %8578 = vmatmul.mubr.f32.gmra.mxu1 %v10070_v13  ;;  %v2740_v23 = vpop.f32.mrf.mxu1  ;;  %v6519_v55 = vld [vmem:[%s12637_s3 + $0x9c8] sm:$0xff] }
 0x2e5   : > { %8587 = vmatpush3.msra.mxu0 %v6509_v48  ;;  %8634 = vmatprep.subr.mxu1 %v6523_v62  ;;  %v11062_v38 = vadd.f32 %v2730_v8, %v2627_v61  ;;  %v3969_v48 = vrot.slane %v10943_v51, 2 }
 0x2e6   : > { %8580 = vmatprep.mubr.f32.mxu1 %v10090_v63  ;;  %8588 = vmatprep.subr.mxu0 %v6508_v35  ;;  %v8098_v5 = vpop.f32.mrf.mxu0 }
 0x2e7   : > { %8635 = vmatpush3.msra.mxu1 %v6523_v62  ;;  %8589 = vmatpush3.msra.mxu0 %v6508_v35  ;;  %v2630_v53 = vadd.f32 %v8098_v5, %v10923_v31  ;;  %v11100_v61 = vsel %vm1878_vm4, %v3969_v48, %v3970_v59  ;;  %v6518_v5 = vld [vmem:[%s12637_s3 + $0x9c0] sm:$0xff]  ;;  %v6512_v59 = vld [vmem:[%s12637_s3 + $0x990] sm:$0xff] }
 0x2e8   : > { %8636 = vmatprep.subr.mxu1 %v6522_v2  ;;  %8534 = vmatmul.mubr.f32.gmra.mxu0 %v9944_v26  ;;  %v2606_v58 = vpop.f32.mrf.mxu0  ;;  %v8145_v46 = vpop.f32.mrf.mxu1  ;;  %v6514_v48 = vld [vmem:[%s12637_s3 + $0x9a0] sm:$0xff] }
 0x2e9   : > { %8590 = vmatprep.subr.mxu0 %v6507_v45  ;;  %8637 = vmatpush3.msra.mxu1 %v6522_v2  ;;  %v2629_v44 = vadd.f32 %v2606_v58, %v10936_v6  ;;  %v11079_v31 = vadd.f32 %v8142_v54, %v2630_v53  ;;  %v6505_v6 = vld [vmem:[%s12637_s3 + $0x958] sm:$0xff]  ;;  %v6504_v54 = vld [vmem:[%s12637_s3 + $0x950] sm:$0xff]  ;;  %v3836_v53 = vrot.slane %v11073_v14, 1 }
 0x2ea   : > { %8536 = vmatprep.mubr.f32.mxu0 %v9964_v15  ;;  %8581 = vmatmul.mubr.f32.gmra.mxu1 %v10360_v42  ;;  %v6517_v58 = vld [vmem:[%s12637_s3 + $0x9b8] sm:$0xff] }
 0x2eb   : > { %8591 = vmatpush3.msra.mxu0 %v6507_v45  ;;  %8638 = vmatprep.subr.mxu1 %v6521_v18  ;;  %v11087_v8 = vadd.f32 %v2740_v23, %v2629_v44  ;;  %v2750_v45 = vpop.f32.mrf.mxu1  ;;  %v11122_v23 = vsel %vm1618_vm1, %v3835_v60, %v3836_v53  ;;  %v6501_v44 = vld [vmem:[%s12637_s3 + $0x938] sm:$0xff] }
 0x2ec   : > { %8583 = vmatprep.mubr.f32.mxu1 %v10816_v39  ;;  %8592 = vmatprep.subr.mxu0 %v6506_v47  ;;  %v8101_v20 = vpop.f32.mrf.mxu0 }
 0x2ed   : > { %8639 = vmatpush3.msra.mxu1 %v6521_v18  ;;  %8593 = vmatpush3.msra.mxu0 %v6506_v47  ;;  %v2632_v62 = vadd.f32 %v8101_v20, %v10954_v40  ;;  %v6502_v47 = vld [vmem:[%s12637_s3 + $0x940] sm:$0xff] }
 0x2ee   : > { %8640 = vmatprep.subr.mxu1 %v6520_v41  ;;  %8537 = vmatmul.mubr.f32.gmra.mxu0 %v10377_v56  ;;  %v2616_v35 = vpop.f32.mrf.mxu0  ;;  %v6498_v20 = vld [vmem:[%s12637_s3 + $0x920] sm:$0xff] }
 0x2ef   : > { %8594 = vmatprep.subr.mxu0 %v6505_v6  ;;  %8641 = vmatpush3.msra.mxu1 %v6520_v41  ;;  %v2631_v40 = vadd.f32 %v2616_v35, %v10962_v10  ;;  %v11107_v2 = vadd.f32 %v8145_v46, %v2632_v62  ;;  %v6503_v10 = vld [vmem:[%s12637_s3 + $0x948] sm:$0xff]  ;;  %v6513_v46 = vld [vmem:[%s12637_s3 + $0x998] sm:$0xff] }
 0x2f0   : > { %8539 = vmatprep.mubr.f32.mxu0 %v10650_v29  ;;  %8584 = vmatmul.mubr.f32.gmra.mxu1 %v11100_v61  ;;  %v6515_v41 = vld [vmem:[%s12637_s3 + $0x9a8] sm:$0xff]  ;;  %v6497_v62 = vld [vmem:[%s12637_s3 + $0x918] sm:$0xff] }
 0x2f1   : > { %8595 = vmatpush3.msra.mxu0 %v6505_v6  ;;  %8642 = vmatprep.subr.mxu1 %v6519_v55  ;;  %v11115_v18 = vadd.f32 %v2750_v45, %v2631_v40  ;;  %v6499_v6 = vld [vmem:[%s12637_s3 + $0x928] sm:$0xff]  ;;  %v6510_v40 = vld [vmem:[%s12637_s3 + $0x980] sm:$0xff] }
 0x2f2   : > { %8596 = vmatprep.subr.mxu0 %v6504_v54  ;;  %8643 = vmatpush3.msra.mxu1 %v6519_v55  ;;  %v6511_v35 = vld [vmem:[%s12637_s3 + $0x988] sm:$0xff] }
 0x2f3   : > { %8662 = vmatprep.mubr.f32.mxu1 %v10189_v19  ;;  %8597 = vmatpush3.msra.mxu0 %v6504_v54  ;;  %v6516_v19 = vld [vmem:[%s12637_s3 + $0x9b0] sm:$0xff]  ;;  %v6495_v45 = vld [vmem:[%s12637_s3 + $0x908] sm:$0xff] }
 0x2f4   : > { %8644 = vmatprep.subr.mxu1 %v6518_v5  ;;  %8540 = vmatmul.mubr.f32.gmra.mxu0 %v11122_v23  ;;  %v6496_v54 = vld [vmem:[%s12637_s3 + $0x910] sm:$0xff] }
 0x2f5   : > { %8598 = vmatprep.subr.mxu0 %v6503_v10  ;;  %8645 = vmatpush3.msra.mxu1 %v6518_v5 }
 0x2f6   : > { %8599 = vmatpush3.msra.mxu0 %v6503_v10  ;;  %8618 = vmatprep.mubr.f32.mxu0 %v10002_v34  ;;  %v6500_v34 = vld [vmem:[%s12637_s3 + $0x930] sm:$0xff]  ;;  %v6557_v10 = vld [vmem:[%s12637_s3 + $0xaf8] sm:$0xff] }
 0x2f7   : > { %8646 = vmatprep.subr.mxu1 %v6517_v58  ;;  %8600 = vmatprep.subr.mxu0 %v6502_v47 }
 0x2f8   : > { %8647 = vmatpush3.msra.mxu1 %v6517_v58  ;;  %8601 = vmatpush3.msra.mxu0 %v6502_v47 }
 0x2f9   : > { %8648 = vmatprep.subr.mxu1 %v6516_v19  ;;  %8602 = vmatprep.subr.mxu0 %v6501_v44 }
 0x2fa   : > { %8649 = vmatpush3.msra.mxu1 %v6516_v19  ;;  %8603 = vmatpush3.msra.mxu0 %v6501_v44  ;;  %v6494_v19 = vld [vmem:[%s12637_s3 + $0x900] sm:$0xff] }
 0x2fb   : > { %8650 = vmatprep.subr.mxu1 %v6515_v41  ;;  %8604 = vmatprep.subr.mxu0 %v6500_v34 }
 0x2fc   : > { %8651 = vmatpush3.msra.mxu1 %v6515_v41  ;;  %8605 = vmatpush3.msra.mxu0 %v6500_v34 }
 0x2fd   : > { %8652 = vmatprep.subr.mxu1 %v6514_v48  ;;  %8606 = vmatprep.subr.mxu0 %v6499_v6 }
 0x2fe   : > { %8653 = vmatpush3.msra.mxu1 %v6514_v48  ;;  %8607 = vmatpush3.msra.mxu0 %v6499_v6 }
 0x2ff   : > { %8654 = vmatprep.subr.mxu1 %v6513_v46  ;;  %8608 = vmatprep.subr.mxu0 %v6498_v20  ;;  %v8224_v55 = vpop.f32.mrf.mxu1 }
 0x300   : > { %8655 = vmatpush3.msra.mxu1 %v6513_v46  ;;  %8609 = vmatpush3.msra.mxu0 %v6498_v20  ;;  %v6555_v20 = vld [vmem:[%s12637_s3 + $0xae8] sm:$0xff] }
 0x301   : > { %8656 = vmatprep.subr.mxu1 %v6512_v59  ;;  %8610 = vmatprep.subr.mxu0 %v6497_v62  ;;  %v2988_v60 = vpop.f32.mrf.mxu1 }
 0x302   : > { %8657 = vmatpush3.msra.mxu1 %v6512_v59  ;;  %8611 = vmatpush3.msra.mxu0 %v6497_v62  ;;  %v8180_v5 = vpop.f32.mrf.mxu0  ;;  %v6540_v62 = vld [vmem:[%s12637_s3 + $0xa70] sm:$0xff] }
 0x303   : > { %8658 = vmatprep.subr.mxu1 %v6511_v35  ;;  %8612 = vmatprep.subr.mxu0 %v6496_v54  ;;  %v2894_v53 = vadd.f32 %v8180_v5, %v11031_v9  ;;  %v6556_v9 = vld [vmem:[%s12637_s3 + $0xaf0] sm:$0xff]  ;;  %v6553_v5 = vld [vmem:[%s12637_s3 + $0xad8] sm:$0xff] }
 0x304   : > { %8659 = vmatpush3.msra.mxu1 %v6511_v35  ;;  %8613 = vmatpush3.msra.mxu0 %v6496_v54  ;;  %v8227_v58 = vpop.f32.mrf.mxu1  ;;  %v2854_v47 = vpop.f32.mrf.mxu0  ;;  %v6554_v54 = vld [vmem:[%s12637_s3 + $0xae0] sm:$0xff] }
 0x305   : > { %8660 = vmatprep.subr.mxu1 %v6510_v40  ;;  %8614 = vmatprep.subr.mxu0 %v6495_v45  ;;  %v2893_v44 = vadd.f32 %v2854_v47, %v11038_v49  ;;  %v11182_v41 = vadd.f32 %v8224_v55, %v2894_v53  ;;  %v6541_v49 = vld [vmem:[%s12637_s3 + $0xa78] sm:$0xff] }
 0x306   : > { %8661 = vmatpush3.msra.mxu1 %v6510_v40  ;;  %8615 = vmatpush3.msra.mxu0 %v6495_v45  ;;  %v2998_v48 = vpop.f32.mrf.mxu1 }
 0x307   : > { %8663 = vmatmul.mubr.f32.vlgmr.msra.gmra.mxu1 %v10197_v24  ;;  %8718 = vmatprep.subr.mxu1 %v6557_v10  ;;  %v11188_v34 = vadd.f32 %v2988_v60, %v2893_v44  ;;  %v4237_v44 = vrot.slane %v10943_v51, 4 }
 0x308   : > { %8616 = vmatprep.subr.mxu0 %v6494_v19  ;;  %8665 = vmatprep.mubr.f32.mxu1 %v10216_v32  ;;  %v8183_v6 = vpop.f32.mrf.mxu0 }
 0x309   : > { %8719 = vmatpush3.msra.mxu1 %v6557_v10  ;;  %8617 = vmatpush3.msra.mxu0 %v6494_v19  ;;  %v2896_v46 = vadd.f32 %v8183_v6, %v11054_v22  ;;  %v4238_v6 = vrot.slane %v11073_v14, 4 }
 0x30a   : > { %8720 = vmatprep.subr.mxu1 %v6556_v9  ;;  %8619 = vmatmul.mubr.f32.vlgmr.msra.gmra.mxu0 %v10015_v12  ;;  %v2864_v59 = vpop.f32.mrf.mxu0  ;;  %v8230_v22 = vpop.f32.mrf.mxu1 }
 0x30b   : > { %8674 = vmatprep.subr.mxu0 %v6541_v49  ;;  %8721 = vmatpush3.msra.mxu1 %v6556_v9  ;;  %v2895_v55 = vadd.f32 %v2864_v59, %v11062_v38  ;;  %v11203_v35 = vadd.f32 %v8227_v58, %v2896_v46  ;;  %v6539_v38 = vld [vmem:[%s12637_s3 + $0xa68] sm:$0xff]  ;;  %v6538_v58 = vld [vmem:[%s12637_s3 + $0xa60] sm:$0xff] }
 0x30c   : > { %8621 = vmatprep.mubr.f32.mxu0 %v10038_v27  ;;  %8666 = vmatmul.mubr.f32.gmra.mxu1 %v10226_v21  ;;  %v3008_v53 = vpop.f32.mrf.mxu1 }
 0x30d   : > { %8675 = vmatpush3.msra.mxu0 %v6541_v49  ;;  %8722 = vmatprep.subr.mxu1 %v6555_v20  ;;  %v11210_v60 = vadd.f32 %v2998_v48, %v2895_v55  ;;  %v6536_v55 = vld [vmem:[%s12637_s3 + $0xa50] sm:$0xff] }
 0x30e   : > { %8668 = vmatprep.mubr.f32.mxu1 %v10243_v1  ;;  %8676 = vmatprep.subr.mxu0 %v6540_v62  ;;  %v8186_v40 = vpop.f32.mrf.mxu0 }
 0x30f   : > { %8723 = vmatpush3.msra.mxu1 %v6555_v20  ;;  %8677 = vmatpush3.msra.mxu0 %v6540_v62  ;;  %v2898_v45 = vadd.f32 %v8186_v40, %v11079_v31  ;;  %v6552_v31 = vld [vmem:[%s12637_s3 + $0xad0] sm:$0xff]  ;;  %v6551_v20 = vld [vmem:[%s12637_s3 + $0xac8] sm:$0xff]  ;;  %v11246_v62 = vsel %vm2204_vm2, %v4237_v44, %v4238_v6  ;;  %v6550_v40 = vld [vmem:[%s12637_s3 + $0xac0] sm:$0xff] }
 0x310   : > { %8724 = vmatprep.subr.mxu1 %v6554_v54  ;;  %8622 = vmatmul.mubr.f32.gmra.mxu0 %v10051_v3  ;;  %v2874_v10 = vpop.f32.mrf.mxu0  ;;  %v8233_v49 = vpop.f32.mrf.mxu1  ;;  %v6531_v44 = vld [vmem:[%s12637_s3 + $0xa28] sm:$0xff]  ;;  %v6529_v6 = vld [vmem:[%s12637_s3 + $0xa18] sm:$0xff] }
 0x311   : > { %8678 = vmatprep.subr.mxu0 %v6539_v38  ;;  %8725 = vmatpush3.msra.mxu1 %v6554_v54  ;;  %v2897_v47 = vadd.f32 %v2874_v10, %v11087_v8  ;;  %v11225_v19 = vadd.f32 %v8230_v22, %v2898_v45  ;;  %v6537_v8 = vld [vmem:[%s12637_s3 + $0xa58] sm:$0xff]  ;;  %v4103_v22 = vrot.slane %v10943_v51, 3  ;;  %v4104_v45 = vrot.slane %v11073_v14, 3  ;;  %v6534_v10 = vld [vmem:[%s12637_s3 + $0xa40] sm:$0xff] }
 0x312   : > { %8624 = vmatprep.mubr.f32.mxu0 %v10073_v30  ;;  %8669 = vmatmul.mubr.f32.gmra.mxu1 %v10500_v4  ;;  %v6549_v14 = vld [vmem:[%s12637_s3 + $0xab8] sm:$0xff] }
 0x313   : > { %8679 = vmatpush3.msra.mxu0 %v6539_v38  ;;  %8726 = vmatprep.subr.mxu1 %v6553_v5  ;;  %v11233_v9 = vadd.f32 %v3008_v53, %v2897_v47  ;;  %v3018_v38 = vpop.f32.mrf.mxu1  ;;  %v11268_v53 = vsel %vm2041_vm3, %v4103_v22, %v4104_v45  ;;  %v6547_v47 = vld [vmem:[%s12637_s3 + $0xaa8] sm:$0xff]  ;;  %v6542_v22 = vld [vmem:[%s12637_s3 + $0xa80] sm:$0xff]  ;;  %v12655_v45 = vld [vmem:[#allocation6_spill] sm:$0xff] }
 0x314   : > { %8671 = vmatprep.mubr.f32.mxu1 %v10969_v11  ;;  %8680 = vmatprep.subr.mxu0 %v6538_v58  ;;  %v8189_v48 = vpop.f32.mrf.mxu0 }
 0x315   : > { %8727 = vmatpush3.msra.mxu1 %v6553_v5  ;;  %8681 = vmatpush3.msra.mxu0 %v6538_v58  ;;  %v2900_v46 = vadd.f32 %v8189_v48, %v11107_v2  ;;  %v6533_v58 = vld [vmem:[%s12637_s3 + $0xa38] sm:$0xff]  ;;  %v6544_v48 = vld [vmem:[%s12637_s3 + $0xa90] sm:$0xff] }
 0x316   : > { %8728 = vmatprep.subr.mxu1 %v6552_v31  ;;  %8625 = vmatmul.mubr.f32.gmra.mxu0 %v10521_v43  ;;  %v2884_v59 = vpop.f32.mrf.mxu0 }
 0x317   : > { %8682 = vmatprep.subr.mxu0 %v6537_v8  ;;  %8729 = vmatpush3.msra.mxu1 %v6552_v31  ;;  %v2899_v2 = vadd.f32 %v2884_v59, %v11115_v18  ;;  %v11253_v54 = vadd.f32 %v8233_v49, %v2900_v46  ;;  %v6535_v18 = vld [vmem:[%s12637_s3 + $0xa48] sm:$0xff]  ;;  %v6546_v31 = vld [vmem:[%s12637_s3 + $0xaa0] sm:$0xff]  ;;  %v6528_v59 = vld [vmem:[%s12637_s3 + $0xa10] sm:$0xff] }
 0x318   : > { %8627 = vmatprep.mubr.f32.mxu0 %v10794_v52  ;;  %8672 = vmatmul.mubr.f32.gmra.mxu1 %v11246_v62  ;;  %v6530_v49 = vld [vmem:[%s12637_s3 + $0xa20] sm:$0xff] }
 0x319   : > { %8683 = vmatpush3.msra.mxu0 %v6537_v8  ;;  %8730 = vmatprep.subr.mxu1 %v6551_v20  ;;  %v11261_v5 = vadd.f32 %v3018_v38, %v2899_v2  ;;  %v6545_v8 = vld [vmem:[%s12637_s3 + $0xa98] sm:$0xff]  ;;  %v6527_v2 = vld [vmem:[%s12637_s3 + $0xa08] sm:$0xff] }
 0x31a   : > { %8684 = vmatprep.subr.mxu0 %v6536_v55  ;;  %8731 = vmatpush3.msra.mxu1 %v6551_v20  ;;  %v6543_v20 = vld [vmem:[%s12637_s3 + $0xa88] sm:$0xff] }
 0x31b   : > { %8750 = vmatprep.mubr.f32.mxu1 %v9880_v33  ;;  %8685 = vmatpush3.msra.mxu0 %v6536_v55  ;;  %v6548_v33 = vld [vmem:[%s12637_s3 + $0xab0] sm:$0xff] }
 0x31c   : > { %8732 = vmatprep.subr.mxu1 %v6550_v40  ;;  %8628 = vmatmul.mubr.f32.gmra.mxu0 %v11268_v53 }
 0x31d   : > { %8686 = vmatprep.subr.mxu0 %v6535_v18  ;;  %8733 = vmatpush3.msra.mxu1 %v6550_v40  ;;  %v12654_v40 = vld [vmem:[#allocation8_spill] sm:$0xff] }
 0x31e   : > { %8687 = vmatpush3.msra.mxu0 %v6535_v18  ;;  %8706 = vmatprep.mubr.f32.mxu0 %v9861_v0  ;;  %v6532_v0 = vld [vmem:[%s12637_s3 + $0xa30] sm:$0xff]  ;;  %v919_v18 = vmax.f32 %v12655_v45, %v12654_v40 }
 0x31f   : > { %8734 = vmatprep.subr.mxu1 %v6549_v14  ;;  %8688 = vmatprep.subr.mxu0 %v6534_v10  ;;  %v6588_v40 = vld [vmem:[%s12637_s3 + $0xbf0] sm:$0xff] }
 0x320   : > { %8735 = vmatpush3.msra.mxu1 %v6549_v14  ;;  %8689 = vmatpush3.msra.mxu0 %v6534_v10  ;;  %v12656_v10 = vld [vmem:[#allocation7_spill] sm:$0xff] }
 0x321   : > { %8736 = vmatprep.subr.mxu1 %v6548_v33  ;;  %8690 = vmatprep.subr.mxu0 %v6533_v58 }
 0x322   : > { %8737 = vmatpush3.msra.mxu1 %v6548_v33  ;;  %8691 = vmatpush3.msra.mxu0 %v6533_v58  ;;  %v12657_v33 = vld [vmem:[#allocation5_spill] sm:$0xff] }
 0x323   : > { %8738 = vmatprep.subr.mxu1 %v6547_v47  ;;  %8692 = vmatprep.subr.mxu0 %v6532_v0  ;;  %v920_v58 = vmax.f32 %v12657_v33, %v12656_v10  ;;  %v6572_v10 = vld [vmem:[%s12637_s3 + $0xb70] sm:$0xff] }
 0x324   : > { %8739 = vmatpush3.msra.mxu1 %v6547_v47  ;;  %8693 = vmatpush3.msra.mxu0 %v6532_v0  ;;  %v6589_v47 = vld [vmem:[%s12637_s3 + $0xbf8] sm:$0xff] }
 0x325   : > { %8740 = vmatprep.subr.mxu1 %v6546_v31  ;;  %8694 = vmatprep.subr.mxu0 %v6531_v44 }
 0x326   : > { %8741 = vmatpush3.msra.mxu1 %v6546_v31  ;;  %8695 = vmatpush3.msra.mxu0 %v6531_v44  ;;  %v12658_v44 = vld [vmem:[#allocation12_spill] sm:$0xff] }
 0x327   : > { %8742 = vmatprep.subr.mxu1 %v6545_v8  ;;  %8696 = vmatprep.subr.mxu0 %v6530_v49  ;;  %v8312_v46 = vpop.f32.mrf.mxu1 }
 0x328   : > { %8743 = vmatpush3.msra.mxu1 %v6545_v8  ;;  %8697 = vmatpush3.msra.mxu0 %v6530_v49  ;;  %v1224_v8 = vmax.f32 %v919_v18, %v12658_v44  ;;  %v6526_v49 = vld [vmem:[%s12637_s3 + $0xa00] sm:$0xff] }
 0x329   : > { %8744 = vmatprep.subr.mxu1 %v6544_v48  ;;  %8698 = vmatprep.subr.mxu0 %v6529_v6  ;;  %v3254_v55 = vpop.f32.mrf.mxu1 }
 0x32a   : > { %8745 = vmatpush3.msra.mxu1 %v6544_v48  ;;  %8699 = vmatpush3.msra.mxu0 %v6529_v6  ;;  %v8268_v38 = vpop.f32.mrf.mxu0  ;;  %v12659_v6 = vld [vmem:[#allocation10_spill] sm:$0xff] }
 0x32b   : > { %8746 = vmatprep.subr.mxu1 %v6543_v20  ;;  %8700 = vmatprep.subr.mxu0 %v6528_v59  ;;  %v3158_v14 = vadd.f32 %v8268_v38, %v11182_v41 }
 0x32c   : > { %8747 = vmatpush3.msra.mxu1 %v6543_v20  ;;  %8701 = vmatpush3.msra.mxu0 %v6528_v59  ;;  %v8315_v0 = vpop.f32.mrf.mxu1  ;;  %v3118_v31 = vpop.f32.mrf.mxu0  ;;  %v1225_v20 = vmax.f32 %v920_v58, %v12659_v6  ;;  %v12660_v59 = vld [vmem:[#allocation11_spill] sm:$0xff] }
 0x32d   : > { %8748 = vmatprep.subr.mxu1 %v6542_v22  ;;  %8702 = vmatprep.subr.mxu0 %v6527_v2  ;;  %v3157_v41 = vadd.f32 %v3118_v31, %v11188_v34  ;;  %v11333_v48 = vadd.f32 %v8312_v46, %v3158_v14  ;;  %v1529_v38 = vmax.f32 %v1224_v8, %v12660_v59  ;;  %v6573_v34 = vld [vmem:[%s12637_s3 + $0xb78] sm:$0xff] }
 0x32e   : > { %8749 = vmatpush3.msra.mxu1 %v6542_v22  ;;  %8703 = vmatpush3.msra.mxu0 %v6527_v2  ;;  %v3264_v46 = vpop.f32.mrf.mxu1  ;;  %v12661_v2 = vld [vmem:[#allocation9_spill] sm:$0xff] }
 0x32f   : > { %8751 = vmatmul.mubr.f32.vlgmr.msra.gmra.mxu1 %v9920_v36  ;;  %8806 = vmatprep.subr.mxu1 %v6589_v47  ;;  %v11341_v45 = vadd.f32 %v3254_v55, %v3157_v41  ;;  %v1530_v18 = vmax.f32 %v1225_v20, %v12661_v2  ;;  %v6587_v55 = vld [vmem:[%s12637_s3 + $0xbe8] sm:$0xff]  ;;  %v1560_v14 = vadd.f32 %v10928_v50, %v1529_v38 }
 0x330   : > { %8704 = vmatprep.subr.mxu0 %v6526_v49  ;;  %8753 = vmatprep.mubr.f32.mxu1 %v9944_v26  ;;  %v8271_v22 = vpop.f32.mrf.mxu0 }
 0x331   : > { %8807 = vmatpush3.msra.mxu1 %v6589_v47  ;;  %8705 = vmatpush3.msra.mxu0 %v6526_v49  ;;  %v3160_v36 = vadd.f32 %v8271_v22, %v11203_v35  ;;  %v1561_v35 = vadd.f32 %v10928_v50, %v1530_v18  ;;  %v6586_v47 = vld [vmem:[%s12637_s3 + $0xbe0] sm:$0xff] }
 0x332   : > { %8808 = vmatprep.subr.mxu1 %v6588_v40  ;;  %8707 = vmatmul.mubr.f32.vlgmr.msra.gmra.mxu0 %v9902_v37  ;;  %v3128_v26 = vpop.f32.mrf.mxu0  ;;  %v8318_v37 = vpop.f32.mrf.mxu1  ;;  %v6570_v49 = vld [vmem:[%s12637_s3 + $0xb60] sm:$0xff] }
 0x333   : > { %8762 = vmatprep.subr.mxu0 %v6573_v34  ;;  %8809 = vmatpush3.msra.mxu1 %v6588_v40  ;;  %v3159_v33 = vadd.f32 %v3128_v26, %v11210_v60  ;;  %v11358_v58 = vadd.f32 %v8315_v0, %v3160_v36  ;;  %v6585_v0 = vld [vmem:[%s12637_s3 + $0xbd8] sm:$0xff]  ;;  %v11379_v8 = vmax.f32 %v1561_v35, 0.0  ;;  %v6566_v36 = vld [vmem:[%s12637_s3 + $0xb40] sm:$0xff]  ;;  %v6579_v26 = vld [vmem:[%s12637_s3 + $0xba8] sm:$0xff] }
 0x334   : > { %8709 = vmatprep.mubr.f32.mxu0 %v9937_v57  ;;  %8754 = vmatmul.mubr.f32.gmra.mxu1 %v9964_v15  ;;  %v6571_v57 = vld [vmem:[%s12637_s3 + $0xb68] sm:$0xff]  ;;  %v11372_v15 = vmax.f32 %v1560_v14, 0.0  ;;  %v6578_v14 = vld [vmem:[%s12637_s3 + $0xba0] sm:$0xff]  ;;  %v6576_v35 = vld [vmem:[%s12637_s3 + $0xb90] sm:$0xff] }
 0x335   : > { %8763 = vmatpush3.msra.mxu0 %v6573_v34  ;;  %8810 = vmatprep.subr.mxu1 %v6587_v55  ;;  %v11366_v31 = vadd.f32 %v3264_v46, %v3159_v33  ;;  %v6568_v46 = vld [vmem:[%s12637_s3 + $0xb50] sm:$0xff]  ;;  %v6577_v33 = vld [vmem:[%s12637_s3 + $0xb98] sm:$0xff] }
 0x336   : > { %8756 = vmatprep.mubr.f32.mxu1 %v10377_v56  ;;  %8764 = vmatprep.subr.mxu0 %v6572_v10  ;;  %v8274_v60 = vpop.f32.mrf.mxu0  ;;  %v3274_v56 = vpop.f32.mrf.mxu1  ;;  %v4503_v6 = vrot.slane %v11372_v15, 1 }
 0x337   : > { %8811 = vmatpush3.msra.mxu1 %v6587_v55  ;;  %8765 = vmatpush3.msra.mxu0 %v6572_v10  ;;  %v3162_v50 = vadd.f32 %v8274_v60, %v11225_v19  ;;  %v6565_v55 = vld [vmem:[%s12637_s3 + $0xb38] sm:$0xff]  ;;  %v6563_v10 = vld [vmem:[%s12637_s3 + $0xb28] sm:$0xff] }
 0x338   : > { %8812 = vmatprep.subr.mxu1 %v6586_v47  ;;  %8710 = vmatmul.mubr.f32.gmra.mxu0 %v9951_v16  ;;  %v3138_v44 = vpop.f32.mrf.mxu0  ;;  %v6584_v16 = vld [vmem:[%s12637_s3 + $0xbd0] sm:$0xff]  ;;  %v6575_v60 = vld [vmem:[%s12637_s3 + $0xb88] sm:$0xff] }
 0x339   : > { %8766 = vmatprep.subr.mxu0 %v6571_v57  ;;  %8813 = vmatpush3.msra.mxu1 %v6586_v47  ;;  %v3161_v41 = vadd.f32 %v3138_v44, %v11233_v9  ;;  %v11385_v19 = vadd.f32 %v8318_v37, %v3162_v50  ;;  %v6569_v9 = vld [vmem:[%s12637_s3 + $0xb58] sm:$0xff]  ;;  %v6562_v37 = vld [vmem:[%s12637_s3 + $0xb20] sm:$0xff]  ;;  %v6560_v50 = vld [vmem:[%s12637_s3 + $0xb10] sm:$0xff] }
 0x33a   : > { %8712 = vmatprep.mubr.f32.mxu0 %v10219_v28  ;;  %8757 = vmatmul.mubr.f32.gmra.mxu1 %v10650_v29  ;;  %v8321_v28 = vpop.f32.mrf.mxu1  ;;  %v4504_v29 = vrot.slane %v11379_v8, 1  ;;  %v6561_v47 = vld [vmem:[%s12637_s3 + $0xb18] sm:$0xff]  ;;  %v6559_v44 = vld [vmem:[%s12637_s3 + $0xb08] sm:$0xff] }
 0x33b   : > { %8767 = vmatpush3.msra.mxu0 %v6571_v57  ;;  %8814 = vmatprep.subr.mxu1 %v6585_v0  ;;  %v11393_v20 = vadd.f32 %v3274_v56, %v3161_v41  ;;  %v6574_v56 = vld [vmem:[%s12637_s3 + $0xb80] sm:$0xff] }
 0x33c   : > { %8759 = vmatprep.mubr.f32.mxu1 %v11122_v23  ;;  %8768 = vmatprep.subr.mxu0 %v6570_v49  ;;  %v8277_v59 = vpop.f32.mrf.mxu0  ;;  %v6583_v23 = vld [vmem:[%s12637_s3 + $0xbc8] sm:$0xff]  ;;  %v4505_v34 = vsel %vm1618_vm1, %v4503_v6, %v4504_v29 }
 0x33d   : > { %8815 = vmatpush3.msra.mxu1 %v6585_v0  ;;  %8769 = vmatpush3.msra.mxu0 %v6570_v49  ;;  %v3164_v38 = vadd.f32 %v8277_v59, %v11253_v54  ;;  %v6582_v54 = vld [vmem:[%s12637_s3 + $0xbc0] sm:$0xff]  ;;  %v6604_v59 = vld [vmem:[%s12637_s3 + $0xc70] sm:$0xff] }
 0x33e   : > { %8816 = vmatprep.subr.mxu1 %v6584_v16  ;;  %8713 = vmatmul.mubr.f32.gmra.mxu0 %v10623_v25  ;;  %v3148_v40 = vpop.f32.mrf.mxu0  ;;  %v3284_v25 = vpop.f32.mrf.mxu1 }
 0x33f   : > { %8770 = vmatprep.subr.mxu0 %v6569_v9  ;;  %8817 = vmatpush3.msra.mxu1 %v6584_v16  ;;  %v3163_v22 = vadd.f32 %v3148_v40, %v11261_v5  ;;  %v11410_v2 = vadd.f32 %v8321_v28, %v3164_v38  ;;  %v6567_v5 = vld [vmem:[%s12637_s3 + $0xb48] sm:$0xff]  ;;  %v6558_v16 = vld [vmem:[%s12637_s3 + $0xb00] sm:$0xff]  ;;  %v4637_v40 = vrot.slane %v11372_v15, 2 }
 0x340   : > { %8715 = vmatprep.mubr.f32.mxu0 %v10943_v51  ;;  %8760 = vmatmul.mubr.f32.gmra.mxu1 %v4505_v34  ;;  %v6581_v51 = vld [vmem:[%s12637_s3 + $0xbb8] sm:$0xff] }
 0x341   : > { %8771 = vmatpush3.msra.mxu0 %v6569_v9  ;;  %8818 = vmatprep.subr.mxu1 %v6583_v23  ;;  %v11416_v18 = vadd.f32 %v3284_v25, %v3163_v22  ;;  %v6599_v25 = vld [vmem:[%s12637_s3 + $0xc48] sm:$0xff] }
 0x342   : > { %8772 = vmatprep.subr.mxu0 %v6568_v46  ;;  %8819 = vmatpush3.msra.mxu1 %v6583_v23 }
 0x343   : > { %8838 = vmatprep.mubr.f32.mxu1 %v10015_v12  ;;  %8773 = vmatpush3.msra.mxu0 %v6568_v46  ;;  %v6580_v12 = vld [vmem:[%s12637_s3 + $0xbb0] sm:$0xff] }
 0x344   : > { %8820 = vmatprep.subr.mxu1 %v6582_v54  ;;  %8716 = vmatmul.mubr.f32.gmra.mxu0 %v11372_v15 }
 0x345   : > { %8774 = vmatprep.subr.mxu0 %v6567_v5  ;;  %8821 = vmatpush3.msra.mxu1 %v6582_v54 }
 0x346   : > { %8775 = vmatpush3.msra.mxu0 %v6567_v5  ;;  %8794 = vmatprep.mubr.f32.mxu0 %v10035_v7  ;;  %v6564_v7 = vld [vmem:[%s12637_s3 + $0xb30] sm:$0xff] }
 0x347   : > { %8822 = vmatprep.subr.mxu1 %v6581_v51  ;;  %8776 = vmatprep.subr.mxu0 %v6566_v36 }
 0x348   : > { %8823 = vmatpush3.msra.mxu1 %v6581_v51  ;;  %8777 = vmatpush3.msra.mxu0 %v6566_v36  ;;  %v6597_v36 = vld [vmem:[%s12637_s3 + $0xc38] sm:$0xff] }
 0x349   : > { %8824 = vmatprep.subr.mxu1 %v6580_v12  ;;  %8778 = vmatprep.subr.mxu0 %v6565_v55 }
 0x34a   : > { %8825 = vmatpush3.msra.mxu1 %v6580_v12  ;;  %8779 = vmatpush3.msra.mxu0 %v6565_v55 }
 0x34b   : > { %8826 = vmatprep.subr.mxu1 %v6579_v26  ;;  %8780 = vmatprep.subr.mxu0 %v6564_v7 }
 0x34c   : > { %8827 = vmatpush3.msra.mxu1 %v6579_v26  ;;  %8781 = vmatpush3.msra.mxu0 %v6564_v7  ;;  %v6596_v7 = vld [vmem:[%s12637_s3 + $0xc30] sm:$0xff] }
 0x34d   : > { %8828 = vmatprep.subr.mxu1 %v6578_v14  ;;  %8782 = vmatprep.subr.mxu0 %v6563_v10 }
 0x34e   : > { %8829 = vmatpush3.msra.mxu1 %v6578_v14  ;;  %8783 = vmatpush3.msra.mxu0 %v6563_v10  ;;  %v6593_v10 = vld [vmem:[%s12637_s3 + $0xc18] sm:$0xff] }
 0x34f   : > { %8830 = vmatprep.subr.mxu1 %v6577_v33  ;;  %8784 = vmatprep.subr.mxu0 %v6562_v37  ;;  %v11460_v57 = vpop.f32.mrf.mxu1 }
 0x350   : > { %8831 = vmatpush3.msra.mxu1 %v6577_v33  ;;  %8785 = vmatpush3.msra.mxu0 %v6562_v37  ;;  %v6592_v33 = vld [vmem:[%s12637_s3 + $0xc10] sm:$0xff]  ;;  %v6591_v37 = vld [vmem:[%s12637_s3 + $0xc08] sm:$0xff] }
 0x351   : > { %8832 = vmatprep.subr.mxu1 %v6576_v35  ;;  %8786 = vmatprep.subr.mxu0 %v6561_v47  ;;  %v11468_v0 = vpop.f32.mrf.mxu1 }
 0x352   : > { %8833 = vmatpush3.msra.mxu1 %v6576_v35  ;;  %8787 = vmatpush3.msra.mxu0 %v6561_v47  ;;  %v8356_v49 = vpop.f32.mrf.mxu0  ;;  %v6590_v35 = vld [vmem:[%s12637_s3 + $0xc00] sm:$0xff] }
 0x353   : > { %8834 = vmatprep.subr.mxu1 %v6575_v60  ;;  %8788 = vmatprep.subr.mxu0 %v6560_v50  ;;  %v11477_v41 = vadd.f32 %v8356_v49, %v11333_v48  ;;  %v6605_v48 = vld [vmem:[%s12637_s3 + $0xc78] sm:$0xff]  ;;  %v4905_v49 = vrot.slane %v11372_v15, 4 }
 0x354   : > { %8835 = vmatpush3.msra.mxu1 %v6575_v60  ;;  %8789 = vmatpush3.msra.mxu0 %v6560_v50  ;;  %v11482_v6 = vpop.f32.mrf.mxu1  ;;  %v3388_v9 = vpop.f32.mrf.mxu0 }
 0x355   : > { %8836 = vmatprep.subr.mxu1 %v6574_v56  ;;  %8790 = vmatprep.subr.mxu0 %v6559_v44  ;;  %v11485_v28 = vadd.f32 %v3388_v9, %v11341_v45 }
 0x356   : > { %8837 = vmatpush3.msra.mxu1 %v6574_v56  ;;  %8791 = vmatpush3.msra.mxu0 %v6559_v44  ;;  %v11495_v29 = vpop.f32.mrf.mxu1 }
 0x357   : > { %8839 = vmatmul.mubr.f32.vlgmr.msra.gmra.mxu1 %v10038_v27  ;;  %8792 = vmatprep.subr.mxu0 %v6558_v16  ;;  %v6603_v27 = vld [vmem:[%s12637_s3 + $0xc68] sm:$0xff] }
 0x358   : > { %8841 = vmatprep.mubr.f32.mxu1 %v10051_v3  ;;  %8793 = vmatpush3.msra.mxu0 %v6558_v16  ;;  %v8359_v45 = vpop.f32.mrf.mxu0 }
 0x359   : > { %8795 = vmatmul.mubr.f32.vlgmr.msra.gmra.mxu0 %v10061_v17  ;;  %8850 = vmatprep.subr.mxu0 %v6605_v48  ;;  %v11499_v38 = vadd.f32 %v8359_v45, %v11358_v58  ;;  %v6602_v17 = vld [vmem:[%s12637_s3 + $0xc60] sm:$0xff]  ;;  %v4771_v58 = vrot.slane %v11372_v15, 3 }
 0x35a   : > { %8797 = vmatprep.mubr.f32.mxu0 %v10070_v13  ;;  %8851 = vmatpush3.msra.mxu0 %v6605_v48  ;;  %v3398_v3 = vpop.f32.mrf.mxu0  ;;  %v8406_v13 = vpop.f32.mrf.mxu1 }
 0x35b   : > { %8842 = vmatmul.mubr.f32.gmra.mxu1 %v10073_v30  ;;  %8852 = vmatprep.subr.mxu0 %v6604_v59  ;;  %v11507_v23 = vadd.f32 %v3398_v3, %v11366_v31  ;;  %v6601_v30 = vld [vmem:[%s12637_s3 + $0xc58] sm:$0xff] }
 0x35c   : > { %8844 = vmatprep.mubr.f32.mxu1 %v10521_v43  ;;  %8853 = vmatpush3.msra.mxu0 %v6604_v59  ;;  %v3542_v34 = vpop.f32.mrf.mxu1 }
 0x35d   : > { %8798 = vmatmul.mubr.f32.gmra.mxu0 %v10090_v63  ;;  %8854 = vmatprep.subr.mxu0 %v6603_v27  ;;  %v4772_v63 = vrot.slane %v11379_v8, 3 }
 0x35e   : > { %8800 = vmatprep.mubr.f32.mxu0 %v10360_v42  ;;  %8855 = vmatpush3.msra.mxu0 %v6603_v27  ;;  %v8362_v31 = vpop.f32.mrf.mxu0  ;;  %v6600_v42 = vld [vmem:[%s12637_s3 + $0xc50] sm:$0xff] }
 0x35f   : > { %8845 = vmatmul.mubr.f32.gmra.mxu1 %v10794_v52  ;;  %8856 = vmatprep.subr.mxu0 %v6602_v17  ;;  %v3432_v43 = vadd.f32 %v8362_v31, %v11385_v19  ;;  %v4638_v19 = vrot.slane %v11379_v8, 2 }
 0x360   : > { %8847 = vmatprep.mubr.f32.mxu1 %v11268_v53  ;;  %8857 = vmatpush3.msra.mxu0 %v6602_v17  ;;  %v3408_v46 = vpop.f32.mrf.mxu0  ;;  %v4773_v53 = vsel %vm2041_vm3, %v4771_v58, %v4772_v63 }
 0x361   : > { %8801 = vmatmul.mubr.f32.gmra.mxu0 %v10816_v39  ;;  %8858 = vmatprep.subr.mxu0 %v6601_v30  ;;  %v3431_v52 = vadd.f32 %v3408_v46, %v11393_v20  ;;  %v11529_v22 = vadd.f32 %v8406_v13, %v3432_v43  ;;  %v4639_v39 = vsel %vm1878_vm4, %v4637_v40, %v4638_v19  ;;  %v8409_v20 = vpop.f32.mrf.mxu1  ;;  %v5189_v19 = vld [vmem:[%s12639_s5 + $0x1f8] sm:$0xff] }
 0x362   : > { %8803 = vmatprep.mubr.f32.mxu0 %v11100_v61  ;;  %8859 = vmatpush3.msra.mxu0 %v6601_v30  ;;  %v6598_v61 = vld [vmem:[%s12637_s3 + $0xc40] sm:$0xff] }
 0x363   : > { %8848 = vmatmul.mubr.f32.gmra.mxu1 %v4773_v53  ;;  %8860 = vmatprep.subr.mxu0 %v6600_v42  ;;  %v11537_v54 = vadd.f32 %v3542_v34, %v3431_v52  ;;  %v3552_v14 = vpop.f32.mrf.mxu1  ;;  %v5157_v53 = vld [vmem:[%s12639_s5 + $0xf8] sm:$0xff] }
 0x364   : > { %8861 = vmatpush3.msra.mxu0 %v6600_v42  ;;  %v8365_v5 = vpop.f32.mrf.mxu0  ;;  %7321 = vmatprep.subr.mxu1 %v5157_v53  ;;  %v5150_v53 = vld [vmem:[%s12639_s5 + $0xc0] sm:$0xff] }
 0x365   : > { %8804 = vmatmul.mubr.f32.gmra.mxu0 %v4639_v39  ;;  %8862 = vmatprep.subr.mxu0 %v6599_v25  ;;  %v3434_v51 = vadd.f32 %v8365_v5, %v11410_v2  ;;  %v5156_v39 = vld [vmem:[%s12639_s5 + $0xf0] sm:$0xff] }
 0x366   : > { %8863 = vmatpush3.msra.mxu0 %v6599_v25  ;;  %8882 = vmatprep.mubr.f32.mxu0 %v10197_v24  ;;  %v3418_v12 = vpop.f32.mrf.mxu0  ;;  %v6595_v24 = vld [vmem:[%s12637_s3 + $0xc28] sm:$0xff]  ;;  %v5141_v25 = vld [vmem:[%s12639_s5 + $0x78] sm:$0xff]  ;;  %v5140_v5 = vld [vmem:[%s12639_s5 + $0x70] sm:$0xff] }
 0x367   : > { %8864 = vmatprep.subr.mxu0 %v6598_v61  ;;  %v3433_v55 = vadd.f32 %v3418_v12, %v11416_v18  ;;  %v3568_v26 = vadd.f32 %v8409_v20, %v3434_v51  ;;  %v6594_v18 = vld [vmem:[%s12637_s3 + $0xc20] sm:$0xff]  ;;  %7322 = vmatpush3.msra.mxu1 %v5141_v25  ;;  %v5172_v51 = vld [vmem:[%s12639_s5 + $0x170] sm:$0xff]  ;;  %v5187_v12 = vld [vmem:[%s12639_s5 + $0x1e8] sm:$0xff] }
 0x368   : > { %8865 = vmatpush3.msra.mxu0 %v6598_v61  ;;  %v5188_v61 = vld [vmem:[%s12639_s5 + $0x1f0] sm:$0xff]  ;;  %7323 = vmatprep.subr.mxu1 %v5156_v39 }
 0x369   : > { %8866 = vmatprep.subr.mxu0 %v6597_v36  ;;  %v3567_v2 = vadd.f32 %v3552_v14, %v3433_v55  ;;  %v5139_v55 = vld [vmem:[%s12639_s5 + $0x68] sm:$0xff]  ;;  %7324 = vmatpush3.msra.mxu1 %v5140_v5  ;;  %v5154_v14 = vld [vmem:[%s12639_s5 + $0xe0] sm:$0xff] }
 0x36a   : > { %8867 = vmatpush3.msra.mxu0 %v6597_v36  ;;  %v5155_v36 = vld [vmem:[%s12639_s5 + $0xe8] sm:$0xff] }
 0x36b   : > { %8868 = vmatprep.subr.mxu0 %v6596_v7  ;;  %7325 = vmatprep.subr.mxu1 %v5155_v36  ;;  %v5134_v36 = vld [vmem:[%s12639_s5 + $0x40] sm:$0xff] }
 0x36c   : > { %8869 = vmatpush3.msra.mxu0 %v6596_v7  ;;  %7326 = vmatpush3.msra.mxu1 %v5139_v55  ;;  %v5133_v55 = vld [vmem:[%s12639_s5 + $0x38] sm:$0xff] }
 0x36d   : > { %8870 = vmatprep.subr.mxu0 %v6595_v24  ;;  %7327 = vmatprep.subr.mxu1 %v5154_v14  ;;  %v5180_v14 = vld [vmem:[%s12639_s5 + $0x1b0] sm:$0xff] }
 0x36e   : > { %8871 = vmatpush3.msra.mxu0 %v6595_v24  ;;  %v5138_v24 = vld [vmem:[%s12639_s5 + $0x60] sm:$0xff] }
 0x36f   : > { %8872 = vmatprep.subr.mxu0 %v6594_v18  ;;  %7328 = vmatpush3.msra.mxu1 %v5138_v24  ;;  %v5164_v24 = vld [vmem:[%s12639_s5 + $0x130] sm:$0xff] }
 0x370   : > { %8873 = vmatpush3.msra.mxu0 %v6594_v18  ;;  %v5170_v18 = vld [vmem:[%s12639_s5 + $0x160] sm:$0xff] }
 0x371   : > { %8874 = vmatprep.subr.mxu0 %v6593_v10 }
 0x372   : > { %8875 = vmatpush3.msra.mxu0 %v6593_v10 }
 0x373   : > { %8876 = vmatprep.subr.mxu0 %v6592_v33 }
 0x374   : > { %8877 = vmatpush3.msra.mxu0 %v6592_v33  ;;  %v5153_v33 = vld [vmem:[%s12639_s5 + $0xd8] sm:$0xff] }
 0x375   : > { %8878 = vmatprep.subr.mxu0 %v6591_v37  ;;  %7329 = vmatprep.subr.mxu1 %v5153_v33  ;;  %v5131_v33 = vld [vmem:[%s12639_s5 + $0x28] sm:$0xff] }
 0x376   : > { %8879 = vmatpush3.msra.mxu0 %v6591_v37  ;;  %v5185_v37 = vld [vmem:[%s12639_s5 + $0x1d8] sm:$0xff] }
 0x377   : > { %8880 = vmatprep.subr.mxu0 %v6590_v35  ;;  %v11570_v47 = vpop.f32.mrf.mxu1 }
 0x378   : > { %8881 = vmatpush3.msra.mxu0 %v6590_v35 }
 0x379   : > { %8883 = vmatmul.mubr.f32.vlgmr.msra.gmra.mxu0 %v10216_v32  ;;  %v11573_v60 = vpop.f32.mrf.mxu1  ;;  %v4906_v32 = vrot.slane %v11379_v8, 4  ;;  %7356 = vmatprep.subr.mxu0 %v5189_v19  ;;  %v5182_v19 = vld [vmem:[%s12639_s5 + $0x1c0] sm:$0xff] }
 0x37a   : > { %8885 = vmatprep.mubr.f32.mxu0 %v10226_v21  ;;  %v11576_v50 = vpop.f32.mrf.mxu0 }
 0x37b   : > { %v4907_v48 = vsel %vm2204_vm2, %v4905_v49, %v4906_v32  ;;  %v5137_v49 = vld [vmem:[%s12639_s5 + $0x58] sm:$0xff] }
 0x37c   : > { %v11578_v56 = vpop.f32.mrf.mxu1  ;;  %v11580_v44 = vpop.f32.mrf.mxu0  ;;  %v5169_v32 = vld [vmem:[%s12639_s5 + $0x158] sm:$0xff]  ;;  %7330 = vmatpush3.msra.mxu1 %v5137_v49  ;;  %v5178_v49 = vld [vmem:[%s12639_s5 + $0x1a0] sm:$0xff] }
 0x37d   : > { %8886 = vmatmul.mubr.f32.gmra.mxu0 %v10243_v1 }
 0x37e   : > { %8888 = vmatprep.mubr.f32.mxu0 %v10500_v4  ;;  %v11585_v16 = vpop.f32.mrf.mxu1 }
 0x380   : > { %v11587_v9 = vpop.f32.mrf.mxu0 }
 0x381   : > { %8889 = vmatmul.mubr.f32.gmra.mxu0 %v10969_v11 }
 0x382   : > { %8891 = vmatprep.mubr.f32.mxu0 %v11246_v62  ;;  %v11592_v21 = vpop.f32.mrf.mxu0  ;;  %v8494_v59 = vpop.f32.mrf.mxu1 }
 0x384   : > { %v3806_v15 = vpop.f32.mrf.mxu1 }
 0x385   : > { %8892 = vmatmul.mubr.f32.gmra.mxu0 %v4907_v48 }
 0x386   : > { %v8450_v1 = vpop.f32.mrf.mxu0 }
 0x387   : > { %v3700_v4 = vadd.f32 %v8450_v1, %v11529_v22  ;;  %v5152_v1 = vld [vmem:[%s12639_s5 + $0xd0] sm:$0xff] }
 0x388   : > { %v3676_v45 = vpop.f32.mrf.mxu0  ;;  %v8497_v11 = vpop.f32.mrf.mxu1  ;;  %7331 = vmatprep.subr.mxu1 %v5152_v1  ;;  %v5177_v1 = vld [vmem:[%s12639_s5 + $0x198] sm:$0xff] }
 0x389   : > { %v3699_v27 = vadd.f32 %v3676_v45, %v11537_v54  ;;  %v3830_v3 = vadd.f32 %v8494_v59, %v3700_v4  ;;  %v5173_v54 = vld [vmem:[%s12639_s5 + $0x178] sm:$0xff]  ;;  %v5184_v4 = vld [vmem:[%s12639_s5 + $0x1d0] sm:$0xff] }
 0x38a   : > { %v3816_v31 = vpop.f32.mrf.mxu1  ;;  %7357 = vmatpush3.msra.mxu0 %v5173_v54 }
 0x38b   : > { %v3829_v17 = vadd.f32 %v3806_v15, %v3699_v27  ;;  %7358 = vmatprep.subr.mxu0 %v5188_v61  ;;  %v5136_v27 = vld [vmem:[%s12639_s5 + $0x50] sm:$0xff] }
 0x38c   : > { %v8453_v13 = vpop.f32.mrf.mxu0  ;;  %7359 = vmatpush3.msra.mxu0 %v5172_v51  ;;  %7332 = vmatpush3.msra.mxu1 %v5136_v27  ;;  %v5144_v27 = vld [vmem:[%s12639_s5 + $0x90] sm:$0xff] }
 0x38d   : > { %v3702_v62 = vadd.f32 %v8453_v13, %v3568_v26  ;;  %v5171_v26 = vld [vmem:[%s12639_s5 + $0x168] sm:$0xff]  ;;  %7360 = vmatprep.subr.mxu0 %v5187_v12  ;;  %v5181_v12 = vld [vmem:[%s12639_s5 + $0x1b8] sm:$0xff] }
 0x38e   : > { %v3686_v30 = vpop.f32.mrf.mxu0  ;;  %7361 = vmatpush3.msra.mxu0 %v5171_v26  ;;  %v5165_v26 = vld [vmem:[%s12639_s5 + $0x138] sm:$0xff] }
 0x38f   : > { %v3701_v8 = vadd.f32 %v3686_v30, %v3567_v2  ;;  %v11597_v58 = vadd.f32 %v8497_v11, %v3702_v62  ;;  %v5186_v2 = vld [vmem:[%s12639_s5 + $0x1e0] sm:$0xff]  ;;  %v5151_v11 = vld [vmem:[%s12639_s5 + $0xc8] sm:$0xff] }
 0x390   : > { %7362 = vmatprep.subr.mxu0 %v5186_v2  ;;  %v5135_v62 = vld [vmem:[%s12639_s5 + $0x48] sm:$0xff]  ;;  %7333 = vmatprep.subr.mxu1 %v5151_v11  ;;  %v5132_v2 = vld [vmem:[%s12639_s5 + $0x30] sm:$0xff] }
 0x391   : > { %v11599_v43 = vadd.f32 %v3816_v31, %v3701_v8  ;;  %7363 = vmatpush3.msra.mxu0 %v5170_v18  ;;  %v5167_v30 = vld [vmem:[%s12639_s5 + $0x148] sm:$0xff]  ;;  %7334 = vmatpush3.msra.mxu1 %v5135_v62  ;;  %v5128_v11 = vld [vmem:[%s12639_s5 + $0x10] sm:$0xff] }
 0x392   : > { %7364 = vmatprep.subr.mxu0 %v5185_v37  ;;  %7335 = vmatprep.subr.mxu1 %v5150_v53  ;;  %v5147_v18 = vld [vmem:[%s12639_s5 + $0xa8] sm:$0xff] }
 0x393   : > { %7365 = vmatpush3.msra.mxu0 %v5169_v32  ;;  %7336 = vmatpush3.msra.mxu1 %v5134_v36  ;;  %v5163_v37 = vld [vmem:[%s12639_s5 + $0x128] sm:$0xff]  ;;  %v5130_v32 = vld [vmem:[%s12639_s5 + $0x20] sm:$0xff] }
 0x394   : > { %7366 = vmatprep.subr.mxu0 %v5184_v4  ;;  %v5129_v4 = vld [vmem:[%s12639_s5 + $0x18] sm:$0xff]  ;;  %v5143_v62 = vld [vmem:[%s12639_s5 + $0x88] sm:$0xff] }
 0x395   : > { %v5159_v53 = vld [vmem:[%s12639_s5 + $0x108] sm:$0xff] }
 0x39f   : > { %v11601_v63 = vpop.f32.mrf.mxu1 }
 0x3a1   : > { %v11603_v42 = vpop.f32.mrf.mxu1 }
 0x3a2   : > { %v11605_v40 = vpop.f32.mrf.mxu0 }
 0x3a4   : > { %v11607_v34 = vpop.f32.mrf.mxu1  ;;  %v11609_v46 = vpop.f32.mrf.mxu0 }
 0x3a6   : > { %v11611_v52 = vpop.f32.mrf.mxu1 }
 0x3a8   : > { %v11613_v22 = vpop.f32.mrf.mxu0 }
 0x3aa   : > { %v11633_v20 = vpop.f32.mrf.mxu0  ;;  %v8582_v7 = vpop.f32.mrf.mxu1 }
 0x3ac   : > { %v4076_v48 = vpop.f32.mrf.mxu1 }
 0x3ae   : > { %v8538_v10 = vpop.f32.mrf.mxu0 }
 0x3af   : > { %v3966_v35 = vadd.f32 %v8538_v10, %v3830_v3  ;;  %v5168_v3 = vld [vmem:[%s12639_s5 + $0x150] sm:$0xff]  ;;  %v5179_v10 = vld [vmem:[%s12639_s5 + $0x1a8] sm:$0xff] }
 0x3b0   : > { %v3942_v59 = vpop.f32.mrf.mxu0  ;;  %v8585_v8 = vpop.f32.mrf.mxu1  ;;  %7367 = vmatpush3.msra.mxu0 %v5168_v3  ;;  %v5176_v3 = vld [vmem:[%s12639_s5 + $0x190] sm:$0xff] }
 0x3b1   : > { %v3965_v15 = vadd.f32 %v3942_v59, %v3829_v17  ;;  %v11683_v45 = vadd.f32 %v8582_v7, %v3966_v35  ;;  %v5183_v17 = vld [vmem:[%s12639_s5 + $0x1c8] sm:$0xff]  ;;  %v5148_v7 = vld [vmem:[%s12639_s5 + $0xb0] sm:$0xff]  ;;  %v5146_v35 = vld [vmem:[%s12639_s5 + $0xa0] sm:$0xff] }
 0x3b2   : > { %7368 = vmatprep.subr.mxu0 %v5183_v17  ;;  %v4086_v5 = vpop.f32.mrf.mxu1  ;;  %v5145_v59 = vld [vmem:[%s12639_s5 + $0x98] sm:$0xff]  ;;  %v5160_v17 = vld [vmem:[%s12639_s5 + $0x110] sm:$0xff] }
 0x3b3   : > { %v11697_v13 = vadd.f32 %v4076_v48, %v3965_v15  ;;  %7369 = vmatpush3.msra.mxu0 %v5167_v30  ;;  %v5162_v48 = vld [vmem:[%s12639_s5 + $0x120] sm:$0xff]  ;;  %v5161_v15 = vld [vmem:[%s12639_s5 + $0x118] sm:$0xff]  ;;  %v5175_v30 = vld [vmem:[%s12639_s5 + $0x188] sm:$0xff] }
 0x3b4   : > { %v8541_v31 = vpop.f32.mrf.mxu0  ;;  %7370 = vmatprep.subr.mxu0 %v5182_v19  ;;  %v5142_v19 = vld [vmem:[%s12639_s5 + $0x80] sm:$0xff] }
 0x3b5   : > { %v3968_v25 = vadd.f32 %v8541_v31, %v11597_v58  ;;  %v5166_v58 = vld [vmem:[%s12639_s5 + $0x140] sm:$0xff]  ;;  %v5127_v31 = vld [vmem:[%s12639_s5 + $0x8] sm:$0xff] }
 0x3b6   : > { %v3952_v54 = vpop.f32.mrf.mxu0  ;;  %7371 = vmatpush3.msra.mxu0 %v5166_v58  ;;  %v5221_v58 = vld [vmem:[%s12639_s5 + $0x2f8] sm:$0xff] }
 0x3b7   : > { %v3967_v39 = vadd.f32 %v3952_v54, %v11599_v43  ;;  %v11713_v61 = vadd.f32 %v8585_v8, %v3968_v25  ;;  %v5149_v43 = vld [vmem:[%s12639_s5 + $0xb8] sm:$0xff]  ;;  %7372 = vmatprep.subr.mxu0 %v5181_v12  ;;  %v5174_v25 = vld [vmem:[%s12639_s5 + $0x180] sm:$0xff] }
 0x3b8   : > { %7337 = vmatprep.subr.mxu1 %v5149_v43  ;;  %7373 = vmatpush3.msra.mxu0 %v5165_v26  ;;  %v5253_v43 = vld [vmem:[%s12639_s5 + $0x3f8] sm:$0xff] }
 0x3b9   : > { %v11715_v51 = vadd.f32 %v4086_v5, %v3967_v39  ;;  %7338 = vmatpush3.msra.mxu1 %v5133_v55  ;;  %7374 = vmatprep.subr.mxu0 %v5180_v14  ;;  %v5126_v39 = vld [vmem:[%s12639_s5] sm:$0xff] }
 0x3ba   : > { %7339 = vmatprep.subr.mxu1 %v5148_v7  ;;  %7375 = vmatpush3.msra.mxu0 %v5164_v24  ;;  %v5158_v5 = vld [vmem:[%s12639_s5 + $0x100] sm:$0xff] }
 0x3bb   : > { %7340 = vmatpush3.msra.mxu1 %v5132_v2  ;;  %7376 = vmatprep.subr.mxu0 %v5179_v10 }
 0x3bc   : > { %7341 = vmatprep.subr.mxu1 %v5147_v18  ;;  %7377 = vmatpush3.msra.mxu0 %v5163_v37 }
 0x3bd   : > { %7342 = vmatpush3.msra.mxu1 %v5131_v33  ;;  %7378 = vmatprep.subr.mxu0 %v5178_v49 }
 0x3be   : > { %7343 = vmatprep.subr.mxu1 %v5146_v35  ;;  %7379 = vmatpush3.msra.mxu0 %v5162_v48 }
 0x3bf   : > { %7344 = vmatpush3.msra.mxu1 %v5130_v32  ;;  %7380 = vmatprep.subr.mxu0 %v5177_v1 }
 0x3c0   : > { %7345 = vmatprep.subr.mxu1 %v5145_v59  ;;  %7381 = vmatpush3.msra.mxu0 %v5161_v15 }
 0x3c1   : > { %7346 = vmatpush3.msra.mxu1 %v5129_v4  ;;  %7382 = vmatprep.subr.mxu0 %v5176_v3 }
 0x3c2   : > { %7347 = vmatprep.subr.mxu1 %v5144_v27  ;;  %7383 = vmatpush3.msra.mxu0 %v5160_v17 }
 0x3c3   : > { %7348 = vmatpush3.msra.mxu1 %v5128_v11  ;;  %7384 = vmatprep.subr.mxu0 %v5175_v30 }
 0x3c4   : > { %7349 = vmatprep.subr.mxu1 %v5143_v62  ;;  %7385 = vmatpush3.msra.mxu0 %v5159_v53 }
 0x3c5   : > { %7350 = vmatpush3.msra.mxu1 %v5127_v31  ;;  %7386 = vmatprep.subr.mxu0 %v5174_v25 }
 0x3c6   : > { %7351 = vmatprep.subr.mxu1 %v5142_v19  ;;  %7387 = vmatpush3.msra.mxu0 %v5158_v5 }
 0x3c7   : > { %v11801_v8 = vpop.f32.mrf.mxu1  ;;  %7352 = vmatpush3.msra.mxu1 %v5126_v39  ;;  %7426 = vmatprep.subr.mxu0 %v5253_v43 }
 0x3c8   : > { %7391 = vmatprep.subr.mxu1 %v5221_v58 }
 0x3c9   : > { %v11815_v54 = vpop.f32.mrf.mxu1 }
 0x3ca   : > { %v11823_v36 = vpop.f32.mrf.mxu0 }
 0x3cc   : > { %v11831_v12 = vpop.f32.mrf.mxu1  ;;  %v11833_v55 = vpop.f32.mrf.mxu0 }
 0x3ce   : > { %v11835_v26 = vpop.f32.mrf.mxu1 }
 0x3d0   : > { %v11837_v7 = vpop.f32.mrf.mxu0 }
 0x3d2   : > { %v11839_v14 = vpop.f32.mrf.mxu0  ;;  %v11841_v2 = vpop.f32.mrf.mxu1 }
 0x3d4   : > { %v11846_v10 = vpop.f32.mrf.mxu1 }
 0x3d6   : > { %v8626_v24 = vpop.f32.mrf.mxu0 }
 0x3d7   : > { %v11844_v18 = vadd.f32 %v8626_v24, %v11683_v45 }
 0x3d8   : > { %v4210_v33 = vpop.f32.mrf.mxu0  ;;  %v8673_v35 = vpop.f32.mrf.mxu1 }
 0x3d9   : > { %v11849_v37 = vadd.f32 %v4210_v33, %v11697_v13 }
 0x3da   : > { %v4354_v4 = vpop.f32.mrf.mxu1 }
 0x3dc   : > { %v8629_v49 = vpop.f32.mrf.mxu0 }
 0x3dd   : > { %v4236_v32 = vadd.f32 %v8629_v49, %v11713_v61  ;;  %v3562_v49 = vadd.f32 %v11460_v57, %v11477_v41 }
 0x3de   : > { %v4220_v48 = vpop.f32.mrf.mxu0 }
 0x3df   : > { %v4235_v59 = vadd.f32 %v4220_v48, %v11715_v51  ;;  %v4370_v1 = vadd.f32 %v8673_v35, %v4236_v32  ;;  %v3696_v48 = vadd.f32 %v11576_v50, %v3562_v49 }
 0x3e1   : > { %v4369_v15 = vadd.f32 %v4354_v4, %v4235_v59  ;;  %v3561_v59 = vadd.f32 %v11468_v0, %v11485_v28  ;;  %v3826_v57 = vadd.f32 %v11570_v47, %v3696_v48 }
 0x3ef   : > { %v11853_v27 = vpop.f32.mrf.mxu1 }
 0x3f1   : > { %v11855_v45 = vpop.f32.mrf.mxu1 }
 0x3f2   : > { %v8708_v3 = vpop.f32.mrf.mxu0 }
 0x3f4   : > { %v11857_v11 = vpop.f32.mrf.mxu1  ;;  %v4454_v17 = vpop.f32.mrf.mxu0 }
 0x3f6   : > { %v11859_v13 = vpop.f32.mrf.mxu1 }
 0x3f8   : > { %v8711_v62 = vpop.f32.mrf.mxu0 }
 0x3fa   : > { %v4464_v30 = vpop.f32.mrf.mxu0  ;;  %v11861_v31 = vpop.f32.mrf.mxu1 }
 0x3fc   : > { %v11863_v53 = vpop.f32.mrf.mxu1 }
 0x3fd   : > { %12662 = vst [vmem:[#allocation8_spill] sm:$0xff] %v11863_v53  ;;  %v3695_v53 = vadd.f32 %v11580_v44, %v3561_v59 }
 0x3fe   : > { %v8714_v61 = vpop.f32.mrf.mxu0 }
 0x3ff   : > { %v3825_v0 = vadd.f32 %v11573_v60, %v3695_v53 }
 0x400   : > { %v11865_v51 = vpop.f32.mrf.mxu0  ;;  %v8761_v19 = vpop.f32.mrf.mxu1 }
 0x401   : > { %v3961_v44 = vadd.f32 %v11609_v46, %v3825_v0 }
 0x402   : > { %v4620_v24 = vpop.f32.mrf.mxu1 }
 0x403   : > { %v4095_v53 = vadd.f32 %v11603_v42, %v3961_v44 }
 0x404   : > { %v8717_v25 = vpop.f32.mrf.mxu0 }
 0x405   : > { %v4500_v39 = vadd.f32 %v8717_v25, %v4370_v1  ;;  %v3564_v1 = vadd.f32 %v11482_v6, %v11499_v38  ;;  %v3563_v25 = vadd.f32 %v11495_v29, %v11507_v23 }
 0x406   : > { %v4484_v5 = vpop.f32.mrf.mxu0 }
 0x407   : > { %v4499_v58 = vadd.f32 %v4484_v5, %v4369_v15  ;;  %v4636_v43 = vadd.f32 %v8761_v19, %v4500_v39  ;;  %v3698_v19 = vadd.f32 %v11587_v9, %v3564_v1  ;;  %v3697_v50 = vadd.f32 %v11592_v21, %v3563_v25 }
 0x408   : > { %v3962_v39 = vadd.f32 %v11605_v40, %v3826_v57 }
 0x409   : > { %v4635_v33 = vadd.f32 %v4620_v24, %v4499_v58  ;;  %v3828_v6 = vadd.f32 %v11578_v56, %v3698_v19  ;;  %v3827_v29 = vadd.f32 %v11585_v16, %v3697_v50  ;;  %v4229_v56 = vadd.f32 %v11833_v55, %v4095_v53 }
 0x40a   : > { %v4096_v23 = vadd.f32 %v11601_v63, %v3962_v39 }
 0x40b   : > { %v3964_v9 = vadd.f32 %v11613_v22, %v3828_v6  ;;  %v3963_v40 = vadd.f32 %v11633_v20, %v3827_v29 }
 0x40c   : > { %v4230_v60 = vadd.f32 %v11823_v36, %v4096_v23  ;;  %v4363_v36 = vadd.f32 %v11815_v54, %v4229_v56 }
 0x40d   : > { %v4098_v22 = vadd.f32 %v11607_v34, %v3964_v9  ;;  %v4097_v63 = vadd.f32 %v11611_v52, %v3963_v40  ;;  %v4368_v52 = vadd.f32 %v11841_v2, %v11844_v18 }
 0x40e   : > { %v4364_v58 = vadd.f32 %v11801_v8, %v4230_v60  ;;  %v4493_v42 = vadd.f32 %v4454_v17, %v4363_v36 }
 0x40f   : > { %v4232_v16 = vadd.f32 %v11837_v7, %v4098_v22  ;;  %v4231_v20 = vadd.f32 %v11839_v14, %v4097_v63  ;;  %v5052_v7 = vlaneseq }
 0x410   : > { %v4494_v24 = vadd.f32 %v8708_v3, %v4364_v58  ;;  %v4629_v14 = vadd.f32 %v11855_v45, %v4493_v42  ;;  %v4498_v3 = vadd.f32 %v8714_v61, %v4368_v52 }
 0x411   : > { %v4365_v55 = vadd.f32 %v11835_v26, %v4231_v20  ;;  %v5053_v26 = vshrl.u32 %v5052_v7, 7 }
 0x412   : > { %v4630_v34 = vadd.f32 %v11853_v27, %v4494_v24 }
 0x413   : > { %v4495_v8 = vadd.f32 %v4464_v30, %v4365_v55  ;;  %v4634_v30 = vadd.f32 %v11861_v31, %v4498_v3  ;;  %v5054_v57 = vsub.s32 0, %v5053_v26 }
 0x415   : > { %v4631_v27 = vadd.f32 %v11859_v13, %v4495_v8 }
 0x417   : > { %v8840_v46 = vpop.f32.mrf.mxu1 }
 0x419   : > { %v8796_v35 = vpop.f32.mrf.mxu0 }
 0x41a   : > { %v4764_v59 = vadd.f32 %v8796_v35, %v4630_v34 }
 0x41b   : > { %v4724_v32 = vpop.f32.mrf.mxu0 }
 0x41c   : > { %v4763_v54 = vadd.f32 %v4724_v32, %v4629_v14  ;;  %v4898_v19 = vadd.f32 %v8840_v46, %v4764_v59 }
 0x41d   : > { %v8799_v4 = vpop.f32.mrf.mxu0 }
 0x41f   : > { %v4734_v15 = vpop.f32.mrf.mxu0 }
 0x420   : > { %v4765_v61 = vadd.f32 %v4734_v15, %v4631_v27 }
 0x421   : > { %v8802_v41 = vpop.f32.mrf.mxu0 }
 0x422   : > { %v4768_v25 = vadd.f32 %v8802_v41, %v4634_v30  ;;  %v5220_v30 = vld [vmem:[%s12639_s5 + $0x2f0] sm:$0xff] }
 0x423   : > { %v11882_v28 = vpop.f32.mrf.mxu0 }
 0x425   : > { %v8805_v38 = vpop.f32.mrf.mxu0 }
 0x426   : > { %v11889_v47 = vadd.f32 %v8805_v38, %v4636_v43  ;;  %v4858_v43 = vpop.f32.mrf.mxu1 }
 0x427   : > { %v4754_v21 = vpop.f32.mrf.mxu0  ;;  %v4897_v32 = vadd.f32 %v4858_v43, %v4763_v54 }
 0x428   : > { %v11894_v5 = vadd.f32 %v4754_v21, %v4635_v33  ;;  %v4366_v33 = vadd.f32 %v11831_v12, %v4232_v16  ;;  %v8843_v49 = vpop.f32.mrf.mxu1  ;;  %v4367_v12 = vadd.f32 %v11846_v10, %v11849_v37  ;;  %v11919_v37 = vld [vmem:[%s12638_s4] sm:$0x1] }
 0x429   : > { %v11924_v41 = vrot.slane %v11919_v37, %v5054_v57  ;;  %v5219_v57 = vld [vmem:[%s12639_s5 + $0x2e8] sm:$0xff] }
 0x42a   : > { %v4496_v48 = vadd.f32 %v8711_v62, %v4366_v33  ;;  %v4868_v1 = vpop.f32.mrf.mxu1  ;;  %v4497_v2 = vadd.f32 %v11865_v51, %v4367_v12  ;;  %v12663_v51 = vld [vmem:[#allocation8_spill] sm:$0xff] }
 0x42b   : > { %v4899_v15 = vadd.f32 %v4868_v1, %v4765_v61 }
 0x42c   : > { %v4632_v17 = vadd.f32 %v11857_v11, %v4496_v48  ;;  %v8846_v18 = vpop.f32.mrf.mxu1  ;;  %v4633_v39 = vadd.f32 %v12663_v51, %v4497_v2  ;;  %v5237_v2 = vld [vmem:[%s12639_s5 + $0x378] sm:$0xff]  ;;  %v5235_v51 = vld [vmem:[%s12639_s5 + $0x368] sm:$0xff] }
 0x42d   : > { %v4902_v9 = vadd.f32 %v8846_v18, %v4768_v25  ;;  %v5236_v25 = vld [vmem:[%s12639_s5 + $0x370] sm:$0xff] }
 0x42e   : > { %v4766_v62 = vadd.f32 %v8799_v4, %v4632_v17  ;;  %v4878_v4 = vpop.f32.mrf.mxu1  ;;  %v4767_v6 = vadd.f32 %v11882_v28, %v4633_v39 }
 0x430   : > { %v4900_v13 = vadd.f32 %v8843_v49, %v4766_v62  ;;  %v8849_v60 = vpop.f32.mrf.mxu1  ;;  %v4901_v16 = vadd.f32 %v4878_v4, %v4767_v6  ;;  %v5203_v4 = vld [vmem:[%s12639_s5 + $0x268] sm:$0xff]  ;;  %v5217_v6 = vld [vmem:[%s12639_s5 + $0x2d8] sm:$0xff] }
 0x431   : > { %v4904_v42 = vadd.f32 %v8849_v60, %v11889_v47  ;;  %v5232_v60 = vld [vmem:[%s12639_s5 + $0x350] sm:$0xff] }
 0x432   : > { %v4888_v24 = vpop.f32.mrf.mxu1 }
 0x433   : > { %v4903_v34 = vadd.f32 %v4888_v24, %v11894_v5  ;;  %v5205_v5 = vld [vmem:[%s12639_s5 + $0x278] sm:$0xff] }
 0x434   : > { %v5197_v24 = vld [vmem:[%s12639_s5 + $0x238] sm:$0xff] }
 0x439   : > { %v8884_v45 = vpop.f32.mrf.mxu0 }
 0x43a   : > { %v5032_v35 = vadd.f32 %v8884_v45, %v4898_v19  ;;  %v5252_v45 = vld [vmem:[%s12639_s5 + $0x3f0] sm:$0xff] }
 0x43b   : > { %v4992_v11 = vpop.f32.mrf.mxu0 }
 0x43c   : > { %v5045_v50 = vrot.slane %v5032_v35, 1  ;;  %v5031_v10 = vadd.f32 %v4992_v11, %v4897_v32  ;;  %v5204_v32 = vld [vmem:[%s12639_s5 + $0x270] sm:$0xff] }
 0x43d   : > { %v8887_v0 = vpop.f32.mrf.mxu0 }
 0x43e   : > { %v5041_v31 = vrot.slane %v5031_v10, 1  ;;  %v5034_v44 = vadd.f32 %v8887_v0, %v4900_v13  ;;  %v5047_v29 = vmax.f32 %v5032_v35, %v5045_v50  ;;  %v5251_v13 = vld [vmem:[%s12639_s5 + $0x3e8] sm:$0xff]  ;;  %v5218_v0 = vld [vmem:[%s12639_s5 + $0x2e0] sm:$0xff] }
 0x43f   : > { %v5002_v38 = vpop.f32.mrf.mxu0 }
 0x440   : > { %v5043_v23 = vmax.f32 %v5031_v10, %v5041_v31  ;;  %v5064_v21 = vrot.slane %v5034_v44, 1  ;;  %v5033_v40 = vadd.f32 %v5002_v38, %v4899_v15  ;;  %v5250_v31 = vld [vmem:[%s12639_s5 + $0x3e0] sm:$0xff]  ;;  %v5249_v38 = vld [vmem:[%s12639_s5 + $0x3d8] sm:$0xff] }
 0x441   : > { %v8890_v53 = vpop.f32.mrf.mxu0  ;;  %v5234_v15 = vld [vmem:[%s12639_s5 + $0x360] sm:$0xff] }
 0x442   : > { %v5048_v46 = vmax.f32 %v5043_v23, %v5047_v29  ;;  %v5060_v56 = vrot.slane %v5033_v40, 1  ;;  %v5036_v22 = vadd.f32 %v8890_v53, %v4902_v9  ;;  %v5066_v43 = vmax.f32 %v5034_v44, %v5064_v21  ;;  %v5202_v44 = vld [vmem:[%s12639_s5 + $0x260] sm:$0xff]  ;;  %v5201_v9 = vld [vmem:[%s12639_s5 + $0x258] sm:$0xff]  ;;  %v5216_v23 = vld [vmem:[%s12639_s5 + $0x2d0] sm:$0xff] }
 0x443   : > { %v5012_v63 = vpop.f32.mrf.mxu0  ;;  %v5233_v29 = vld [vmem:[%s12639_s5 + $0x358] sm:$0xff]  ;;  %v5248_v21 = vld [vmem:[%s12639_s5 + $0x3d0] sm:$0xff]  ;;  %v5215_v53 = vld [vmem:[%s12639_s5 + $0x2c8] sm:$0xff] }
 0x444   : > { %v5057_v58 = vadd.f32 %v11924_v41, %v5048_v46  ;;  %v5062_v28 = vmax.f32 %v5033_v40, %v5060_v56  ;;  %v5077_v20 = vrot.slane %v5036_v22, 1  ;;  %v5035_v36 = vadd.f32 %v5012_v63, %v4901_v16  ;;  %v5200_v40 = vld [vmem:[%s12639_s5 + $0x250] sm:$0xff]  ;;  %v5199_v56 = vld [vmem:[%s12639_s5 + $0x248] sm:$0xff]  ;;  %v5214_v16 = vld [vmem:[%s12639_s5 + $0x2c0] sm:$0xff] }
 0x445   : > { %v8893_v33 = vpop.f32.mrf.mxu0  ;;  %v5049_v49 = vadd.f32 %v5048_v46, %v11919_v37  ;;  %v5247_v46 = vld [vmem:[%s12639_s5 + $0x3c8] sm:$0xff]  ;;  %v5246_v63 = vld [vmem:[%s12639_s5 + $0x3c0] sm:$0xff] }
 0x446   : > { %v5058_v48 = vmax.f32 %v5057_v58, 0.0  ;;  %v11929_v55 = vmax.f32 %v5062_v28, %v5066_v43  ;;  %v5073_v52 = vrot.slane %v5035_v36, 1  ;;  %v5038_v8 = vadd.f32 %v8893_v33, %v4904_v42  ;;  %v5198_v58 = vld [vmem:[%s12639_s5 + $0x240] sm:$0xff]  ;;  %v5213_v28 = vld [vmem:[%s12639_s5 + $0x2b8] sm:$0xff]  ;;  %v5212_v42 = vld [vmem:[%s12639_s5 + $0x2b0] sm:$0xff] }
 0x447   : > { %v5022_v59 = vpop.f32.mrf.mxu0  ;;  %v5079_v1 = vmax.f32 %v5036_v22, %v5077_v20  ;;  %v5050_v62 = vmax.f32 %v5049_v49, 0.0  ;;  %v5231_v22 = vld [vmem:[%s12639_s5 + $0x348] sm:$0xff]  ;;  %v5230_v43 = vld [vmem:[%s12639_s5 + $0x340] sm:$0xff]  ;;  %v5245_v20 = vld [vmem:[%s12639_s5 + $0x3b8] sm:$0xff] }
 0x448   : > { %v5101_v14 = vrot.slane %v5058_v48, 4  ;;  %v5070_v3 = vadd.f32 %v11929_v55, %v11924_v41  ;;  %v5037_v54 = vadd.f32 %v5022_v59, %v4903_v34  ;;  %v5075_v17 = vmax.f32 %v5035_v36, %v5073_v52  ;;  %v5229_v36 = vld [vmem:[%s12639_s5 + $0x338] sm:$0xff]  ;;  %v5244_v33 = vld [vmem:[%s12639_s5 + $0x3b0] sm:$0xff]  ;;  %v5211_v34 = vld [vmem:[%s12639_s5 + $0x2a8] sm:$0xff] }
 0x449   : > { %v5090_v12 = vrot.slane %v5038_v8, 1  ;;  %v5099_v47 = vrot.slane %v5058_v48, 2  ;;  %v5103_v26 = vrot.slane %v5058_v48, 6  ;;  %v5196_v49 = vld [vmem:[%s12639_s5 + $0x230] sm:$0xff]  ;;  %v5243_v52 = vld [vmem:[%s12639_s5 + $0x3a8] sm:$0xff] }
 0x44a   : > { %v11934_v27 = vmax.f32 %v5070_v3, 0.0  ;;  %v5086_v19 = vrot.slane %v5037_v54, 1  ;;  %v11942_v18 = vmax.f32 %v5075_v17, %v5079_v1  ;;  %v5228_v48 = vld [vmem:[%s12639_s5 + $0x330] sm:$0xff]  ;;  %v5227_v59 = vld [vmem:[%s12639_s5 + $0x328] sm:$0xff]  ;;  %v5242_v3 = vld [vmem:[%s12639_s5 + $0x3a0] sm:$0xff] }
 0x44b   : > { %5447 = vmatprep.mubr.f32.mxu1 %v5099_v47  ;;  %5517 = vmatprep.mubr.f32.mxu0 %v5103_v26  ;;  %v5092_v61 = vmax.f32 %v5038_v8, %v5090_v12  ;;  %v5195_v8 = vld [vmem:[%s12639_s5 + $0x228] sm:$0xff]  ;;  %v5194_v1 = vld [vmem:[%s12639_s5 + $0x220] sm:$0xff]  ;;  %v5209_v17 = vld [vmem:[%s12639_s5 + $0x298] sm:$0xff] }
 0x44c   : > { %v5088_v35 = vmax.f32 %v5037_v54, %v5086_v19  ;;  %5448 = vmatmul.mubr.f32.vlgmr.msra.gmra.mxu1 %v5050_v62  ;;  %5518 = vmatmul.mubr.f32.vlgmr.msra.gmra.mxu0 %v5101_v14  ;;  %v5106_v11 = vrot.slane %v11934_v27, 2  ;;  %v5110_v50 = vrot.slane %v11934_v27, 6  ;;  %v5210_v14 = vld [vmem:[%s12639_s5 + $0x2a0] sm:$0xff]  ;;  %v5241_v12 = vld [vmem:[%s12639_s5 + $0x398] sm:$0xff]  ;;  %v5208_v62 = vld [vmem:[%s12639_s5 + $0x290] sm:$0xff] }
 0x44d   : > { %7392 = vmatpush3.msra.mxu1 %v5205_v5  ;;  %7427 = vmatpush3.msra.mxu0 %v5237_v2  ;;  %v5226_v54 = vld [vmem:[%s12639_s5 + $0x320] sm:$0xff]  ;;  %v5193_v47 = vld [vmem:[%s12639_s5 + $0x218] sm:$0xff]  ;;  %v5240_v19 = vld [vmem:[%s12639_s5 + $0x390] sm:$0xff]  ;;  %v5083_v5 = vadd.f32 %v11942_v18, %v11924_v41 }
 0x44e   : > { %v11961_v10 = vmax.f32 %v5088_v35, %v5092_v61  ;;  %7393 = vmatprep.subr.mxu1 %v5220_v30  ;;  %7428 = vmatprep.subr.mxu0 %v5252_v45  ;;  %v5225_v26 = vld [vmem:[%s12639_s5 + $0x318] sm:$0xff]  ;;  %v5192_v2 = vld [vmem:[%s12639_s5 + $0x210] sm:$0xff]  ;;  %v5207_v45 = vld [vmem:[%s12639_s5 + $0x288] sm:$0xff]  ;;  %v5068_v61 = vadd.f32 %v11929_v55, %v11919_v37 }
 0x44f   : > { %7394 = vmatpush3.msra.mxu1 %v5204_v32  ;;  %7429 = vmatpush3.msra.mxu0 %v5236_v25  ;;  %v5224_v30 = vld [vmem:[%s12639_s5 + $0x310] sm:$0xff]  ;;  %v5191_v35 = vld [vmem:[%s12639_s5 + $0x208] sm:$0xff]  ;;  %v5206_v25 = vld [vmem:[%s12639_s5 + $0x280] sm:$0xff] }
 0x450   : > { %v11974_v39 = vadd.f32 %v11961_v10, %v11924_v41  ;;  %7395 = vmatprep.subr.mxu1 %v5219_v57  ;;  %5587 = vmatprep.mubr.f32.mxu1 %v5106_v11  ;;  %v5239_v41 = vld [vmem:[%s12639_s5 + $0x388] sm:$0xff]  ;;  %v5238_v55 = vld [vmem:[%s12639_s5 + $0x380] sm:$0xff]  ;;  %v12130_v11 = vmax.f32 %v5083_v5, 0.0 }
 0x451   : > { %7430 = vmatprep.subr.mxu0 %v5251_v13  ;;  %5657 = vmatprep.mubr.f32.mxu0 %v5110_v50  ;;  %v5223_v32 = vld [vmem:[%s12639_s5 + $0x308] sm:$0xff]  ;;  %v5190_v57 = vld [vmem:[%s12639_s5 + $0x200] sm:$0xff]  ;;  %v5069_v13 = vmax.f32 %v5068_v61, 0.0 }
 0x452   : > { %7396 = vmatpush3.msra.mxu1 %v5203_v4  ;;  %7431 = vmatpush3.msra.mxu0 %v5235_v51  ;;  %v5222_v50 = vld [vmem:[%s12639_s5 + $0x300] sm:$0xff]  ;;  %v5108_v4 = vrot.slane %v11934_v27, 4  ;;  %v5285_v51 = vld [vmem:[%s12639_s5 + $0x4f8] sm:$0xff]  ;;  %v5113_v27 = vrot.slane %v12130_v11, 2  ;;  %v5259_v5 = vld [vmem:[%s12639_s5 + $0x428] sm:$0xff] }
 0x453   : > { %7397 = vmatprep.subr.mxu1 %v5218_v0  ;;  %7432 = vmatprep.subr.mxu0 %v5250_v31  ;;  %v5317_v0 = vld [vmem:[%s12639_s5 + $0x5f8] sm:$0xff]  ;;  %v5290_v61 = vld [vmem:[%s12639_s5 + $0x520] sm:$0xff] }
 0x454   : > { %7398 = vmatpush3.msra.mxu1 %v5202_v44  ;;  %7433 = vmatpush3.msra.mxu0 %v5234_v15  ;;  %v5269_v31 = vld [vmem:[%s12639_s5 + $0x478] sm:$0xff]  ;;  %v5117_v15 = vrot.slane %v12130_v11, 6 }
 0x455   : > { %7399 = vmatprep.subr.mxu1 %v5217_v6  ;;  %7434 = vmatprep.subr.mxu0 %v5249_v38  ;;  %v5301_v44 = vld [vmem:[%s12639_s5 + $0x578] sm:$0xff]  ;;  %v5284_v6 = vld [vmem:[%s12639_s5 + $0x4f0] sm:$0xff] }
 0x456   : > { %7400 = vmatpush3.msra.mxu1 %v5201_v9  ;;  %7435 = vmatpush3.msra.mxu0 %v5233_v29  ;;  %v5316_v38 = vld [vmem:[%s12639_s5 + $0x5f0] sm:$0xff] }
 0x457   : > { %7401 = vmatprep.subr.mxu1 %v5216_v23  ;;  %7436 = vmatprep.subr.mxu0 %v5248_v21  ;;  %v5268_v9 = vld [vmem:[%s12639_s5 + $0x470] sm:$0xff]  ;;  %v5283_v23 = vld [vmem:[%s12639_s5 + $0x4e8] sm:$0xff] }
 0x458   : > { %7402 = vmatpush3.msra.mxu1 %v5200_v40  ;;  %7437 = vmatpush3.msra.mxu0 %v5232_v60  ;;  %v5300_v29 = vld [vmem:[%s12639_s5 + $0x570] sm:$0xff]  ;;  %v5315_v21 = vld [vmem:[%s12639_s5 + $0x5e8] sm:$0xff] }
 0x459   : > { %7403 = vmatprep.subr.mxu1 %v5215_v53  ;;  %7438 = vmatprep.subr.mxu0 %v5247_v46  ;;  %v5267_v40 = vld [vmem:[%s12639_s5 + $0x468] sm:$0xff]  ;;  %v5282_v53 = vld [vmem:[%s12639_s5 + $0x4e0] sm:$0xff] }
 0x45a   : > { %7404 = vmatpush3.msra.mxu1 %v5199_v56  ;;  %7439 = vmatpush3.msra.mxu0 %v5231_v22  ;;  %v5299_v60 = vld [vmem:[%s12639_s5 + $0x568] sm:$0xff]  ;;  %v5314_v46 = vld [vmem:[%s12639_s5 + $0x5e0] sm:$0xff] }
 0x45b   : > { %7405 = vmatprep.subr.mxu1 %v5214_v16  ;;  %7440 = vmatprep.subr.mxu0 %v5246_v63  ;;  %v5266_v56 = vld [vmem:[%s12639_s5 + $0x460] sm:$0xff]  ;;  %v5281_v16 = vld [vmem:[%s12639_s5 + $0x4d8] sm:$0xff] }
 0x45c   : > { %7406 = vmatpush3.msra.mxu1 %v5198_v58  ;;  %7441 = vmatpush3.msra.mxu0 %v5230_v43  ;;  %v5298_v22 = vld [vmem:[%s12639_s5 + $0x560] sm:$0xff]  ;;  %v5313_v63 = vld [vmem:[%s12639_s5 + $0x5d8] sm:$0xff] }
 0x45d   : > { %7407 = vmatprep.subr.mxu1 %v5213_v28  ;;  %7442 = vmatprep.subr.mxu0 %v5245_v20  ;;  %v5265_v58 = vld [vmem:[%s12639_s5 + $0x458] sm:$0xff]  ;;  %v5280_v28 = vld [vmem:[%s12639_s5 + $0x4d0] sm:$0xff] }
 0x45e   : > { %7408 = vmatpush3.msra.mxu1 %v5197_v24  ;;  %7443 = vmatpush3.msra.mxu0 %v5229_v36  ;;  %v5297_v43 = vld [vmem:[%s12639_s5 + $0x558] sm:$0xff]  ;;  %v5312_v20 = vld [vmem:[%s12639_s5 + $0x5d0] sm:$0xff] }
 0x45f   : > { %7409 = vmatprep.subr.mxu1 %v5212_v42  ;;  %7444 = vmatprep.subr.mxu0 %v5244_v33  ;;  %v5264_v24 = vld [vmem:[%s12639_s5 + $0x450] sm:$0xff]  ;;  %v5279_v42 = vld [vmem:[%s12639_s5 + $0x4c8] sm:$0xff] }
 0x460   : > { %7410 = vmatpush3.msra.mxu1 %v5196_v49  ;;  %7445 = vmatpush3.msra.mxu0 %v5228_v48  ;;  %v5296_v36 = vld [vmem:[%s12639_s5 + $0x550] sm:$0xff]  ;;  %v5311_v33 = vld [vmem:[%s12639_s5 + $0x5c8] sm:$0xff] }
 0x461   : > { %7411 = vmatprep.subr.mxu1 %v5211_v34  ;;  %7446 = vmatprep.subr.mxu0 %v5243_v52  ;;  %v5263_v49 = vld [vmem:[%s12639_s5 + $0x448] sm:$0xff]  ;;  %v5278_v34 = vld [vmem:[%s12639_s5 + $0x4c0] sm:$0xff] }
 0x462   : > { %7412 = vmatpush3.msra.mxu1 %v5195_v8  ;;  %7447 = vmatpush3.msra.mxu0 %v5227_v59  ;;  %v5295_v48 = vld [vmem:[%s12639_s5 + $0x548] sm:$0xff]  ;;  %v5310_v52 = vld [vmem:[%s12639_s5 + $0x5c0] sm:$0xff] }
 0x463   : > { %7413 = vmatprep.subr.mxu1 %v5210_v14  ;;  %7448 = vmatprep.subr.mxu0 %v5242_v3  ;;  %v5262_v8 = vld [vmem:[%s12639_s5 + $0x440] sm:$0xff]  ;;  %v5277_v14 = vld [vmem:[%s12639_s5 + $0x4b8] sm:$0xff] }
 0x464   : > { %7414 = vmatpush3.msra.mxu1 %v5194_v1  ;;  %7449 = vmatpush3.msra.mxu0 %v5226_v54  ;;  %v5294_v59 = vld [vmem:[%s12639_s5 + $0x540] sm:$0xff]  ;;  %v5309_v3 = vld [vmem:[%s12639_s5 + $0x5b8] sm:$0xff] }
 0x465   : > { %7415 = vmatprep.subr.mxu1 %v5209_v17  ;;  %7450 = vmatprep.subr.mxu0 %v5241_v12  ;;  %v5261_v1 = vld [vmem:[%s12639_s5 + $0x438] sm:$0xff]  ;;  %v5276_v17 = vld [vmem:[%s12639_s5 + $0x4b0] sm:$0xff] }
 0x466   : > { %7416 = vmatpush3.msra.mxu1 %v5193_v47  ;;  %7451 = vmatpush3.msra.mxu0 %v5225_v26  ;;  %v5293_v54 = vld [vmem:[%s12639_s5 + $0x538] sm:$0xff]  ;;  %v5308_v12 = vld [vmem:[%s12639_s5 + $0x5b0] sm:$0xff] }
 0x467   : > { %7417 = vmatprep.subr.mxu1 %v5208_v62  ;;  %7452 = vmatprep.subr.mxu0 %v5240_v19  ;;  %v5260_v47 = vld [vmem:[%s12639_s5 + $0x430] sm:$0xff]  ;;  %v5275_v62 = vld [vmem:[%s12639_s5 + $0x4a8] sm:$0xff] }
 0x468   : > { %7418 = vmatpush3.msra.mxu1 %v5192_v2  ;;  %7453 = vmatpush3.msra.mxu0 %v5224_v30  ;;  %v5292_v26 = vld [vmem:[%s12639_s5 + $0x530] sm:$0xff]  ;;  %v5307_v19 = vld [vmem:[%s12639_s5 + $0x5a8] sm:$0xff]  ;;  %v5274_v30 = vld [vmem:[%s12639_s5 + $0x4a0] sm:$0xff] }
 0x469   : > { %7419 = vmatprep.subr.mxu1 %v5207_v45  ;;  %7454 = vmatprep.subr.mxu0 %v5239_v41  ;;  %v5291_v2 = vld [vmem:[%s12639_s5 + $0x528] sm:$0xff]  ;;  %v5306_v45 = vld [vmem:[%s12639_s5 + $0x5a0] sm:$0xff] }
 0x46a   : > { %7420 = vmatpush3.msra.mxu1 %v5191_v35  ;;  %7455 = vmatpush3.msra.mxu0 %v5223_v32  ;;  %v5258_v41 = vld [vmem:[%s12639_s5 + $0x420] sm:$0xff]  ;;  %v5273_v35 = vld [vmem:[%s12639_s5 + $0x498] sm:$0xff] }
 0x46b   : > { %7421 = vmatprep.subr.mxu1 %v5206_v25  ;;  %7456 = vmatprep.subr.mxu0 %v5238_v55  ;;  %v5305_v32 = vld [vmem:[%s12639_s5 + $0x598] sm:$0xff] }
 0x46c   : > { %7422 = vmatpush3.msra.mxu1 %v5190_v57  ;;  %7457 = vmatpush3.msra.mxu0 %v5222_v50  ;;  %v5257_v25 = vld [vmem:[%s12639_s5 + $0x418] sm:$0xff]  ;;  %v5272_v57 = vld [vmem:[%s12639_s5 + $0x490] sm:$0xff] }
 0x46d   : > { %5588 = vmatmul.mubr.f32.vlgmr.msra.gmra.mxu1 %v5069_v13  ;;  %5658 = vmatmul.mubr.f32.vlgmr.msra.gmra.mxu0 %v5108_v4  ;;  %v5289_v55 = vld [vmem:[%s12639_s5 + $0x518] sm:$0xff]  ;;  %v5304_v50 = vld [vmem:[%s12639_s5 + $0x590] sm:$0xff] }
 0x46e   : > { %7461 = vmatprep.subr.mxu1 %v5285_v51  ;;  %7496 = vmatprep.subr.mxu0 %v5317_v0  ;;  %v5256_v13 = vld [vmem:[%s12639_s5 + $0x410] sm:$0xff]  ;;  %v5271_v51 = vld [vmem:[%s12639_s5 + $0x488] sm:$0xff] }
 0x46f   : > { %7462 = vmatpush3.msra.mxu1 %v5269_v31  ;;  %5727 = vmatprep.mubr.f32.mxu1 %v5113_v27  ;;  %v5288_v4 = vld [vmem:[%s12639_s5 + $0x510] sm:$0xff]  ;;  %v5303_v0 = vld [vmem:[%s12639_s5 + $0x588] sm:$0xff]  ;;  %v5081_v31 = vadd.f32 %v11942_v18, %v11919_v37  ;;  %v5302_v18 = vld [vmem:[%s12639_s5 + $0x580] sm:$0xff] }
 0x470   : > { %7497 = vmatpush3.msra.mxu0 %v5301_v44  ;;  %5797 = vmatprep.mubr.f32.mxu0 %v5117_v15  ;;  %v5255_v27 = vld [vmem:[%s12639_s5 + $0x408] sm:$0xff]  ;;  %v5270_v15 = vld [vmem:[%s12639_s5 + $0x480] sm:$0xff] }
 0x471   : > { %7463 = vmatprep.subr.mxu1 %v5284_v6  ;;  %7498 = vmatprep.subr.mxu0 %v5316_v38  ;;  %v5287_v44 = vld [vmem:[%s12639_s5 + $0x508] sm:$0xff]  ;;  %v12330_v6 = vmax.f32 %v11974_v39, 0.0  ;;  %v5254_v38 = vld [vmem:[%s12639_s5 + $0x400] sm:$0xff]  ;;  %v5349_v39 = vld [vmem:[%s12639_s5 + $0x6f8] sm:$0xff] }
 0x472   : > { %7464 = vmatpush3.msra.mxu1 %v5268_v9  ;;  %7499 = vmatpush3.msra.mxu0 %v5300_v29  ;;  %v5286_v9 = vld [vmem:[%s12639_s5 + $0x500] sm:$0xff]  ;;  %v5082_v29 = vmax.f32 %v5081_v31, 0.0  ;;  %v5369_v31 = vld [vmem:[%s12639_s5 + $0x798] sm:$0xff] }
 0x473   : > { %7465 = vmatprep.subr.mxu1 %v5283_v23  ;;  %7500 = vmatprep.subr.mxu0 %v5315_v21  ;;  %v5115_v23 = vrot.slane %v12130_v11, 4  ;;  %v5381_v21 = vld [vmem:[%s12639_s5 + $0x7f8] sm:$0xff]  ;;  %v5120_v11 = vrot.slane %v12330_v6, 2 }
 0x474   : > { %7466 = vmatpush3.msra.mxu1 %v5267_v40  ;;  %7501 = vmatpush3.msra.mxu0 %v5299_v60  ;;  %v5333_v40 = vld [vmem:[%s12639_s5 + $0x678] sm:$0xff] }
 0x475   : > { %7467 = vmatprep.subr.mxu1 %v5282_v53  ;;  %7502 = vmatprep.subr.mxu0 %v5314_v46  ;;  %v5365_v60 = vld [vmem:[%s12639_s5 + $0x778] sm:$0xff]  ;;  %v5124_v53 = vrot.slane %v12330_v6, 6  ;;  %v5348_v46 = vld [vmem:[%s12639_s5 + $0x6f0] sm:$0xff] }
 0x476   : > { %7468 = vmatpush3.msra.mxu1 %v5266_v56  ;;  %7503 = vmatpush3.msra.mxu0 %v5298_v22  ;;  %v5380_v56 = vld [vmem:[%s12639_s5 + $0x7f0] sm:$0xff] }
 0x477   : > { %7469 = vmatprep.subr.mxu1 %v5281_v16  ;;  %7504 = vmatprep.subr.mxu0 %v5313_v63  ;;  %v5332_v22 = vld [vmem:[%s12639_s5 + $0x670] sm:$0xff]  ;;  %v5347_v63 = vld [vmem:[%s12639_s5 + $0x6e8] sm:$0xff] }
 0x478   : > { %7470 = vmatpush3.msra.mxu1 %v5265_v58  ;;  %7505 = vmatpush3.msra.mxu0 %v5297_v43  ;;  %v5364_v16 = vld [vmem:[%s12639_s5 + $0x770] sm:$0xff]  ;;  %v5379_v58 = vld [vmem:[%s12639_s5 + $0x7e8] sm:$0xff] }
 0x479   : > { %7471 = vmatprep.subr.mxu1 %v5280_v28  ;;  %7506 = vmatprep.subr.mxu0 %v5312_v20  ;;  %v5331_v43 = vld [vmem:[%s12639_s5 + $0x668] sm:$0xff]  ;;  %v5346_v20 = vld [vmem:[%s12639_s5 + $0x6e0] sm:$0xff] }
 0x47a   : > { %7472 = vmatpush3.msra.mxu1 %v5264_v24  ;;  %7507 = vmatpush3.msra.mxu0 %v5296_v36  ;;  %v5363_v28 = vld [vmem:[%s12639_s5 + $0x768] sm:$0xff]  ;;  %v5378_v24 = vld [vmem:[%s12639_s5 + $0x7e0] sm:$0xff] }
 0x47b   : > { %7473 = vmatprep.subr.mxu1 %v5279_v42  ;;  %7508 = vmatprep.subr.mxu0 %v5311_v33  ;;  %v5330_v36 = vld [vmem:[%s12639_s5 + $0x660] sm:$0xff]  ;;  %v5345_v33 = vld [vmem:[%s12639_s5 + $0x6d8] sm:$0xff] }
 0x47c   : > { %7474 = vmatpush3.msra.mxu1 %v5263_v49  ;;  %7509 = vmatpush3.msra.mxu0 %v5295_v48  ;;  %v5362_v42 = vld [vmem:[%s12639_s5 + $0x760] sm:$0xff]  ;;  %v5377_v49 = vld [vmem:[%s12639_s5 + $0x7d8] sm:$0xff] }
 0x47d   : > { %7475 = vmatprep.subr.mxu1 %v5278_v34  ;;  %7510 = vmatprep.subr.mxu0 %v5310_v52  ;;  %v5329_v48 = vld [vmem:[%s12639_s5 + $0x658] sm:$0xff]  ;;  %v5344_v52 = vld [vmem:[%s12639_s5 + $0x6d0] sm:$0xff] }
 0x47e   : > { %7476 = vmatpush3.msra.mxu1 %v5262_v8  ;;  %7511 = vmatpush3.msra.mxu0 %v5294_v59  ;;  %v5361_v34 = vld [vmem:[%s12639_s5 + $0x758] sm:$0xff]  ;;  %v5376_v8 = vld [vmem:[%s12639_s5 + $0x7d0] sm:$0xff] }
 0x47f   : > { %7477 = vmatprep.subr.mxu1 %v5277_v14  ;;  %7512 = vmatprep.subr.mxu0 %v5309_v3  ;;  %v5328_v59 = vld [vmem:[%s12639_s5 + $0x650] sm:$0xff]  ;;  %v5343_v3 = vld [vmem:[%s12639_s5 + $0x6c8] sm:$0xff] }
 0x480   : > { %7478 = vmatpush3.msra.mxu1 %v5261_v1  ;;  %7513 = vmatpush3.msra.mxu0 %v5293_v54  ;;  %v5360_v14 = vld [vmem:[%s12639_s5 + $0x750] sm:$0xff]  ;;  %v5375_v1 = vld [vmem:[%s12639_s5 + $0x7c8] sm:$0xff] }
 0x481   : > { %7479 = vmatprep.subr.mxu1 %v5276_v17  ;;  %7514 = vmatprep.subr.mxu0 %v5308_v12  ;;  %v5327_v54 = vld [vmem:[%s12639_s5 + $0x648] sm:$0xff]  ;;  %v5342_v12 = vld [vmem:[%s12639_s5 + $0x6c0] sm:$0xff] }
 0x482   : > { %7480 = vmatpush3.msra.mxu1 %v5260_v47  ;;  %7515 = vmatpush3.msra.mxu0 %v5292_v26  ;;  %v5359_v17 = vld [vmem:[%s12639_s5 + $0x748] sm:$0xff]  ;;  %v5374_v47 = vld [vmem:[%s12639_s5 + $0x7c0] sm:$0xff] }
 0x483   : > { %7481 = vmatprep.subr.mxu1 %v5275_v62  ;;  %7516 = vmatprep.subr.mxu0 %v5307_v19  ;;  %v5326_v26 = vld [vmem:[%s12639_s5 + $0x640] sm:$0xff]  ;;  %v5341_v19 = vld [vmem:[%s12639_s5 + $0x6b8] sm:$0xff] }
 0x484   : > { %7482 = vmatpush3.msra.mxu1 %v5259_v5  ;;  %7517 = vmatpush3.msra.mxu0 %v5291_v2  ;;  %v5358_v62 = vld [vmem:[%s12639_s5 + $0x740] sm:$0xff]  ;;  %v5373_v5 = vld [vmem:[%s12639_s5 + $0x7b8] sm:$0xff] }
 0x485   : > { %7483 = vmatprep.subr.mxu1 %v5274_v30  ;;  %7518 = vmatprep.subr.mxu0 %v5306_v45  ;;  %v5325_v2 = vld [vmem:[%s12639_s5 + $0x638] sm:$0xff]  ;;  %v5340_v45 = vld [vmem:[%s12639_s5 + $0x6b0] sm:$0xff] }
 0x486   : > { %7484 = vmatpush3.msra.mxu1 %v5258_v41  ;;  %7519 = vmatpush3.msra.mxu0 %v5290_v61  ;;  %v5357_v30 = vld [vmem:[%s12639_s5 + $0x738] sm:$0xff]  ;;  %v5372_v41 = vld [vmem:[%s12639_s5 + $0x7b0] sm:$0xff] }
 0x487   : > { %7485 = vmatprep.subr.mxu1 %v5273_v35  ;;  %7520 = vmatprep.subr.mxu0 %v5305_v32  ;;  %v5324_v61 = vld [vmem:[%s12639_s5 + $0x630] sm:$0xff]  ;;  %v5339_v32 = vld [vmem:[%s12639_s5 + $0x6a8] sm:$0xff] }
 0x488   : > { %7486 = vmatpush3.msra.mxu1 %v5257_v25  ;;  %7521 = vmatpush3.msra.mxu0 %v5289_v55  ;;  %v5356_v35 = vld [vmem:[%s12639_s5 + $0x730] sm:$0xff]  ;;  %v5371_v25 = vld [vmem:[%s12639_s5 + $0x7a8] sm:$0xff] }
 0x489   : > { %7487 = vmatprep.subr.mxu1 %v5272_v57  ;;  %7522 = vmatprep.subr.mxu0 %v5304_v50  ;;  %v5323_v55 = vld [vmem:[%s12639_s5 + $0x628] sm:$0xff]  ;;  %v5338_v50 = vld [vmem:[%s12639_s5 + $0x6a0] sm:$0xff] }
 0x48a   : > { %7488 = vmatpush3.msra.mxu1 %v5256_v13  ;;  %7523 = vmatpush3.msra.mxu0 %v5288_v4  ;;  %v5355_v57 = vld [vmem:[%s12639_s5 + $0x728] sm:$0xff]  ;;  %v5370_v13 = vld [vmem:[%s12639_s5 + $0x7a0] sm:$0xff] }
 0x48b   : > { %7489 = vmatprep.subr.mxu1 %v5271_v51  ;;  %7524 = vmatprep.subr.mxu0 %v5303_v0  ;;  %v5322_v4 = vld [vmem:[%s12639_s5 + $0x620] sm:$0xff]  ;;  %v5337_v0 = vld [vmem:[%s12639_s5 + $0x698] sm:$0xff] }
 0x48c   : > { %7490 = vmatpush3.msra.mxu1 %v5255_v27  ;;  %7525 = vmatpush3.msra.mxu0 %v5287_v44  ;;  %v5354_v51 = vld [vmem:[%s12639_s5 + $0x720] sm:$0xff]  ;;  %v5321_v27 = vld [vmem:[%s12639_s5 + $0x618] sm:$0xff] }
 0x48d   : > { %7491 = vmatprep.subr.mxu1 %v5270_v15  ;;  %7526 = vmatprep.subr.mxu0 %v5302_v18  ;;  %v5353_v44 = vld [vmem:[%s12639_s5 + $0x718] sm:$0xff]  ;;  %v5336_v15 = vld [vmem:[%s12639_s5 + $0x690] sm:$0xff] }
 0x48e   : > { %7492 = vmatpush3.msra.mxu1 %v5254_v38  ;;  %7527 = vmatpush3.msra.mxu0 %v5286_v9  ;;  %v5368_v18 = vld [vmem:[%s12639_s5 + $0x790] sm:$0xff] }
 0x48f   : > { %5728 = vmatmul.mubr.f32.vlgmr.msra.gmra.mxu1 %v5082_v29  ;;  %5798 = vmatmul.mubr.f32.vlgmr.msra.gmra.mxu0 %v5115_v23  ;;  %v5320_v38 = vld [vmem:[%s12639_s5 + $0x610] sm:$0xff]  ;;  %v5335_v29 = vld [vmem:[%s12639_s5 + $0x688] sm:$0xff] }
 0x490   : > { %7531 = vmatprep.subr.mxu1 %v5349_v39  ;;  %7566 = vmatprep.subr.mxu0 %v5381_v21  ;;  %v5352_v9 = vld [vmem:[%s12639_s5 + $0x710] sm:$0xff]  ;;  %v5367_v23 = vld [vmem:[%s12639_s5 + $0x788] sm:$0xff]  ;;  %v5094_v39 = vadd.f32 %v11961_v10, %v11919_v37  ;;  %v5366_v37 = vld [vmem:[%s12639_s5 + $0x780] sm:$0xff] }
 0x491   : > { %7532 = vmatpush3.msra.mxu1 %v5333_v40  ;;  %5867 = vmatprep.mubr.f32.mxu1 %v5120_v11  ;;  %v5319_v21 = vld [vmem:[%s12639_s5 + $0x608] sm:$0xff]  ;;  %v5334_v11 = vld [vmem:[%s12639_s5 + $0x680] sm:$0xff] }
 0x492   : > { %7567 = vmatpush3.msra.mxu0 %v5365_v60  ;;  %5937 = vmatprep.mubr.f32.mxu0 %v5124_v53  ;;  %v5351_v40 = vld [vmem:[%s12639_s5 + $0x708] sm:$0xff]  ;;  %v5318_v10 = vld [vmem:[%s12639_s5 + $0x600] sm:$0xff]  ;;  %v5095_v53 = vmax.f32 %v5094_v39, 0.0 }
 0x493   : > { %7533 = vmatprep.subr.mxu1 %v5348_v46  ;;  %7568 = vmatprep.subr.mxu0 %v5380_v56  ;;  %v5350_v60 = vld [vmem:[%s12639_s5 + $0x700] sm:$0xff]  ;;  %v5122_v46 = vrot.slane %v12330_v6, 4  ;;  %v5959_v56 = vld [vmem:[%s12641_s7 + $0x78] sm:$0xff]  ;;  %v5957_v6 = vld [vmem:[%s12641_s7 + $0x68] sm:$0xff] }
 0x494   : > { %7534 = vmatpush3.msra.mxu1 %v5332_v22  ;;  %7569 = vmatpush3.msra.mxu0 %v5364_v16  ;;  %v9045_v22 = vmov 0.0   ;;  %v5958_v16 = vld [vmem:[%s12641_s7 + $0x70] sm:$0xff] }
 0x495   : > { %7535 = vmatprep.subr.mxu1 %v5347_v63  ;;  %7570 = vmatprep.subr.mxu0 %v5379_v58  ;;  %v5956_v63 = vld [vmem:[%s12641_s7 + $0x60] sm:$0xff]  ;;  %v5955_v58 = vld [vmem:[%s12641_s7 + $0x58] sm:$0xff] }
 0x496   : > { %7536 = vmatpush3.msra.mxu1 %v5331_v43  ;;  %7571 = vmatpush3.msra.mxu0 %v5363_v28  ;;  %v5954_v43 = vld [vmem:[%s12641_s7 + $0x50] sm:$0xff]  ;;  %v5953_v28 = vld [vmem:[%s12641_s7 + $0x48] sm:$0xff] }
 0x497   : > { %7537 = vmatprep.subr.mxu1 %v5346_v20  ;;  %7572 = vmatprep.subr.mxu0 %v5378_v24  ;;  %v5952_v20 = vld [vmem:[%s12641_s7 + $0x40] sm:$0xff]  ;;  %v5951_v24 = vld [vmem:[%s12641_s7 + $0x38] sm:$0xff] }
 0x498   : > { %7538 = vmatpush3.msra.mxu1 %v5330_v36  ;;  %7573 = vmatpush3.msra.mxu0 %v5362_v42  ;;  %v5950_v36 = vld [vmem:[%s12641_s7 + $0x30] sm:$0xff]  ;;  %v5949_v42 = vld [vmem:[%s12641_s7 + $0x28] sm:$0xff] }
 0x499   : > { %7539 = vmatprep.subr.mxu1 %v5345_v33  ;;  %7574 = vmatprep.subr.mxu0 %v5377_v49  ;;  %v5948_v33 = vld [vmem:[%s12641_s7 + $0x20] sm:$0xff]  ;;  %v5947_v49 = vld [vmem:[%s12641_s7 + $0x18] sm:$0xff] }
 0x49a   : > { %7540 = vmatpush3.msra.mxu1 %v5329_v48  ;;  %7575 = vmatpush3.msra.mxu0 %v5361_v34  ;;  %v5946_v48 = vld [vmem:[%s12641_s7 + $0x10] sm:$0xff]  ;;  %v5945_v34 = vld [vmem:[%s12641_s7 + $0x8] sm:$0xff] }
 0x49b   : > { %7541 = vmatprep.subr.mxu1 %v5344_v52  ;;  %7576 = vmatprep.subr.mxu0 %v5376_v8  ;;  %v5944_v52 = vld [vmem:[%s12641_s7] sm:$0xff] }
 0x49c   : > { %7542 = vmatpush3.msra.mxu1 %v5328_v59  ;;  %7577 = vmatpush3.msra.mxu0 %v5360_v14 }
 0x49d   : > { %7543 = vmatprep.subr.mxu1 %v5343_v3  ;;  %7578 = vmatprep.subr.mxu0 %v5375_v1 }
 0x49e   : > { %7544 = vmatpush3.msra.mxu1 %v5327_v54  ;;  %7579 = vmatpush3.msra.mxu0 %v5359_v17  ;;  %v5382_v54 = vld [vmem:[%s12640_s6] sm:$0x1] }
 0x49f   : > { %7545 = vmatprep.subr.mxu1 %v5342_v12  ;;  %7580 = vmatprep.subr.mxu0 %v5374_v47 }
 0x4a0   : > { %7546 = vmatpush3.msra.mxu1 %v5326_v26  ;;  %7581 = vmatpush3.msra.mxu0 %v5358_v62 }
 0x4a1   : > { %7547 = vmatprep.subr.mxu1 %v5341_v19  ;;  %7582 = vmatprep.subr.mxu0 %v5373_v5 }
 0x4a2   : > { %7548 = vmatpush3.msra.mxu1 %v5325_v2  ;;  %7583 = vmatpush3.msra.mxu0 %v5357_v30 }
 0x4a3   : > { %7549 = vmatprep.subr.mxu1 %v5340_v45  ;;  %7584 = vmatprep.subr.mxu0 %v5372_v41 }
 0x4a4   : > { %7550 = vmatpush3.msra.mxu1 %v5324_v61  ;;  %7585 = vmatpush3.msra.mxu0 %v5356_v35 }
 0x4a5   : > { %7551 = vmatprep.subr.mxu1 %v5339_v32  ;;  %7586 = vmatprep.subr.mxu0 %v5371_v25 }
 0x4a6   : > { %7552 = vmatpush3.msra.mxu1 %v5323_v55  ;;  %7587 = vmatpush3.msra.mxu0 %v5355_v57 }
 0x4a7   : > { %7553 = vmatprep.subr.mxu1 %v5338_v50  ;;  %7588 = vmatprep.subr.mxu0 %v5370_v13 }
 0x4a8   : > { %7554 = vmatpush3.msra.mxu1 %v5322_v4  ;;  %7589 = vmatpush3.msra.mxu0 %v5354_v51 }
 0x4a9   : > { %7555 = vmatprep.subr.mxu1 %v5337_v0  ;;  %7590 = vmatprep.subr.mxu0 %v5369_v31 }
 0x4aa   : > { %7556 = vmatpush3.msra.mxu1 %v5321_v27  ;;  %7591 = vmatpush3.msra.mxu0 %v5353_v44 }
 0x4ab   : > { %7557 = vmatprep.subr.mxu1 %v5336_v15  ;;  %7592 = vmatprep.subr.mxu0 %v5368_v18 }
 0x4ac   : > { %7558 = vmatpush3.msra.mxu1 %v5320_v38  ;;  %7593 = vmatpush3.msra.mxu0 %v5352_v9  ;;  %v6032_v9 = vand.u32 127, %v5052_v7 }
 0x4ad   : > { %7559 = vmatprep.subr.mxu1 %v5335_v29  ;;  %7594 = vmatprep.subr.mxu0 %v5367_v23  ;;  %v5960_v29 = vld [vmem:[%s12642_s8] sm:$0x1] }
 0x4ae   : > { %7560 = vmatpush3.msra.mxu1 %v5319_v21  ;;  %7595 = vmatpush3.msra.mxu0 %v5351_v40  ;;  %vm6033_vm6 = vcmp.lt.s32.totalorder %v6032_v9, 10 }
 0x4af   : > { %7561 = vmatprep.subr.mxu1 %v5334_v11  ;;  %7596 = vmatprep.subr.mxu0 %v5366_v37 }
 0x4b0   : > { %7562 = vmatpush3.msra.mxu1 %v5318_v10  ;;  %7597 = vmatpush3.msra.mxu0 %v5350_v60 }
 0x4b1   : > { %5868 = vmatmul.mubr.f32.vlgmr.msra.gmra.mxu1 %v5095_v53  ;;  %5938 = vmatmul.mubr.f32.vlgmr.msra.gmra.mxu0 %v5122_v46 }
 0x4b2   : > { %8894 = vmatprep.subr.mxu1 %v9045_v22  ;;  %8926 = vmatprep.mubr.msk.f32.mxu1 %vm9046_vm5, %v9045_v22 }
 0x4b3   : > { %8895 = vmatpush3.msra.mxu1 %v5959_v56 }
 0x4b4   : > { %8896 = vmatprep.subr.mxu1 %v9045_v22 }
 0x4b5   : > { %8897 = vmatpush3.msra.mxu1 %v5958_v16 }
 0x4b6   : > { %8898 = vmatprep.subr.mxu1 %v9045_v22 }
 0x4b7   : > { %8899 = vmatpush3.msra.mxu1 %v5957_v6 }
 0x4b8   : > { %8900 = vmatprep.subr.mxu1 %v9045_v22 }
 0x4b9   : > { %8901 = vmatpush3.msra.mxu1 %v5956_v63 }
 0x4ba   : > { %8902 = vmatprep.subr.mxu1 %v9045_v22 }
 0x4bb   : > { %8903 = vmatpush3.msra.mxu1 %v5955_v58 }
 0x4bc   : > { %8904 = vmatprep.subr.mxu1 %v9045_v22 }
 0x4bd   : > { %8905 = vmatpush3.msra.mxu1 %v5954_v43 }
 0x4be   : > { %8906 = vmatprep.subr.mxu1 %v9045_v22 }
 0x4bf   : > { %8907 = vmatpush3.msra.mxu1 %v5953_v28 }
 0x4c0   : > { %8908 = vmatprep.subr.mxu1 %v9045_v22 }
 0x4c1   : > { %8909 = vmatpush3.msra.mxu1 %v5952_v20 }
 0x4c2   : > { %8910 = vmatprep.subr.mxu1 %v9045_v22 }
 0x4c3   : > { %8911 = vmatpush3.msra.mxu1 %v5951_v24 }
 0x4c4   : > { %8912 = vmatprep.subr.mxu1 %v9045_v22 }
 0x4c5   : > { %8913 = vmatpush3.msra.mxu1 %v5950_v36 }
 0x4c6   : > { %8914 = vmatprep.subr.mxu1 %v9045_v22 }
 0x4c7   : > { %8915 = vmatpush3.msra.mxu1 %v5949_v42 }
 0x4c8   : > { %8916 = vmatprep.subr.mxu1 %v9045_v22 }
 0x4c9   : > { %8917 = vmatpush3.msra.mxu1 %v5948_v33 }
 0x4ca   : > { %8918 = vmatprep.subr.mxu1 %v9045_v22 }
 0x4cb   : > { %8919 = vmatpush3.msra.mxu1 %v5947_v49 }
 0x4cc   : > { %8920 = vmatprep.subr.mxu1 %v9045_v22 }
 0x4cd   : > { %8921 = vmatpush3.msra.mxu1 %v5946_v48 }
 0x4ce   : > { %8922 = vmatprep.subr.mxu1 %v9045_v22 }
 0x4cf   : > { %8923 = vmatpush3.msra.mxu1 %v5945_v34 }
 0x4d0   : > { %8924 = vmatprep.subr.mxu1 %v9045_v22 }
 0x4d1   : > { %8925 = vmatpush3.msra.mxu1 %v5944_v52 }
 0x50c   : > { %v7353_v8 = vpop.f32.mrf.mxu1  ;;  %v7388_v14 = vpop.f32.mrf.mxu0 }
 0x50e   : > { %v7354_v59 = vpop.f32.mrf.mxu1  ;;  %v7389_v17 = vpop.f32.mrf.mxu0 }
 0x50f   : > { %v7355_v1 = vadd.f32 %v7354_v59, %v7353_v8  ;;  %v7390_v19 = vadd.f32 %v7389_v17, %v7388_v14 }
 0x511   : > { %v5450_v47 = vadd.f32 %v7355_v1, %v5382_v54 }
 0x513   : > { %v5520_v2 = vadd.f32 %v7390_v19, %v5450_v47 }
 0x52d   : > { %v7423_v3 = vpop.f32.mrf.mxu1  ;;  %v7458_v26 = vpop.f32.mrf.mxu0 }
 0x52f   : > { %v7424_v12 = vpop.f32.mrf.mxu1  ;;  %v7459_v30 = vpop.f32.mrf.mxu0 }
 0x530   : > { %v7425_v5 = vadd.f32 %v7424_v12, %v7423_v3  ;;  %v7460_v35 = vadd.f32 %v7459_v30, %v7458_v26 }
 0x532   : > { %v5590_v41 = vadd.f32 %v7425_v5, %v5520_v2 }
 0x534   : > { %v5660_v25 = vadd.f32 %v7460_v35, %v5590_v41 }
 0x54f   : > { %v7493_v62 = vpop.f32.mrf.mxu1  ;;  %v7528_v61 = vpop.f32.mrf.mxu0 }
 0x551   : > { %v7494_v45 = vpop.f32.mrf.mxu1  ;;  %v7529_v55 = vpop.f32.mrf.mxu0 }
 0x552   : > { %v7495_v32 = vadd.f32 %v7494_v45, %v7493_v62  ;;  %v7530_v4 = vadd.f32 %v7529_v55, %v7528_v61 }
 0x554   : > { %v5730_v57 = vadd.f32 %v7495_v32, %v5660_v25 }
 0x556   : > { %v5800_v31 = vadd.f32 %v7530_v4, %v5730_v57 }
 0x571   : > { %v7563_v50 = vpop.f32.mrf.mxu1  ;;  %v7598_v13 = vpop.f32.mrf.mxu0 }
 0x573   : > { %v7564_v51 = vpop.f32.mrf.mxu1  ;;  %v7599_v0 = vpop.f32.mrf.mxu0 }
 0x574   : > { %v7565_v27 = vadd.f32 %v7564_v51, %v7563_v50  ;;  %v7600_v15 = vadd.f32 %v7599_v0, %v7598_v13 }
 0x576   : > { %v5870_v44 = vadd.f32 %v7565_v27, %v5800_v31 }
 0x578   : > { %v5940_v18 = vadd.f32 %v7600_v15, %v5870_v44 }
 0x57a   : > { %v5943_v38 = vmax.f32 %v5940_v18, 0.0 }
 0x57c   : > { %8927 = vmatmul.mubr.f32.vlgmr.msra.gmra.mxu1 %v5943_v38 }
 0x63c   : > { %v6027_v23 = vpop.f32.mrf.mxu1 }
 0x63d   : > { %v6028_v39 = vadd.f32 %v6027_v23, %v5960_v29 }
 0x63e   : > { %v8928_v21 = vpop.f32.mrf.mxu1 }
 0x63f   : > { %v6034_v40 = vsel %vm6033_vm6, %v6028_v39, -1e+30 }
 0x640   : > { %v6036_v11 = vsel %vm6035_vm7, %v6034_v40, -inf }
 0x641   : > { %6037 = vmax.xlane.f32.xlu0 %v6036_v11 }
 0x6ca   : > { %v6038_v37 = vpop.xlane.xlu0 %6037 }
 0x6cb   : > { %v6039_v10 = vsub.f32 %v6034_v40, %v6038_v37 }
 0x6cd   : > { %v6040_v60 = vmul.f32 1.442695, %v6039_v10 }
 0x6cf   : > { %8974 = vpow2.f32 %v6040_v60 }
 0x6dc   : > { %v8975_v7 = vpop.eup %8974 }
 0x6dd   : > { %v6042_v53 = vsel %vm6033_vm6, %v8975_v7, 0.0 }
 0x6de   : > { %v6043_v46 = vsel %vm6035_vm7, %v6042_v53, 0.0 }
 0x6df   : > { %6044 = vadd.xlane.f32.xlu1 %v6043_v46 }
 0x768   : > { %v6045_v56 = vpop.xlane.xlu1 %6044 }
 0x769   : > { %8976 = vlog2.f32 %v6045_v56 }
 0x776   : > { %v8977_v22 = vpop.eup %8976 }
 0x777   : > { %v6047_v16 = vmul.f32 0.6931472, %v8977_v22 }
 0x779   : > { %v6048_v6 = vadd.f32 %v6047_v16, %v6038_v37 }
 0x77b   : > { %v6049_v63 = vsub.f32 %v6034_v40, %v6048_v6 }
 0x77d   : > { %v6050_v58 = vsel %vm6033_vm6, %v6049_v63, 0.0 }
 0x77e   : > { %6051 = vst [vmem:[%s324_s27] sm:$0x1] %v6050_v58 }
 0x77f   : > { %8993 = shalt.err (!%p8990_p3)
}
 0x780   : > { %s8994_s24 = scalar_lea.hbm %s12598_s16, 16  ;;  %s8998_s27 = scalar_lea.hbm %s12643_s9, 32 }
 0x781   : > { %p8995_p4 = scmp.ne.s32.totalorder %s12598_s16, %s8994_s24  ;;  %p8999_p9 = scmp.lt.s32.totalorder %s12598_s16, %s12643_s9 }
 0x782   : > { %p9000_p10 = scmp.lt.s32.totalorder %s8998_s27, %s8994_s24 }
 0x783   : > { %p8996_p7 = pnand %p8995_p4, %p9136_p5 }
 0x784   : > { %p9001_p11 = por %p9000_p10, %p8999_p9 }
 0x785   : > { %p8997_p8 = pneg %p8996_p7 }
 0x787   : > { %p9002_p12 = pnand %p9001_p11, %p8997_p8 }
 0x789   : > { %9005 = shalt.err (!%p9002_p12)
}
 0x78a   : > { %8930 = dma.vmem_to_hbm [thread:$0]  (%p9136_p5), %s6066_s28, 16, %s12598_s16, %s6053_s17  }
 0x78b PF: > { %p8936_p13 = scmp.ge.s32.totalorder %s9040_s12, 2  ;;  %s6077_s21 = sand.u32 1, %s9028_s30  }
 0x78c   : > { %s6078_s22 = scalar_lea.sflag [#allocation3], %s6077_s21 }
 0x78d   : > { %p8933_p0 = pnand %p8936_p13, %p9140_p6 }
 0x78f   : > { %p8934_p1 = pneg %p8933_p0 }
 0x791   : > { %9023 = dma.done.wait (%p8934_p1), %s6078_s22, 16  }
 0x792   : > { %9025 = vsyncadd (%p8934_p1), %s6078_s22, 4294967280  ;;  %p19_p2 = scmp.ge.s32.totalorder %s9123_s15, 4   ;;  %s12664_s30 = smov %s9032_s10 }
 0x793   : > { %s12665_s10 = smov %s9036_s11  ;;  %s12666_s11 = smov %s9134_s18 }
 0x794   : > { %s12667_s12 = smov %s9123_s15  ;;  %21 = sbr.rel (!%p19_p2) target bundleno = 3 (0x3), region = 115 }
 0x799   :  { %6082 = vsyncpa [#allocation3], 1 }
 0x79a   :  { %6084 = vsyncpa [#allocation3 + $0x1], 1 }

</bundles_post_ra>
